<compile_context>
chip_gen: v6e
topology: v6e:2x2x1
jax: 0.10.0
libtpu: 0.0.40
codegen_flags: <defaults>
</compile_context>

<pallas_src>
import functools

import jax
import jax.numpy as jnp
import numpy as np
from jax.experimental import pallas as pl
from jax.experimental.pallas import tpu as pltpu


def _linear_attention_kernel(x_ref, g_ref, b_ref, wqkv_ref, wout_ref, bout_ref,
                             hmask_ref, ind_ref, indT_ref, o_ref,
                             xn_scr, out_scr, *,
                             heads, dim_head, b_blk, seq_len, eps,
                             mxu_dtype, approx_recip):
    dim = x_ref.shape[1]
    L = seq_len
    hidden = heads * dim_head
    inv_dim = 1.0 / dim

    gv = g_ref[...]                       # (dim, 1) LayerNorm gain
    bv = b_ref[...]                       # (dim, 1) LayerNorm bias

    # ---- 1) channel LayerNorm fused with lane packing (b,dim,L)->(dim,b*L) ----
    # Single pass (sum & sum-of-squares); every op is (dim, L)-wide and the
    # packed stores are lane-tile aligned whenever L % 128 == 0.
    for bb in range(b_blk):
        xb = x_ref[bb]                                            # (dim, L) f32
        mean = jnp.sum(xb, axis=0, keepdims=True) * inv_dim       # (1, L)
        ex2 = jnp.sum(xb * xb, axis=0, keepdims=True) * inv_dim
        var = ex2 - mean * mean                                   # biased var
        xn_scr[:, bb * L:(bb + 1) * L] = (
            (xb - mean) * jax.lax.rsqrt(var + eps) * gv + bv)

    xn = xn_scr[...]                                              # (dim, W) f32
    xn_m = xn.astype(mxu_dtype)                                   # one full-width cast

    # ---- 2) to_qkv: 1x1 conv == channel matmul (q scale pre-folded in Wqkv) ----
    qkv = jnp.dot(wqkv_ref[...], xn_m,
                  preferred_element_type=jnp.float32)             # (3*hidden, W)
    q = qkv[0:hidden]
    k = qkv[hidden:2 * hidden]
    v = qkv[2 * hidden:3 * hidden]

    # ---- 3) segmented softmax over the sequence axis, full-width math ----
    # Global per-row max: the shift cancels inside each segment's num/denom
    # (exact); exp <= 1 so it is overflow-safe. (Can underflow only if segment
    # maxima differ by >~88 in f32 -- not a concern for normalized activations.)
    p = jnp.exp(k - jnp.max(k, axis=-1, keepdims=True))           # (hidden, W) f32
    p_m = p.astype(mxu_dtype)
    v_m = v.astype(mxu_dtype)
    # Per-segment denominators with one MXU matmul against the block indicator.
    denom = jnp.dot(p_m, ind_ref[...],
                    preferred_element_type=jnp.float32)           # (hidden, b_blk)
    inv = pl.reciprocal(denom, approx=approx_recip)               # EUP on bf16 path
    # Expand reciprocals back to (hidden, W) and fold the normalization into q.
    inv_full = jnp.dot(inv.astype(mxu_dtype), indT_ref[...],
                       preferred_element_type=jnp.float32)        # (hidden, W)
    q_m = (q * inv_full).astype(mxu_dtype)                        # normalized + scaled q

    hmask = hmask_ref[...]                                        # (hidden, hidden) f32

    # ---- 4) linear attention per batch segment (heads fused, mask on ctx) ----
    # Results land in VMEM scratch at static lane offsets (no concatenate).
    for bb in range(b_blk):
        lo = bb * L
        pb = p_m[:, lo:lo + L]                                    # (hidden, L)
        vb = v_m[:, lo:lo + L]
        qb = q_m[:, lo:lo + L]
        # ctxT[e, d] = sum_n v[e, n] * p[d, n]    (fused-head context^T)
        ctxT = jax.lax.dot_general(
            vb, pb, dimension_numbers=(((1,), (1,)), ((), ())),
            preferred_element_type=jnp.float32)                   # (hidden, hidden)
        ctxT = (ctxT * hmask).astype(mxu_dtype)                   # zero cross-head terms
        # out[e, n] = sum_d ctxT[e, d] * q_norm[d, n]
        out_scr[:, lo:lo + L] = jnp.dot(ctxT, qb,
                                        preferred_element_type=jnp.float32)

    # ---- 5) to_out (1x1 conv) + bias + residual on the NORMALIZED x ----
    y = jnp.dot(wout_ref[...], out_scr[...].astype(mxu_dtype),
                preferred_element_type=jnp.float32) + bout_ref[...] + xn  # (dim, W)

    # Unpack (dim, b*L) -> (b, dim, L) with lane-aligned slice stores.
    for bb in range(b_blk):
        o_ref[bb] = y[:, bb * L:(bb + 1) * L].astype(o_ref.dtype)


def _pick_batch_block(B, L, max_lanes):
    """Pick a divisor of B for batch packing. Preference order:
    (1) packed width W = blk*L fits the VMEM lane budget,
    (2) W is a multiple of 128 (lane-dense compute / unmasked stores),
    (3) the grid has >= 2 steps (pipelining + megacore sharding),
    (4) W as large as possible within the budget."""
    def score(d):
        W = d * L
        return (W <= max_lanes,
                W % 128 == 0,
                (B // d) >= 2,
                W if W <= max_lanes else -W)
    return max((d for d in range(1, B + 1) if B % d == 0), key=score)


def linear_attention(x, g, b, wqkv, wout, bout, *, heads=4, dim_head=32,
                     eps=1e-5, mxu_dtype=jnp.bfloat16, batch_block=None,
                     max_lanes=2048, approx_recip=None, vmem_limit_bytes=None):
    """x: (B, dim, L) f32. g, b, bout: (dim, 1). wqkv: (3*heads*dim_head, dim).
    wout: (dim, heads*dim_head). Returns (B, dim, L) f32."""
    B, dim, L = x.shape
    hidden = heads * dim_head
    assert wqkv.shape == (3 * hidden, dim) and wout.shape == (dim, hidden)
    scale = float(dim_head) ** -0.5
    if approx_recip is None:
        approx_recip = (mxu_dtype != jnp.float32)

    # Fold the q scale into Wqkv's q rows (one-time, host side); weights go to
    # the MXU operand dtype (bf16 default: native on v5e/v6e/v7x MXUs).
    wqkv_s = wqkv.at[:hidden, :].multiply(scale).astype(mxu_dtype)
    wout_c = wout.astype(mxu_dtype)

    if batch_block is None:
        batch_block = _pick_batch_block(B, L, max_lanes)
    assert B % batch_block == 0
    b_blk = batch_block
    W = b_blk * L

    # Hoisted constants (built once, VMEM-resident via constant index_maps):
    # block-diagonal head mask so fused hidden-wide matmuls never mix heads,
    hh = np.arange(hidden) // dim_head
    hmask = jnp.asarray((hh[:, None] == hh[None, :]).astype(np.float32))
    # and the batch-segment indicator used for softmax denominators / expansion.
    seg = np.arange(W) // L
    ind_np = (seg[:, None] == np.arange(b_blk)[None, :]).astype(np.float32)
    ind = jnp.asarray(ind_np, dtype=mxu_dtype)          # (W, b_blk)
    indT = jnp.asarray(ind_np.T, dtype=mxu_dtype)       # (b_blk, W)

    if vmem_limit_bytes is None:
        # Rough per-step VMEM estimate (double-buffered in/out tiles, packed xn,
        # qkv/p/out intermediates & scratch), clamped to a range that is safe on
        # v5e/v6e (128 MiB) and on v7x (64 MiB physical).
        est = W * (24 * dim + 40 * hidden) + (4 << 20)
        vmem_limit_bytes = int(min(max(est, 32 << 20), 56 << 20))

    kernel = functools.partial(
        _linear_attention_kernel, heads=heads, dim_head=dim_head, b_blk=b_blk,
        seq_len=L, eps=eps, mxu_dtype=mxu_dtype, approx_recip=approx_recip)

    return pl.pallas_call(
        kernel,
        out_shape=jax.ShapeDtypeStruct((B, dim, L), jnp.float32),
        grid=(B // b_blk,),
        in_specs=[
            pl.BlockSpec((b_blk, dim, L), lambda i: (i, 0, 0)),   # x batch chunk
            pl.BlockSpec((dim, 1), lambda i: (0, 0)),             # LayerNorm g
            pl.BlockSpec((dim, 1), lambda i: (0, 0)),             # LayerNorm b
            pl.BlockSpec((3 * hidden, dim), lambda i: (0, 0)),    # Wqkv (q-scaled)
            pl.BlockSpec((dim, hidden), lambda i: (0, 0)),        # Wout
            pl.BlockSpec((dim, 1), lambda i: (0, 0)),             # bout
            pl.BlockSpec((hidden, hidden), lambda i: (0, 0)),     # head mask
            pl.BlockSpec((W, b_blk), lambda i: (0, 0)),           # segment indicator
            pl.BlockSpec((b_blk, W), lambda i: (0, 0)),           # indicator^T
        ],
        out_specs=pl.BlockSpec((b_blk, dim, L), lambda i: (i, 0, 0)),
        scratch_shapes=[
            pltpu.VMEM((dim, W), jnp.float32),                    # packed normalized x
            pltpu.VMEM((hidden, W), jnp.float32),                 # attention output
        ],
        compiler_params=pltpu.CompilerParams(
            dimension_semantics=("parallel",),
            vmem_limit_bytes=vmem_limit_bytes),
    )(x, g, b, wqkv_s, wout_c, bout, hmask, ind, indT)


def linear_attention_ref(x, g, b, wqkv, wout, bout, *, heads, dim_head, eps=1e-5):
    """Pure-JAX reference mirroring the PyTorch forward."""
    B, dim, L = x.shape
    hidden = heads * dim_head
    mean = jnp.mean(x, axis=1, keepdims=True)
    var = jnp.mean((x - mean) ** 2, axis=1, keepdims=True)
    xn = (x - mean) / jnp.sqrt(var + eps) * g[None] + b[None]
    qkv = jnp.einsum('oc,bcl->bol', wqkv, xn)
    q, k, v = jnp.split(qkv, 3, axis=1)
    q = q.reshape(B, heads, dim_head, L) * (float(dim_head) ** -0.5)
    k = k.reshape(B, heads, dim_head, L)
    v = v.reshape(B, heads, dim_head, L)
    k = jax.nn.softmax(k, axis=-1)
    context = jnp.einsum('bhdn,bhen->bhde', k, v)
    out = jnp.einsum('bhde,bhdn->bhen', context, q)
    out = out.reshape(B, hidden, L)
    y = jnp.einsum('oc,bcl->bol', wout, out) + bout[None]
    return y + xn            # residual onto the NORMALIZED x, as in the module


if __name__ == "__main__":
    # Module hyperparameters (defaults: heads=4, dim_head=32 -> hidden=128).
    dim, heads, dim_head = 32, 4, 32
    hidden = heads * dim_head
    # B=8, L=128 -> batch_block=4, packed width W=512 lanes, grid of 2 steps
    # (lane-dense stores, double-buffered pipeline, both v7x cores usable).
    B, L = 8, 128

    key = jax.random.PRNGKey(0)
    kx, kq, ko, kb = jax.random.split(key, 4)

    x = jax.random.normal(kx, (B, dim, L), dtype=jnp.float32)
    g = jnp.ones((dim, 1), dtype=jnp.float32)           # LayerNorm.g (1,dim,1) squeezed
    b = jnp.zeros((dim, 1), dtype=jnp.float32)          # LayerNorm.b
    wqkv = 0.05 * jax.random.normal(kq, (3 * hidden, dim), dtype=jnp.float32)  # to_qkv.weight[...,0]
    wout = 0.05 * jax.random.normal(ko, (dim, hidden), dtype=jnp.float32)      # to_out.weight[...,0]
    bout = 0.01 * jax.random.normal(kb, (dim, 1), dtype=jnp.float32)           # to_out.bias

    y_ref = linear_attention_ref(x, g, b, wqkv, wout, bout,
                                 heads=heads, dim_head=dim_head)

    # Default fast path: bf16 MXU operands (all generations), f32 elementwise/accum.
    y_bf16 = jax.block_until_ready(
        linear_attention(x, g, b, wqkv, wout, bout, heads=heads, dim_head=dim_head))
    np.testing.assert_allclose(np.asarray(y_bf16), np.asarray(y_ref),
                               rtol=5e-2, atol=5e-2)

    # Exactness check: f32 MXU operands + exact reciprocal.
    y_f32 = jax.block_until_ready(
        linear_attention(x, g, b, wqkv, wout, bout, heads=heads, dim_head=dim_head,
                         mxu_dtype=jnp.float32))
    np.testing.assert_allclose(np.asarray(y_f32), np.asarray(y_ref),
                               rtol=1e-4, atol=1e-4)

    print("KERNEL_OK")
</pallas_src>

<mosaic_0001>
module attributes {stable_mosaic.version = 11 : i64} {
  func.func @_linear_attention_kernel(%arg0: i32, %arg1: memref<4x32x128xf32, #tpu.memory_space<vmem>>, %arg2: memref<32x1xf32, #tpu.memory_space<vmem>>, %arg3: memref<32x1xf32, #tpu.memory_space<vmem>>, %arg4: memref<384x32xbf16, #tpu.memory_space<vmem>>, %arg5: memref<32x128xbf16, #tpu.memory_space<vmem>>, %arg6: memref<32x1xf32, #tpu.memory_space<vmem>>, %arg7: memref<128x128xf32, #tpu.memory_space<vmem>>, %arg8: memref<512x4xbf16, #tpu.memory_space<vmem>>, %arg9: memref<4x512xbf16, #tpu.memory_space<vmem>>, %arg10: memref<4x32x128xf32, #tpu.memory_space<vmem>>, %arg11: memref<32x512xf32, #tpu.memory_space<vmem>>, %arg12: memref<128x512xf32, #tpu.memory_space<vmem>>) attributes {dimension_semantics = [#tpu.dimension_semantics<parallel>], iteration_bounds = array<i64: 2>, scalar_prefetch = 0 : i64, scratch_operands = 2 : i64, tpu.core_type = #tpu.core_type<tc>, window_params = [{transform_indices = @transform_0, window_bounds = array<i64: 4, 32, 128>}, {pipeline_mode = #tpu.pipeline_mode<synchronous>, transform_indices = @transform_1, window_bounds = array<i64: 32, 1>}, {pipeline_mode = #tpu.pipeline_mode<synchronous>, transform_indices = @transform_2, window_bounds = array<i64: 32, 1>}, {pipeline_mode = #tpu.pipeline_mode<synchronous>, transform_indices = @transform_3, window_bounds = array<i64: 384, 32>}, {pipeline_mode = #tpu.pipeline_mode<synchronous>, transform_indices = @transform_4, window_bounds = array<i64: 32, 128>}, {pipeline_mode = #tpu.pipeline_mode<synchronous>, transform_indices = @transform_5, window_bounds = array<i64: 32, 1>}, {pipeline_mode = #tpu.pipeline_mode<synchronous>, transform_indices = @transform_6, window_bounds = array<i64: 128, 128>}, {pipeline_mode = #tpu.pipeline_mode<synchronous>, transform_indices = @transform_7, window_bounds = array<i64: 512, 4>}, {pipeline_mode = #tpu.pipeline_mode<synchronous>, transform_indices = @transform_8, window_bounds = array<i64: 4, 512>}, {transform_indices = @transform_9, window_bounds = array<i64: 4, 32, 128>}]} {
    %c0 = arith.constant 0 : index
    %c0_0 = arith.constant 0 : index
    %0 = vector.load %arg2[%c0, %c0_0] : memref<32x1xf32, #tpu.memory_space<vmem>>, vector<32x1xf32>
    %c0_1 = arith.constant 0 : index
    %c0_2 = arith.constant 0 : index
    %1 = vector.load %arg3[%c0_1, %c0_2] : memref<32x1xf32, #tpu.memory_space<vmem>>, vector<32x1xf32>
    %c0_3 = arith.constant 0 : index
    %c0_4 = arith.constant 0 : index
    %c0_5 = arith.constant 0 : index
    %2 = vector.load %arg1[%c0_3, %c0_4, %c0_5] : memref<4x32x128xf32, #tpu.memory_space<vmem>>, vector<1x32x128xf32>
    %3 = vector.shape_cast %2 : vector<1x32x128xf32> to vector<32x128xf32>
    %cst = arith.constant dense<0.000000e+00> : vector<128xf32>
    %4 = vector.multi_reduction <add>, %3, %cst [0] : vector<32x128xf32> to vector<128xf32>
    %5 = vector.shape_cast %4 : vector<128xf32> to vector<1x128xf32>
    %cst_6 = arith.constant 3.125000e-02 : f32
    %6 = vector.broadcast %cst_6 : f32 to vector<1x128xf32>
    %7 = arith.mulf %5, %6 : vector<1x128xf32>
    %8 = arith.mulf %3, %3 : vector<32x128xf32>
    %cst_7 = arith.constant dense<0.000000e+00> : vector<128xf32>
    %9 = vector.multi_reduction <add>, %8, %cst_7 [0] : vector<32x128xf32> to vector<128xf32>
    %10 = vector.shape_cast %9 : vector<128xf32> to vector<1x128xf32>
    %cst_8 = arith.constant 3.125000e-02 : f32
    %11 = vector.broadcast %cst_8 : f32 to vector<1x128xf32>
    %12 = arith.mulf %10, %11 : vector<1x128xf32>
    %13 = arith.mulf %7, %7 : vector<1x128xf32>
    %14 = arith.subf %12, %13 : vector<1x128xf32>
    %15 = vector.broadcast %7 : vector<1x128xf32> to vector<32x128xf32>
    %16 = arith.subf %3, %15 : vector<32x128xf32>
    %cst_9 = arith.constant 9.99999974E-6 : f32
    %17 = vector.broadcast %cst_9 : f32 to vector<1x128xf32>
    %18 = arith.addf %14, %17 : vector<1x128xf32>
    %19 = math.rsqrt %18 : vector<1x128xf32>
    %20 = vector.broadcast %19 : vector<1x128xf32> to vector<32x128xf32>
    %21 = arith.mulf %16, %20 : vector<32x128xf32>
    %22 = vector.broadcast %0 : vector<32x1xf32> to vector<32x128xf32>
    %23 = arith.mulf %21, %22 : vector<32x128xf32>
    %24 = vector.broadcast %1 : vector<32x1xf32> to vector<32x128xf32>
    %25 = arith.addf %23, %24 : vector<32x128xf32>
    %c0_10 = arith.constant 0 : index
    %c0_11 = arith.constant 0 : index
    %26 = vector.load %arg11[%c0_10, %c0_11] : memref<32x512xf32, #tpu.memory_space<vmem>>, vector<32x128xf32>
    tpu.vector_store %arg11[%c0_10, %c0_11], %25 {strides = array<i32>} : memref<32x512xf32, #tpu.memory_space<vmem>>, vector<32x128xf32>,
    %c1 = arith.constant 1 : index
    %c0_12 = arith.constant 0 : index
    %c0_13 = arith.constant 0 : index
    %27 = vector.load %arg1[%c1, %c0_12, %c0_13] : memref<4x32x128xf32, #tpu.memory_space<vmem>>, vector<1x32x128xf32>
    %28 = vector.shape_cast %27 : vector<1x32x128xf32> to vector<32x128xf32>
    %cst_14 = arith.constant dense<0.000000e+00> : vector<128xf32>
    %29 = vector.multi_reduction <add>, %28, %cst_14 [0] : vector<32x128xf32> to vector<128xf32>
    %30 = vector.shape_cast %29 : vector<128xf32> to vector<1x128xf32>
    %cst_15 = arith.constant 3.125000e-02 : f32
    %31 = vector.broadcast %cst_15 : f32 to vector<1x128xf32>
    %32 = arith.mulf %30, %31 : vector<1x128xf32>
    %33 = arith.mulf %28, %28 : vector<32x128xf32>
    %cst_16 = arith.constant dense<0.000000e+00> : vector<128xf32>
    %34 = vector.multi_reduction <add>, %33, %cst_16 [0] : vector<32x128xf32> to vector<128xf32>
    %35 = vector.shape_cast %34 : vector<128xf32> to vector<1x128xf32>
    %cst_17 = arith.constant 3.125000e-02 : f32
    %36 = vector.broadcast %cst_17 : f32 to vector<1x128xf32>
    %37 = arith.mulf %35, %36 : vector<1x128xf32>
    %38 = arith.mulf %32, %32 : vector<1x128xf32>
    %39 = arith.subf %37, %38 : vector<1x128xf32>
    %40 = vector.broadcast %32 : vector<1x128xf32> to vector<32x128xf32>
    %41 = arith.subf %28, %40 : vector<32x128xf32>
    %cst_18 = arith.constant 9.99999974E-6 : f32
    %42 = vector.broadcast %cst_18 : f32 to vector<1x128xf32>
    %43 = arith.addf %39, %42 : vector<1x128xf32>
    %44 = math.rsqrt %43 : vector<1x128xf32>
    %45 = vector.broadcast %44 : vector<1x128xf32> to vector<32x128xf32>
    %46 = arith.mulf %41, %45 : vector<32x128xf32>
    %47 = vector.broadcast %0 : vector<32x1xf32> to vector<32x128xf32>
    %48 = arith.mulf %46, %47 : vector<32x128xf32>
    %49 = vector.broadcast %1 : vector<32x1xf32> to vector<32x128xf32>
    %50 = arith.addf %48, %49 : vector<32x128xf32>
    %c0_19 = arith.constant 0 : index
    %c128 = arith.constant 128 : index
    %51 = vector.load %arg11[%c0_19, %c128] : memref<32x512xf32, #tpu.memory_space<vmem>>, vector<32x128xf32>
    tpu.vector_store %arg11[%c0_19, %c128], %50 {strides = array<i32>} : memref<32x512xf32, #tpu.memory_space<vmem>>, vector<32x128xf32>,
    %c2 = arith.constant 2 : index
    %c0_20 = arith.constant 0 : index
    %c0_21 = arith.constant 0 : index
    %52 = vector.load %arg1[%c2, %c0_20, %c0_21] : memref<4x32x128xf32, #tpu.memory_space<vmem>>, vector<1x32x128xf32>
    %53 = vector.shape_cast %52 : vector<1x32x128xf32> to vector<32x128xf32>
    %cst_22 = arith.constant dense<0.000000e+00> : vector<128xf32>
    %54 = vector.multi_reduction <add>, %53, %cst_22 [0] : vector<32x128xf32> to vector<128xf32>
    %55 = vector.shape_cast %54 : vector<128xf32> to vector<1x128xf32>
    %cst_23 = arith.constant 3.125000e-02 : f32
    %56 = vector.broadcast %cst_23 : f32 to vector<1x128xf32>
    %57 = arith.mulf %55, %56 : vector<1x128xf32>
    %58 = arith.mulf %53, %53 : vector<32x128xf32>
    %cst_24 = arith.constant dense<0.000000e+00> : vector<128xf32>
    %59 = vector.multi_reduction <add>, %58, %cst_24 [0] : vector<32x128xf32> to vector<128xf32>
    %60 = vector.shape_cast %59 : vector<128xf32> to vector<1x128xf32>
    %cst_25 = arith.constant 3.125000e-02 : f32
    %61 = vector.broadcast %cst_25 : f32 to vector<1x128xf32>
    %62 = arith.mulf %60, %61 : vector<1x128xf32>
    %63 = arith.mulf %57, %57 : vector<1x128xf32>
    %64 = arith.subf %62, %63 : vector<1x128xf32>
    %65 = vector.broadcast %57 : vector<1x128xf32> to vector<32x128xf32>
    %66 = arith.subf %53, %65 : vector<32x128xf32>
    %cst_26 = arith.constant 9.99999974E-6 : f32
    %67 = vector.broadcast %cst_26 : f32 to vector<1x128xf32>
    %68 = arith.addf %64, %67 : vector<1x128xf32>
    %69 = math.rsqrt %68 : vector<1x128xf32>
    %70 = vector.broadcast %69 : vector<1x128xf32> to vector<32x128xf32>
    %71 = arith.mulf %66, %70 : vector<32x128xf32>
    %72 = vector.broadcast %0 : vector<32x1xf32> to vector<32x128xf32>
    %73 = arith.mulf %71, %72 : vector<32x128xf32>
    %74 = vector.broadcast %1 : vector<32x1xf32> to vector<32x128xf32>
    %75 = arith.addf %73, %74 : vector<32x128xf32>
    %c0_27 = arith.constant 0 : index
    %c256 = arith.constant 256 : index
    %76 = vector.load %arg11[%c0_27, %c256] : memref<32x512xf32, #tpu.memory_space<vmem>>, vector<32x128xf32>
    tpu.vector_store %arg11[%c0_27, %c256], %75 {strides = array<i32>} : memref<32x512xf32, #tpu.memory_space<vmem>>, vector<32x128xf32>,
    %c3 = arith.constant 3 : index
    %c0_28 = arith.constant 0 : index
    %c0_29 = arith.constant 0 : index
    %77 = vector.load %arg1[%c3, %c0_28, %c0_29] : memref<4x32x128xf32, #tpu.memory_space<vmem>>, vector<1x32x128xf32>
    %78 = vector.shape_cast %77 : vector<1x32x128xf32> to vector<32x128xf32>
    %cst_30 = arith.constant dense<0.000000e+00> : vector<128xf32>
    %79 = vector.multi_reduction <add>, %78, %cst_30 [0] : vector<32x128xf32> to vector<128xf32>
    %80 = vector.shape_cast %79 : vector<128xf32> to vector<1x128xf32>
    %cst_31 = arith.constant 3.125000e-02 : f32
    %81 = vector.broadcast %cst_31 : f32 to vector<1x128xf32>
    %82 = arith.mulf %80, %81 : vector<1x128xf32>
    %83 = arith.mulf %78, %78 : vector<32x128xf32>
    %cst_32 = arith.constant dense<0.000000e+00> : vector<128xf32>
    %84 = vector.multi_reduction <add>, %83, %cst_32 [0] : vector<32x128xf32> to vector<128xf32>
    %85 = vector.shape_cast %84 : vector<128xf32> to vector<1x128xf32>
    %cst_33 = arith.constant 3.125000e-02 : f32
    %86 = vector.broadcast %cst_33 : f32 to vector<1x128xf32>
    %87 = arith.mulf %85, %86 : vector<1x128xf32>
    %88 = arith.mulf %82, %82 : vector<1x128xf32>
    %89 = arith.subf %87, %88 : vector<1x128xf32>
    %90 = vector.broadcast %82 : vector<1x128xf32> to vector<32x128xf32>
    %91 = arith.subf %78, %90 : vector<32x128xf32>
    %cst_34 = arith.constant 9.99999974E-6 : f32
    %92 = vector.broadcast %cst_34 : f32 to vector<1x128xf32>
    %93 = arith.addf %89, %92 : vector<1x128xf32>
    %94 = math.rsqrt %93 : vector<1x128xf32>
    %95 = vector.broadcast %94 : vector<1x128xf32> to vector<32x128xf32>
    %96 = arith.mulf %91, %95 : vector<32x128xf32>
    %97 = vector.broadcast %0 : vector<32x1xf32> to vector<32x128xf32>
    %98 = arith.mulf %96, %97 : vector<32x128xf32>
    %99 = vector.broadcast %1 : vector<32x1xf32> to vector<32x128xf32>
    %100 = arith.addf %98, %99 : vector<32x128xf32>
    %c0_35 = arith.constant 0 : index
    %c384 = arith.constant 384 : index
    %101 = vector.load %arg11[%c0_35, %c384] : memref<32x512xf32, #tpu.memory_space<vmem>>, vector<32x128xf32>
    tpu.vector_store %arg11[%c0_35, %c384], %100 {strides = array<i32>} : memref<32x512xf32, #tpu.memory_space<vmem>>, vector<32x128xf32>,
    %c0_36 = arith.constant 0 : index
    %c0_37 = arith.constant 0 : index
    %102 = vector.load %arg11[%c0_36, %c0_37] : memref<32x512xf32, #tpu.memory_space<vmem>>, vector<32x512xf32>
    %103 = arith.truncf %102 : vector<32x512xf32> to vector<32x512xbf16>
    %c0_38 = arith.constant 0 : index
    %c0_39 = arith.constant 0 : index
    %104 = vector.load %arg4[%c0_38, %c0_39] : memref<384x32xbf16, #tpu.memory_space<vmem>>, vector<384x32xbf16>
    %cst_40 = arith.constant dense<0.000000e+00> : vector<384x512xf32>
    %105 = tpu.matmul %104, %103, %cst_40 {dimension_numbers = #tpu.dot_dimension_numbers<[1], [0], [0], [1], [0, 0, 1, 1], [], []>} : vector<384x32xbf16>, vector<32x512xbf16>, vector<384x512xf32> -> vector<384x512xf32>
    %106 = vector.extract_strided_slice %105 {offsets = [0, 0], sizes = [128, 512], strides = [1, 1]} : vector<384x512xf32> to vector<128x512xf32>
    %107 = vector.extract_strided_slice %105 {offsets = [128, 0], sizes = [128, 512], strides = [1, 1]} : vector<384x512xf32> to vector<128x512xf32>
    %108 = vector.extract_strided_slice %105 {offsets = [256, 0], sizes = [128, 512], strides = [1, 1]} : vector<384x512xf32> to vector<128x512xf32>
    %cst_41 = arith.constant dense<0xFF800000> : vector<128xf32>
    %109 = vector.multi_reduction <maximumf>, %107, %cst_41 [1] : vector<128x512xf32> to vector<128xf32>
    %110 = vector.shape_cast %109 : vector<128xf32> to vector<128x1xf32>
    %111 = vector.broadcast %110 : vector<128x1xf32> to vector<128x512xf32>
    %112 = arith.subf %107, %111 : vector<128x512xf32>
    %113 = math.exp %112 : vector<128x512xf32>
    %114 = arith.truncf %113 : vector<128x512xf32> to vector<128x512xbf16>
    %115 = arith.truncf %108 : vector<128x512xf32> to vector<128x512xbf16>
    %c0_42 = arith.constant 0 : index
    %c0_43 = arith.constant 0 : index
    %116 = vector.load %arg8[%c0_42, %c0_43] : memref<512x4xbf16, #tpu.memory_space<vmem>>, vector<512x4xbf16>
    %cst_44 = arith.constant dense<0.000000e+00> : vector<128x4xf32>
    %117 = tpu.matmul %114, %116, %cst_44 {dimension_numbers = #tpu.dot_dimension_numbers<[1], [0], [0], [1], [0, 0, 1, 1], [], []>} : vector<128x512xbf16>, vector<512x4xbf16>, vector<128x4xf32> -> vector<128x4xf32>
    %118 = tpu.reciprocal %117 {approx = true} : vector<128x4xf32> -> vector<128x4xf32>
    %119 = arith.truncf %118 : vector<128x4xf32> to vector<128x4xbf16>
    %c0_45 = arith.constant 0 : index
    %c0_46 = arith.constant 0 : index
    %120 = vector.load %arg9[%c0_45, %c0_46] : memref<4x512xbf16, #tpu.memory_space<vmem>>, vector<4x512xbf16>
    %cst_47 = arith.constant dense<0.000000e+00> : vector<128x512xf32>
    %121 = tpu.matmul %119, %120, %cst_47 {dimension_numbers = #tpu.dot_dimension_numbers<[1], [0], [0], [1], [0, 0, 1, 1], [], []>} : vector<128x4xbf16>, vector<4x512xbf16>, vector<128x512xf32> -> vector<128x512xf32>
    %122 = arith.mulf %106, %121 : vector<128x512xf32>
    %123 = arith.truncf %122 : vector<128x512xf32> to vector<128x512xbf16>
    %c0_48 = arith.constant 0 : index
    %c0_49 = arith.constant 0 : index
    %124 = vector.load %arg7[%c0_48, %c0_49] : memref<128x128xf32, #tpu.memory_space<vmem>>, vector<128x128xf32>
    %125 = vector.extract_strided_slice %114 {offsets = [0, 0], sizes = [128, 128], strides = [1, 1]} : vector<128x512xbf16> to vector<128x128xbf16>
    %126 = vector.extract_strided_slice %115 {offsets = [0, 0], sizes = [128, 128], strides = [1, 1]} : vector<128x512xbf16> to vector<128x128xbf16>
    %127 = vector.extract_strided_slice %123 {offsets = [0, 0], sizes = [128, 128], strides = [1, 1]} : vector<128x512xbf16> to vector<128x128xbf16>
    %cst_50 = arith.constant dense<0.000000e+00> : vector<128x128xf32>
    %128 = tpu.matmul %126, %125, %cst_50 {dimension_numbers = #tpu.dot_dimension_numbers<[1], [1], [0], [0], [0, 0, 1, 0], [], []>} : vector<128x128xbf16>, vector<128x128xbf16>, vector<128x128xf32> -> vector<128x128xf32>
    %129 = arith.mulf %128, %124 : vector<128x128xf32>
    %130 = arith.truncf %129 : vector<128x128xf32> to vector<128x128xbf16>
    %cst_51 = arith.constant dense<0.000000e+00> : vector<128x128xf32>
    %131 = tpu.matmul %130, %127, %cst_51 {dimension_numbers = #tpu.dot_dimension_numbers<[1], [0], [0], [1], [0, 0, 1, 1], [], []>} : vector<128x128xbf16>, vector<128x128xbf16>, vector<128x128xf32> -> vector<128x128xf32>
    %c0_52 = arith.constant 0 : index
    %c0_53 = arith.constant 0 : index
    %132 = vector.load %arg12[%c0_52, %c0_53] : memref<128x512xf32, #tpu.memory_space<vmem>>, vector<128x128xf32>
    tpu.vector_store %arg12[%c0_52, %c0_53], %131 {strides = array<i32>} : memref<128x512xf32, #tpu.memory_space<vmem>>, vector<128x128xf32>,
    %133 = vector.extract_strided_slice %114 {offsets = [0, 128], sizes = [128, 128], strides = [1, 1]} : vector<128x512xbf16> to vector<128x128xbf16>
    %134 = vector.extract_strided_slice %115 {offsets = [0, 128], sizes = [128, 128], strides = [1, 1]} : vector<128x512xbf16> to vector<128x128xbf16>
    %135 = vector.extract_strided_slice %123 {offsets = [0, 128], sizes = [128, 128], strides = [1, 1]} : vector<128x512xbf16> to vector<128x128xbf16>
    %cst_54 = arith.constant dense<0.000000e+00> : vector<128x128xf32>
    %136 = tpu.matmul %134, %133, %cst_54 {dimension_numbers = #tpu.dot_dimension_numbers<[1], [1], [0], [0], [0, 0, 1, 0], [], []>} : vector<128x128xbf16>, vector<128x128xbf16>, vector<128x128xf32> -> vector<128x128xf32>
    %137 = arith.mulf %136, %124 : vector<128x128xf32>
    %138 = arith.truncf %137 : vector<128x128xf32> to vector<128x128xbf16>
    %cst_55 = arith.constant dense<0.000000e+00> : vector<128x128xf32>
    %139 = tpu.matmul %138, %135, %cst_55 {dimension_numbers = #tpu.dot_dimension_numbers<[1], [0], [0], [1], [0, 0, 1, 1], [], []>} : vector<128x128xbf16>, vector<128x128xbf16>, vector<128x128xf32> -> vector<128x128xf32>
    %c0_56 = arith.constant 0 : index
    %c128_57 = arith.constant 128 : index
    %140 = vector.load %arg12[%c0_56, %c128_57] : memref<128x512xf32, #tpu.memory_space<vmem>>, vector<128x128xf32>
    tpu.vector_store %arg12[%c0_56, %c128_57], %139 {strides = array<i32>} : memref<128x512xf32, #tpu.memory_space<vmem>>, vector<128x128xf32>,
    %141 = vector.extract_strided_slice %114 {offsets = [0, 256], sizes = [128, 128], strides = [1, 1]} : vector<128x512xbf16> to vector<128x128xbf16>
    %142 = vector.extract_strided_slice %115 {offsets = [0, 256], sizes = [128, 128], strides = [1, 1]} : vector<128x512xbf16> to vector<128x128xbf16>
    %143 = vector.extract_strided_slice %123 {offsets = [0, 256], sizes = [128, 128], strides = [1, 1]} : vector<128x512xbf16> to vector<128x128xbf16>
    %cst_58 = arith.constant dense<0.000000e+00> : vector<128x128xf32>
    %144 = tpu.matmul %142, %141, %cst_58 {dimension_numbers = #tpu.dot_dimension_numbers<[1], [1], [0], [0], [0, 0, 1, 0], [], []>} : vector<128x128xbf16>, vector<128x128xbf16>, vector<128x128xf32> -> vector<128x128xf32>
    %145 = arith.mulf %144, %124 : vector<128x128xf32>
    %146 = arith.truncf %145 : vector<128x128xf32> to vector<128x128xbf16>
    %cst_59 = arith.constant dense<0.000000e+00> : vector<128x128xf32>
    %147 = tpu.matmul %146, %143, %cst_59 {dimension_numbers = #tpu.dot_dimension_numbers<[1], [0], [0], [1], [0, 0, 1, 1], [], []>} : vector<128x128xbf16>, vector<128x128xbf16>, vector<128x128xf32> -> vector<128x128xf32>
    %c0_60 = arith.constant 0 : index
    %c256_61 = arith.constant 256 : index
    %148 = vector.load %arg12[%c0_60, %c256_61] : memref<128x512xf32, #tpu.memory_space<vmem>>, vector<128x128xf32>
    tpu.vector_store %arg12[%c0_60, %c256_61], %147 {strides = array<i32>} : memref<128x512xf32, #tpu.memory_space<vmem>>, vector<128x128xf32>,
    %149 = vector.extract_strided_slice %114 {offsets = [0, 384], sizes = [128, 128], strides = [1, 1]} : vector<128x512xbf16> to vector<128x128xbf16>
    %150 = vector.extract_strided_slice %115 {offsets = [0, 384], sizes = [128, 128], strides = [1, 1]} : vector<128x512xbf16> to vector<128x128xbf16>
    %151 = vector.extract_strided_slice %123 {offsets = [0, 384], sizes = [128, 128], strides = [1, 1]} : vector<128x512xbf16> to vector<128x128xbf16>
    %cst_62 = arith.constant dense<0.000000e+00> : vector<128x128xf32>
    %152 = tpu.matmul %150, %149, %cst_62 {dimension_numbers = #tpu.dot_dimension_numbers<[1], [1], [0], [0], [0, 0, 1, 0], [], []>} : vector<128x128xbf16>, vector<128x128xbf16>, vector<128x128xf32> -> vector<128x128xf32>
    %153 = arith.mulf %152, %124 : vector<128x128xf32>
    %154 = arith.truncf %153 : vector<128x128xf32> to vector<128x128xbf16>
    %cst_63 = arith.constant dense<0.000000e+00> : vector<128x128xf32>
    %155 = tpu.matmul %154, %151, %cst_63 {dimension_numbers = #tpu.dot_dimension_numbers<[1], [0], [0], [1], [0, 0, 1, 1], [], []>} : vector<128x128xbf16>, vector<128x128xbf16>, vector<128x128xf32> -> vector<128x128xf32>
    %c0_64 = arith.constant 0 : index
    %c384_65 = arith.constant 384 : index
    %156 = vector.load %arg12[%c0_64, %c384_65] : memref<128x512xf32, #tpu.memory_space<vmem>>, vector<128x128xf32>
    tpu.vector_store %arg12[%c0_64, %c384_65], %155 {strides = array<i32>} : memref<128x512xf32, #tpu.memory_space<vmem>>, vector<128x128xf32>,
    %c0_66 = arith.constant 0 : index
    %c0_67 = arith.constant 0 : index
    %157 = vector.load %arg5[%c0_66, %c0_67] : memref<32x128xbf16, #tpu.memory_space<vmem>>, vector<32x128xbf16>
    %c0_68 = arith.constant 0 : index
    %c0_69 = arith.constant 0 : index
    %158 = vector.load %arg12[%c0_68, %c0_69] : memref<128x512xf32, #tpu.memory_space<vmem>>, vector<128x512xf32>
    %159 = arith.truncf %158 : vector<128x512xf32> to vector<128x512xbf16>
    %cst_70 = arith.constant dense<0.000000e+00> : vector<32x512xf32>
    %160 = tpu.matmul %157, %159, %cst_70 {dimension_numbers = #tpu.dot_dimension_numbers<[1], [0], [0], [1], [0, 0, 1, 1], [], []>} : vector<32x128xbf16>, vector<128x512xbf16>, vector<32x512xf32> -> vector<32x512xf32>
    %c0_71 = arith.constant 0 : index
    %c0_72 = arith.constant 0 : index
    %161 = vector.load %arg6[%c0_71, %c0_72] : memref<32x1xf32, #tpu.memory_space<vmem>>, vector<32x1xf32>
    %162 = vector.broadcast %161 : vector<32x1xf32> to vector<32x512xf32>
    %163 = arith.addf %160, %162 : vector<32x512xf32>
    %164 = arith.addf %163, %102 : vector<32x512xf32>
    %165 = vector.extract_strided_slice %164 {offsets = [0, 0], sizes = [32, 128], strides = [1, 1]} : vector<32x512xf32> to vector<32x128xf32>
    %c0_73 = arith.constant 0 : index
    %c0_74 = arith.constant 0 : index
    %c0_75 = arith.constant 0 : index
    %166 = vector.load %arg10[%c0_73, %c0_74, %c0_75] : memref<4x32x128xf32, #tpu.memory_space<vmem>>, vector<1x32x128xf32>
    %167 = vector.shape_cast %166 : vector<1x32x128xf32> to vector<32x128xf32>
    %168 = vector.shape_cast %165 : vector<32x128xf32> to vector<1x32x128xf32>
    tpu.vector_store %arg10[%c0_73, %c0_74, %c0_75], %168 {strides = array<i32>} : memref<4x32x128xf32, #tpu.memory_space<vmem>>, vector<1x32x128xf32>,
    %169 = vector.extract_strided_slice %164 {offsets = [0, 128], sizes = [32, 128], strides = [1, 1]} : vector<32x512xf32> to vector<32x128xf32>
    %c1_76 = arith.constant 1 : index
    %c0_77 = arith.constant 0 : index
    %c0_78 = arith.constant 0 : index
    %170 = vector.load %arg10[%c1_76, %c0_77, %c0_78] : memref<4x32x128xf32, #tpu.memory_space<vmem>>, vector<1x32x128xf32>
    %171 = vector.shape_cast %170 : vector<1x32x128xf32> to vector<32x128xf32>
    %172 = vector.shape_cast %169 : vector<32x128xf32> to vector<1x32x128xf32>
    tpu.vector_store %arg10[%c1_76, %c0_77, %c0_78], %172 {strides = array<i32>} : memref<4x32x128xf32, #tpu.memory_space<vmem>>, vector<1x32x128xf32>,
    %173 = vector.extract_strided_slice %164 {offsets = [0, 256], sizes = [32, 128], strides = [1, 1]} : vector<32x512xf32> to vector<32x128xf32>
    %c2_79 = arith.constant 2 : index
    %c0_80 = arith.constant 0 : index
    %c0_81 = arith.constant 0 : index
    %174 = vector.load %arg10[%c2_79, %c0_80, %c0_81] : memref<4x32x128xf32, #tpu.memory_space<vmem>>, vector<1x32x128xf32>
    %175 = vector.shape_cast %174 : vector<1x32x128xf32> to vector<32x128xf32>
    %176 = vector.shape_cast %173 : vector<32x128xf32> to vector<1x32x128xf32>
    tpu.vector_store %arg10[%c2_79, %c0_80, %c0_81], %176 {strides = array<i32>} : memref<4x32x128xf32, #tpu.memory_space<vmem>>, vector<1x32x128xf32>,
    %177 = vector.extract_strided_slice %164 {offsets = [0, 384], sizes = [32, 128], strides = [1, 1]} : vector<32x512xf32> to vector<32x128xf32>
    %c3_82 = arith.constant 3 : index
    %c0_83 = arith.constant 0 : index
    %c0_84 = arith.constant 0 : index
    %178 = vector.load %arg10[%c3_82, %c0_83, %c0_84] : memref<4x32x128xf32, #tpu.memory_space<vmem>>, vector<1x32x128xf32>
    %179 = vector.shape_cast %178 : vector<1x32x128xf32> to vector<32x128xf32>
    %180 = vector.shape_cast %177 : vector<32x128xf32> to vector<1x32x128xf32>
    tpu.vector_store %arg10[%c3_82, %c0_83, %c0_84], %180 {strides = array<i32>} : memref<4x32x128xf32, #tpu.memory_space<vmem>>, vector<1x32x128xf32>,
    return
  }
  func.func @transform_0(%arg0: i32) -> (i32, i32, i32) {
    %c0_i32 = arith.constant 0 : i32
    %c0_i32_0 = arith.constant 0 : i32
    %c0_i32_1 = arith.constant 0 : i32
    return %arg0, %c0_i32, %c0_i32_0 : i32, i32, i32
  }
  func.func @transform_1(%arg0: i32) -> (i32, i32) {
    %c0_i32 = arith.constant 0 : i32
    %c0_i32_0 = arith.constant 0 : i32
    %c0_i32_1 = arith.constant 0 : i32
    return %c0_i32, %c0_i32_0 : i32, i32
  }
  func.func @transform_2(%arg0: i32) -> (i32, i32) {
    %c0_i32 = arith.constant 0 : i32
    %c0_i32_0 = arith.constant 0 : i32
    %c0_i32_1 = arith.constant 0 : i32
    return %c0_i32, %c0_i32_0 : i32, i32
  }
  func.func @transform_3(%arg0: i32) -> (i32, i32) {
    %c0_i32 = arith.constant 0 : i32
    %c0_i32_0 = arith.constant 0 : i32
    %c0_i32_1 = arith.constant 0 : i32
    return %c0_i32, %c0_i32_0 : i32, i32
  }
  func.func @transform_4(%arg0: i32) -> (i32, i32) {
    %c0_i32 = arith.constant 0 : i32
    %c0_i32_0 = arith.constant 0 : i32
    %c0_i32_1 = arith.constant 0 : i32
    return %c0_i32, %c0_i32_0 : i32, i32
  }
  func.func @transform_5(%arg0: i32) -> (i32, i32) {
    %c0_i32 = arith.constant 0 : i32
    %c0_i32_0 = arith.constant 0 : i32
    %c0_i32_1 = arith.constant 0 : i32
    return %c0_i32, %c0_i32_0 : i32, i32
  }
  func.func @transform_6(%arg0: i32) -> (i32, i32) {
    %c0_i32 = arith.constant 0 : i32
    %c0_i32_0 = arith.constant 0 : i32
    %c0_i32_1 = arith.constant 0 : i32
    return %c0_i32, %c0_i32_0 : i32, i32
  }
  func.func @transform_7(%arg0: i32) -> (i32, i32) {
    %c0_i32 = arith.constant 0 : i32
    %c0_i32_0 = arith.constant 0 : i32
    %c0_i32_1 = arith.constant 0 : i32
    return %c0_i32, %c0_i32_0 : i32, i32
  }
  func.func @transform_8(%arg0: i32) -> (i32, i32) {
    %c0_i32 = arith.constant 0 : i32
    %c0_i32_0 = arith.constant 0 : i32
    %c0_i32_1 = arith.constant 0 : i32
    return %c0_i32, %c0_i32_0 : i32, i32
  }
  func.func @transform_9(%arg0: i32) -> (i32, i32, i32) {
    %c0_i32 = arith.constant 0 : i32
    %c0_i32_0 = arith.constant 0 : i32
    %c0_i32_1 = arith.constant 0 : i32
    return %arg0, %c0_i32, %c0_i32_0 : i32, i32, i32
  }
}

</mosaic_0001>

<bundles_post_ra>
// kernel: tpu_custom_call.1
= control target key start
LH: loop header
LB: loop body
LE: loop exit
PB: predicated region body
PF: predicated region fallthrough
CT: control target
= control target key end

     0   :  { %14 = vsyncpa [#allocation5], 0  ;;  %s7059_s0 = inlined_call_operand.vmem [shape: f32[8,32,128], index: 0, kind: input, shape index: {}]   ;;  %s7060_s1 = inlined_call_operand.vmem [shape: f32[32,1], index: 1, kind: input, shape index: {}]   ;;  %s7061_s2 = inlined_call_operand.vmem [shape: f32[32,1], index: 2, kind: input, shape index: {}]   ;;  %s7062_s3 = inlined_call_operand.vmem [shape: bf16[384,32], index: 3, kind: input, shape index: {}]   ;;  %s7063_s4 = inlined_call_operand.vmem [shape: bf16[32,128], index: 4, kind: input, shape index: {}]   ;;  %s7064_s5 = inlined_call_operand.vmem [shape: f32[32,1], index: 5, kind: input, shape index: {}]   ;;  %s7065_s6 = inlined_call_operand.vmem [shape: f32[128,128], index: 6, kind: input, shape index: {}]   ;;  %s7066_s7 = inlined_call_operand.vmem [shape: bf16[512,4], index: 7, kind: input, shape index: {}]   ;;  %s7067_s8 = inlined_call_operand.vmem [shape: bf16[4,512], index: 8, kind: input, shape index: {}]   ;;  %s7068_s9 = inlined_call_operand.hbm [shape: f32[8,32,128], index: 9, kind: output, shape index: {}]  }
   0x1   :  { %16 = vsyncpa [#allocation5 + $0x1], 0  ;;  %s4973_s30 = smov 0   ;;  %s4975_s10 = smov 0  }
   0x2   :  { %s4977_s11 = smov 0   ;;  %s4979_s12 = smov 0  }
   0x3 LB: > { %s4994_s13 = sadd.s32 4294967295, %s4916_s12   ;;  %s3903_s14 = sadd.s32 4294967294, %s4916_s12   ;;  %s4916_s12 = sphi %s4979_s12, %s7553_s12   ;;  %s4912_s11 = sphi %s4977_s11, %s7552_s11   ;;  %s4908_s10 = sphi %s4975_s10, %s7551_s10   ;;  %s4904_s30 = sphi %s4973_s30, %s7550_s30  }
   0x4   : > { %s4998_s15 = sadd.s32 1, %s4916_s12   ;;  %s223_s16 = sadd.s32 1, %s4912_s11 }
   0x5   : > { %s220_s17 = ssub.s32 %s4916_s12, %s4998_s15  ;;  %p233_p0 = scmp.ne.s32.totalorder %s4912_s11, %s4908_s10 }
   0x6   : > { %p221_p1 = scmp.eq.s32.totalorder %s220_s17, 0  ;;  %p234_p2 = scmp.eq.s32.totalorder %s4994_s13, 1 }
   0x7   : > { %p239_p3 = scmp.ne.s32.totalorder %s4908_s10, %s4904_s30  ;;  %p240_p4 = scmp.eq.s32.totalorder %s3903_s14, 1 }
   0x8   : > { %s5009_s18 = scalar_select %p221_p1, %s4912_s11, %s223_s16  }
   0x9   : > { %p5011_p5 = por %p234_p2, %p233_p0  ;;  %p5015_p6 = por %p240_p4, %p239_p3 }
   0xa   : > { %p3906_p7 = scmp.ge.s32.totalorder %s4916_s12, 1  ;;  %p292_p8 = scmp.lt.s32.totalorder %s4916_s12, 3 }
   0xc   : > { %p293_p9 = pnand %p3906_p7, %p292_p8 }
   0xe   : > { %296 = sbr.rel (%p293_p9) target bundleno = 2178 (0x882), region = 56 }
  0x13   : > { %v344_v0 = vld [vmem:[%s7061_s2 + $0x10] sm:$0xff]  ;;  %v7069_v2 = vmov 0   ;;  %v345_v3 = vld [vmem:[%s7061_s2 + $0x18] sm:$0xff]  ;;  %v339_v5 = vld [vmem:[%s7060_s1 + $0x8] sm:$0xff]  ;;  %s3908_s25 = sshll.u32 %s4994_s13, 2  ;;  %vm789_vm0 = vcmask 261120  }
  0x14   : > { %v340_v1 = vld [vmem:[%s7060_s1 + $0x10] sm:$0xff]  ;;  %4628 = vset.pattern.permute.xlu1 %v7069_v2  ;;  %4627 = vset.pattern.permute.xlu0 %v7069_v2  ;;  %v341_v4 = vld [vmem:[%s7060_s1 + $0x18] sm:$0xff]  ;;  %v338_v6 = vld [vmem:[%s7060_s1] sm:$0xff]  ;;  %p330_p10 = scmp.lt.s32.totalorder %s3908_s25, 7  ;;  %vm2262_vm1 = vcmask 1041408   ;;  %vm2237_vm2 = vcmask 31744  }
  0x15   : > { %422 = vperm.xlu1 %4628, %v344_v0   ;;  %398 = vperm.xlu0 %4627, %v340_v1   ;;  %v343_v7 = vld [vmem:[%s7061_s2 + $0x8] sm:$0xff]  ;;  %v342_v8 = vld [vmem:[%s7061_s2] sm:$0xff]  ;;  %s326_s17 = sand.u32 1, %s4908_s10   ;;  %s4067_s23 = sshll.u32 %s4994_s13, 11 }
  0x16   : > { %1114 = vmatprep.mubr.bf16.mxu1 %v7069_v2  ;;  %894 = vmatprep.mubr.bf16.mxu0 %v7069_v2  ;;  %s7555_s25 = smov (!%p330_p10, %s3908_s25), 7  ;;  %s3907_s21 = sshll.u32 %s326_s17, 7 }
  0x17   : > { %s4065_s26 = sshll.u32 %s7555_s25, 5  ;;  %s6936_s22 = scalar_lea.vmem [#allocation4], %s3907_s21 }
  0x18   : > { %s5053_s29 = scalar_lea.vmem %s7059_s0, %s4065_s26  ;;  %s3841_s24 = sshll.u32 %s6936_s22, 4  ;;  %s7012_s24 = int_to_ptr.vmem [resolvable:$true] %s3841_s24 }
  0x19   : > { %427 = vperm.xlu1 %4628, %v345_v3   ;;  %403 = vperm.xlu0 %4627, %v341_v4   ;;  %v5056_v9 = vld [vmem:[%s5053_s29] sm:$0xff]  ;;  %v5059_v10 = vld [vmem:[%s5053_s29 + $0x8] sm:$0xff]  ;;  %v5068_v13 = vld [vmem:[%s5053_s29 + $0x10] sm:$0xff]  ;;  %s7010_s27 = scalar_lea.hbm %s7068_s9, %s4067_s23  ;;  %s7019_s13 = scalar_lea.sflag [#allocation5], %s326_s17 }
  0x1a   : > { %v5062_v11 = vld [vmem:[%s5053_s29 + $0x20] sm:$0xff]  ;;  %v5065_v12 = vld [vmem:[%s5053_s29 + $0x28] sm:$0xff]  ;;  %v350_v14 = vadd.f32 %v5059_v10, %v5056_v9  ;;  %v360_v15 = vmul.f32 %v5056_v9, %v5056_v9  ;;  %v361_v16 = vmul.f32 %v5059_v10, %v5059_v10  ;;  %v5083_v20 = vld [vmem:[%s5053_s29 + $0x30] sm:$0xff]  ;;  %v362_v24 = vmul.f32 %v5068_v13, %v5068_v13  ;;  %s4856_s28 = scalar_lea.vmem %s7012_s24, 2048 }
  0x1b   : > { %v443_v17 = vadd.f32 %v5065_v12, %v5062_v11  ;;  %v453_v18 = vmul.f32 %v5062_v11, %v5062_v11  ;;  %v454_v19 = vmul.f32 %v5065_v12, %v5065_v12  ;;  %v5086_v21 = vld [vmem:[%s5053_s29 + $0x60] sm:$0xff]  ;;  %v5089_v22 = vld [vmem:[%s5053_s29 + $0x68] sm:$0xff]  ;;  %v5101_v28 = vld [vmem:[%s5053_s29 + $0x18] sm:$0xff]  ;;  %v455_v30 = vmul.f32 %v5083_v20, %v5083_v20  ;;  %p4857_p11 = scmp.ne.s32.totalorder %s7012_s24, %s4856_s28 }
  0x1c   : > { %v351_v23 = vadd.f32 %v350_v14, %v5068_v13  ;;  %v364_v25 = vadd.f32 %v361_v16, %v360_v15  ;;  %v5095_v26 = vld [vmem:[%s5053_s29 + $0x40] sm:$0xff]  ;;  %v5098_v27 = vld [vmem:[%s5053_s29 + $0x48] sm:$0xff]  ;;  %v549_v32 = vadd.f32 %v5089_v22, %v5086_v21  ;;  %v559_v33 = vmul.f32 %v5086_v21, %v5086_v21  ;;  %v5113_v35 = vld [vmem:[%s5053_s29 + $0x38] sm:$0xff] }
  0x1d   : > { %393 = vperm.xlu1 %4628, %v339_v5   ;;  %388 = vperm.xlu0 %4627, %v338_v6   ;;  %v444_v29 = vadd.f32 %v5083_v20, %v443_v17  ;;  %v457_v31 = vadd.f32 %v454_v19, %v453_v18  ;;  %v560_v34 = vmul.f32 %v5089_v22, %v5089_v22  ;;  %v5116_v36 = vld [vmem:[%s5053_s29 + $0x70] sm:$0xff]  ;;  %v5137_v50 = vld [vmem:[%s5053_s29 + $0x78] sm:$0xff]  ;;  %p4858_p12 = pnand %p4857_p11, %p5011_p5 }
  0x1e   : > { %v496_v37 = vadd.f32 %v5098_v27, %v5095_v26  ;;  %v352_v38 = vadd.f32 %v351_v23, %v5101_v28  ;;  %v363_v39 = vmul.f32 %v5101_v28, %v5101_v28  ;;  %v365_v40 = vadd.f32 %v364_v25, %v362_v24  ;;  %v5129_v45 = vld [vmem:[%s5053_s29 + $0x50] sm:$0xff]  ;;  %v5143_v57 = vld [vmem:[%s5053_s29 + $0x58] sm:$0xff]  ;;  %s4920_s29 = smov [#allocation4]  }
  0x1f   : > { %v506_v41 = vmul.f32 %v5095_v26, %v5095_v26  ;;  %v445_v42 = vadd.f32 %v5113_v35, %v444_v29  ;;  %v456_v43 = vmul.f32 %v5113_v35, %v5113_v35  ;;  %v458_v44 = vadd.f32 %v457_v31, %v455_v30  ;;  %p4859_p13 = pneg %p4858_p12  ;;  %s4860_s14 = sshll.u32 %s4920_s29, 4  ;;  %s4861_s14 = int_to_ptr.vmem [resolvable:$false] %s4860_s14 }
  0x20   : > { %v507_v46 = vmul.f32 %v5098_v27, %v5098_v27  ;;  %v550_v47 = vadd.f32 %v5116_v36, %v549_v32  ;;  %v561_v48 = vmul.f32 %v5116_v36, %v5116_v36  ;;  %v563_v49 = vadd.f32 %v560_v34, %v559_v33  ;;  %s4862_s16 = scalar_lea.vmem %s4861_s14, 4096  ;;  %p4863_p0 = scmp.lt.s32.totalorder %s7012_s24, %s4861_s14 }
  0x21   : > { %417 = vperm.xlu1 %4628, %v343_v7   ;;  %412 = vperm.xlu0 %4627, %v342_v8   ;;  %v353_v51 = vrot.slane %v352_v38, 4  ;;  %v366_v52 = vadd.f32 %v365_v40, %v363_v39  ;;  %v497_v53 = vadd.f32 %v5129_v45, %v496_v37  ;;  %v508_v54 = vmul.f32 %v5129_v45, %v5129_v45  ;;  %p4864_p1 = scmp.lt.s32.totalorder %s4862_s16, %s4856_s28 }
  0x22   : > { %v446_v55 = vrot.slane %v445_v42, 4  ;;  %v459_v56 = vadd.f32 %v458_v44, %v456_v43  ;;  %v510_v58 = vadd.f32 %v507_v46, %v506_v41  ;;  %v551_v59 = vadd.f32 %v5137_v50, %v550_v47 }
  0x23   : > { %v562_v60 = vmul.f32 %v5137_v50, %v5137_v50  ;;  %v564_v61 = vadd.f32 %v563_v49, %v561_v48  ;;  %v354_v62 = vadd.f32 %v353_v51, %v352_v38  ;;  %v367_v63 = vrot.slane %v366_v52, 4  ;;  %p4865_p2 = por %p4864_p1, %p4863_p0 }
  0x24   : > { %v509_v0 = vmul.f32 %v5143_v57, %v5143_v57  ;;  %v447_v1 = vadd.f32 %v446_v55, %v445_v42  ;;  %v460_v3 = vrot.slane %v459_v56, 4  ;;  %v498_v4 = vadd.f32 %v5143_v57, %v497_v53 }
  0x25   : > { %v511_v5 = vadd.f32 %v510_v58, %v508_v54  ;;  %v552_v6 = vrot.slane %v551_v59, 4  ;;  %v565_v7 = vadd.f32 %v564_v61, %v562_v60  ;;  %v355_v8 = vrot.slane %v354_v62, 2  ;;  %p4866_p3 = pnand %p4865_p2, %p4859_p13 }
  0x26   : > { %v368_v14 = vadd.f32 %v367_v63, %v366_v52  ;;  %v448_v15 = vrot.slane %v447_v1, 2  ;;  %v461_v16 = vadd.f32 %v460_v3, %v459_v56  ;;  %v499_v17 = vrot.slane %v498_v4, 4 }
  0x27   : > { %v512_v18 = vadd.f32 %v511_v5, %v509_v0  ;;  %v553_v19 = vadd.f32 %v552_v6, %v551_v59  ;;  %v566_v23 = vrot.slane %v565_v7, 4  ;;  %v356_v24 = vadd.f32 %v355_v8, %v354_v62 }
  0x28   : > { %v369_v25 = vrot.slane %v368_v14, 2  ;;  %v449_v29 = vadd.f32 %v448_v15, %v447_v1  ;;  %v462_v30 = vrot.slane %v461_v16, 2  ;;  %v500_v31 = vadd.f32 %v499_v17, %v498_v4 }
  0x29   : > { %v513_v32 = vrot.slane %v512_v18, 4  ;;  %v554_v33 = vrot.slane %v553_v19, 2  ;;  %v567_v34 = vadd.f32 %v566_v23, %v565_v7  ;;  %v357_v37 = vrot.slane %v356_v24, 1 }
  0x2a   : > { %v370_v38 = vadd.f32 %v369_v25, %v368_v14  ;;  %v450_v39 = vrot.slane %v449_v29, 1  ;;  %v463_v40 = vadd.f32 %v462_v30, %v461_v16  ;;  %v501_v41 = vrot.slane %v500_v31, 2 }
  0x2b   : > { %v514_v42 = vadd.f32 %v513_v32, %v512_v18  ;;  %v555_v43 = vadd.f32 %v554_v33, %v553_v19  ;;  %v568_v44 = vrot.slane %v567_v34, 2  ;;  %v358_v46 = vadd.f32 %v357_v37, %v356_v24 }
  0x2c   : > { %v371_v47 = vrot.slane %v370_v38, 1  ;;  %v451_v48 = vadd.f32 %v450_v39, %v449_v29  ;;  %v464_v49 = vrot.slane %v463_v40, 1  ;;  %v502_v51 = vadd.f32 %v501_v41, %v500_v31 }
  0x2d   : > { %v515_v52 = vrot.slane %v514_v42, 2  ;;  %v556_v53 = vrot.slane %v555_v43, 1  ;;  %v569_v54 = vadd.f32 %v568_v44, %v567_v34  ;;  %v5151_v55 = vmul.f32 0.03125, %v358_v46 }
  0x2e   : > { %v372_v56 = vadd.f32 %v371_v47, %v370_v38  ;;  %v5153_v58 = vmul.f32 0.03125, %v451_v48  ;;  %v465_v59 = vadd.f32 %v464_v49, %v463_v40  ;;  %v503_v60 = vrot.slane %v502_v51, 1 }
  0x2f   : > { %v516_v61 = vadd.f32 %v515_v52, %v514_v42  ;;  %v557_v62 = vadd.f32 %v556_v53, %v555_v43  ;;  %v570_v63 = vrot.slane %v569_v54, 1  ;;  %v374_v1 = vmul.f32 %v5151_v55, %v5151_v55 }
  0x30   : > { %v373_v0 = vmul.f32 0.03125, %v372_v56  ;;  %v466_v3 = vmul.f32 0.03125, %v465_v59  ;;  %v467_v4 = vmul.f32 %v5153_v58, %v5153_v58  ;;  %v504_v5 = vadd.f32 %v503_v60, %v502_v51 }
  0x31   : > { %v517_v6 = vrot.slane %v516_v61, 1  ;;  %v5159_v7 = vmul.f32 0.03125, %v557_v62  ;;  %v571_v8 = vadd.f32 %v570_v63, %v569_v54  ;;  %v471_v37 = vsub.f32 %v5083_v20, %v5153_v58 }
  0x32   : > { %v375_v14 = vsub.f32 %v373_v0, %v374_v1  ;;  %v468_v15 = vsub.f32 %v466_v3, %v467_v4  ;;  %v5161_v16 = vmul.f32 0.03125, %v504_v5  ;;  %v472_v38 = vsub.f32 %v5113_v35, %v5153_v58 }
  0x33   : > { %v518_v17 = vadd.f32 %v517_v6, %v516_v61  ;;  %v572_v18 = vmul.f32 0.03125, %v571_v8  ;;  %v573_v19 = vmul.f32 %v5159_v7, %v5159_v7  ;;  %v378_v39 = vsub.f32 %v5068_v13, %v5151_v55 }
  0x34   : > { %v380_v23 = vadd.f32 1e-05, %v375_v14  ;;  %v473_v24 = vadd.f32 1e-05, %v468_v15  ;;  %v520_v29 = vmul.f32 %v5161_v16, %v5161_v16  ;;  %v379_v40 = vsub.f32 %v5101_v28, %v5151_v55 }
  0x35   : > { %v519_v25 = vmul.f32 0.03125, %v518_v17  ;;  %v574_v30 = vsub.f32 %v572_v18, %v573_v19  ;;  %v577_v20 = vsub.f32 %v5116_v36, %v5159_v7  ;;  %v578_v35 = vsub.f32 %v5137_v50, %v5159_v7 }
  0x36   : > { %4688 = vrsqrt.f32 %v380_v23  ;;  %v377_v13 = vsub.f32 %v5059_v10, %v5151_v55  ;;  %v470_v28 = vsub.f32 %v5065_v12, %v5153_v58  ;;  %v525_v53 = vsub.f32 %v5143_v57, %v5161_v16 }
  0x37   : > { %4690 = vrsqrt.f32 %v473_v24  ;;  %v521_v31 = vsub.f32 %v519_v25, %v520_v29  ;;  %v579_v32 = vadd.f32 1e-05, %v574_v30  ;;  %v376_v54 = vsub.f32 %v5056_v9, %v5151_v55 }
  0x38   : > { %v469_v36 = vsub.f32 %v5062_v11, %v5153_v58  ;;  %v524_v10 = vsub.f32 %v5129_v45, %v5161_v16  ;;  %v576_v11 = vsub.f32 %v5089_v22, %v5159_v7  ;;  %v575_v4 = vsub.f32 %v5086_v21, %v5159_v7 }
  0x39   : > { %v526_v33 = vadd.f32 1e-05, %v521_v31  ;;  %4692 = vrsqrt.f32 %v579_v32  ;;  %v523_v5 = vsub.f32 %v5098_v27, %v5161_v16  ;;  %v522_v22 = vsub.f32 %v5095_v26, %v5161_v16 }
  0x3b   : > { %4694 = vrsqrt.f32 %v526_v33 }
  0x43   : > { %v4689_v34 = vpop.eup %4688 }
  0x44   : > { %v4691_v41 = vpop.eup %4690  ;;  %v384_v47 = vmul.f32 %v4689_v34, %v378_v39  ;;  %v385_v48 = vmul.f32 %v4689_v34, %v379_v40  ;;  %v383_v63 = vmul.f32 %v4689_v34, %v377_v13  ;;  %v382_v58 = vmul.f32 %v4689_v34, %v376_v54  ;;  %v4630_v13 = vld [vmem:[%s7062_s3] sm:$0xff]  }
  0x45   : > { %v477_v44 = vmul.f32 %v4691_v41, %v471_v37  ;;  %v478_v46 = vmul.f32 %v4691_v41, %v472_v38  ;;  %v476_v0 = vmul.f32 %v4691_v41, %v470_v28  ;;  %v475_v3 = vmul.f32 %v4691_v41, %v469_v36 }
  0x46   : > { %v4693_v49 = vpop.eup %4692 }
  0x47   : > { %v583_v61 = vmul.f32 %v4693_v49, %v577_v20  ;;  %v584_v12 = vmul.f32 %v4693_v49, %v578_v35  ;;  %v582_v7 = vmul.f32 %v4693_v49, %v576_v11  ;;  %v581_v25 = vmul.f32 %v4693_v49, %v575_v4  ;;  %v5243_v49 = vld [vmem:[%s7062_s3 + $0xb0] sm:$0xff]  }
  0x48   : > { %v4695_v62 = vpop.eup %4694  ;;  %v4641_v11 = vld [vmem:[%s7062_s3 + $0x50] sm:$0xff]  }
  0x49   : > { %v531_v45 = vmul.f32 %v4695_v62, %v525_v53  ;;  %v530_v14 = vmul.f32 %v4695_v62, %v524_v10  ;;  %v529_v38 = vmul.f32 %v4695_v62, %v523_v5  ;;  %v528_v39 = vmul.f32 %v4695_v62, %v522_v22  ;;  %v4634_v10 = vld [vmem:[%s7062_s3 + $0x18] sm:$0xff]   ;;  %v4637_v62 = vld [vmem:[%s7062_s3 + $0x30] sm:$0xff]  }
  0x4a   : > { %v4645_v4 = vld [vmem:[%s7062_s3 + $0x70] sm:$0xff]   ;;  %v4647_v5 = vld [vmem:[%s7066_s7 + $0xf8] sm:$0xff]  }
  0x4b   : > { %v4651_v22 = vld [vmem:[%s7066_s7 + $0xf0] sm:$0xff]  }
  0x90   : > { %v5175_v42 = vpop.permute.xlu1 %422  ;;  %v399_v43 = vpop.permute.xlu0 %398 }
  0x91   : > { %v481_v56 = vmul.f32 %v477_v44, %v399_v43  ;;  %v408_v59 = vmul.f32 %v399_v43, %v384_v47  ;;  %v587_v15 = vmul.f32 %v583_v61, %v399_v43  ;;  %v534_v37 = vmul.f32 %v530_v14, %v399_v43  ;;  %v4635_v61 = vld [vmem:[%s7062_s3 + $0x20] sm:$0xff]   ;;  %v4648_v14 = vld [vmem:[%s7066_s7 + $0xb8] sm:$0xff]  }
  0x93   : > { %v5204_v6 = vadd.f32 %v481_v56, %v5175_v42  ;;  %v5207_v8 = vadd.f32 %v5175_v42, %v408_v59  ;;  %v5226_v40 = vadd.f32 %v587_v15, %v5175_v42  ;;  %v5249_v28 = vadd.f32 %v534_v37, %v5175_v42  ;;  %v4632_v59 = vld [vmem:[%s7062_s3 + $0x8] sm:$0xff]   ;;  %v4649_v15 = vld [vmem:[%s7066_s7 + $0x78] sm:$0xff]  }
  0x94   : > { %v428_v51 = vpop.permute.xlu1 %427  ;;  %v404_v52 = vpop.permute.xlu0 %403 }
  0x95   : > { %v482_v50 = vmul.f32 %v478_v46, %v404_v52  ;;  %v409_v60 = vmul.f32 %v404_v52, %v385_v48  ;;  %7176 = vst [vmem:[#allocation9_spill] sm:$0xff] %v5204_v6  ;;  %7177 = vst [vmem:[#allocation10_spill] sm:$0xff] %v5207_v8  ;;  %v588_v17 = vmul.f32 %v584_v12, %v404_v52  ;;  %v4636_v12 = vld [vmem:[%s7062_s3 + $0x28] sm:$0xff]  }
  0x96   : > { %v535_v31 = vmul.f32 %v531_v45, %v404_v52  ;;  %7183 = vst [vmem:[#allocation16_spill] sm:$0xff] %v5226_v40  ;;  %7187 = vst [vmem:[#allocation20_spill] sm:$0xff] %v5249_v28  ;;  %v4646_v45 = vld [vmem:[%s7062_s3 + $0x78] sm:$0xff]  }
  0x97   : > { %v5193_v1 = vadd.f32 %v482_v50, %v428_v51  ;;  %v5195_v57 = vadd.f32 %v428_v51, %v409_v60  ;;  %v5223_v34 = vadd.f32 %v588_v17, %v428_v51  ;;  %v5269_v50 = vld [vmem:[%s7062_s3 + $0xb8] sm:$0xff]   ;;  %v4633_v60 = vld [vmem:[%s7062_s3 + $0x10] sm:$0xff]  }
  0x98   : > { %v394_v9 = vpop.permute.xlu1 %393  ;;  %v389_v55 = vpop.permute.xlu0 %388  ;;  %v5232_v48 = vadd.f32 %v535_v31, %v428_v51  ;;  %v4650_v17 = vld [vmem:[%s7066_s7 + $0x38] sm:$0xff]  }
  0x99   : > { %7174 = vst [vmem:[#allocation7_spill] sm:$0xff] %v5193_v1  ;;  %7175 = vst [vmem:[#allocation8_spill] sm:$0xff] %v5195_v57  ;;  %v407_v18 = vmul.f32 %v394_v9, %v383_v63  ;;  %v480_v19 = vmul.f32 %v476_v0, %v394_v9  ;;  %v618_v21 = vpack.c.bf16 %v5193_v1, %v5204_v6  ;;  %v4638_v63 = vld [vmem:[%s7062_s3 + $0x38] sm:$0xff]   ;;  %v4639_v0 = vld [vmem:[%s7062_s3 + $0x40] sm:$0xff]  }
  0x9a   : > { %v617_v27 = vpack.c.bf16 %v5195_v57, %v5207_v8  ;;  %v406_v23 = vmul.f32 %v389_v55, %v382_v58  ;;  %v479_v24 = vmul.f32 %v475_v3, %v389_v55  ;;  %7182 = vst [vmem:[#allocation15_spill] sm:$0xff] %v5223_v34  ;;  %v586_v41 = vmul.f32 %v582_v7, %v394_v9  ;;  %v4643_v58 = vld [vmem:[%s7062_s3 + $0x60] sm:$0xff]   ;;  %v4644_v3 = vld [vmem:[%s7062_s3 + $0x68] sm:$0xff]  }
  0x9b   : > { %874 = vmatprep.subr.bf16.mxu0 %v618_v21  ;;  %4580 = vmatprep.subr.bf16.mxu1 %v618_v21  ;;  %v585_v44 = vmul.f32 %v581_v25, %v389_v55  ;;  %7184 = vst [vmem:[#allocation17_spill] sm:$0xff] %v5232_v48  ;;  %v620_v43 = vpack.c.bf16 %v5223_v34, %v5226_v40  ;;  %v4654_v21 = vld [vmem:[%s7066_s7 + $0x30] sm:$0xff]   ;;  %v4656_v7 = vld [vmem:[%s7066_s7 + $0xa8] sm:$0xff]   ;;  %v4667_v34 = vld [vmem:[%s7066_s7 + $0x18] sm:$0xff]  }
  0x9c   : > { %v418_v29 = vpop.permute.xlu1 %417  ;;  %v413_v30 = vpop.permute.xlu0 %412  ;;  %875 = vmatpush1.bf16.msra.mxu0 %v617_v27  ;;  %4582 = vmatpush1.bf16.msra.mxu1 %v617_v27  ;;  %v533_v51 = vmul.f32 %v529_v38, %v394_v9  ;;  %v532_v52 = vmul.f32 %v528_v39, %v389_v55  ;;  %v619_v36 = vpack.c.bf16 %v5232_v48, %v5249_v28  ;;  %v4640_v9 = vld [vmem:[%s7062_s3 + $0x48] sm:$0xff]   ;;  %v4642_v55 = vld [vmem:[%s7062_s3 + $0x58] sm:$0xff]   ;;  %v4670_v48 = vld [vmem:[%s7066_s7 + $0xd0] sm:$0xff]  }
  0x9d   : > { %v5215_v32 = vadd.f32 %v418_v29, %v407_v18  ;;  %v5217_v26 = vadd.f32 %v480_v19, %v418_v29  ;;  %v5219_v16 = vadd.f32 %v413_v30, %v406_v23  ;;  %v5221_v33 = vadd.f32 %v479_v24, %v413_v30  ;;  %v4652_v18 = vld [vmem:[%s7066_s7 + $0xb0] sm:$0xff]   ;;  %v4655_v27 = vld [vmem:[%s7066_s7 + $0xe8] sm:$0xff]  }
  0x9e   : > { %v5234_v20 = vadd.f32 %v586_v41, %v418_v29  ;;  %v5236_v35 = vadd.f32 %v585_v44, %v413_v30  ;;  %v5251_v53 = vadd.f32 %v533_v51, %v418_v29  ;;  %v5253_v54 = vadd.f32 %v532_v52, %v413_v30  ;;  %v4653_v19 = vld [vmem:[%s7066_s7 + $0x70] sm:$0xff]  }
  0x9f   : > { %7178 = vst [vmem:[#allocation11_spill] sm:$0xff] %v5215_v32  ;;  %7179 = vst [vmem:[#allocation12_spill] sm:$0xff] %v5217_v26  ;;  %v614_v46 = vpack.c.bf16 %v5217_v26, %v5221_v33  ;;  %v613_v47 = vpack.c.bf16 %v5215_v32, %v5219_v16 }
  0xa0   : > { %7180 = vst [vmem:[#allocation13_spill] sm:$0xff] %v5219_v16  ;;  %7181 = vst [vmem:[#allocation14_spill] sm:$0xff] %v5221_v33  ;;  %v616_v42 = vpack.c.bf16 %v5234_v20, %v5236_v35  ;;  %v615_v56 = vpack.c.bf16 %v5251_v53, %v5253_v54 }
  0xa1   : > { %7185 = vst [vmem:[#allocation18_spill] sm:$0xff] %v5234_v20  ;;  %7186 = vst [vmem:[#allocation19_spill] sm:$0xff] %v5236_v35  ;;  %876 = vmatprep.subr.bf16.mxu0 %v614_v46  ;;  %4581 = vmatprep.subr.bf16.mxu1 %v614_v46  ;;  %v4671_v20 = vld [vmem:[%s7066_s7 + $0x90] sm:$0xff]  }
  0xa2   : > { %877 = vmatpush1.bf16.msra.mxu0 %v613_v47  ;;  %4583 = vmatpush1.bf16.msra.mxu1 %v613_v47  ;;  %7188 = vst [vmem:[#allocation21_spill] sm:$0xff] %v5251_v53  ;;  %7189 = vst [vmem:[#allocation22_spill] sm:$0xff] %v5253_v54  ;;  %v7234_v53 = vmov 0   ;;  %v4674_v35 = vld [vmem:[%s7066_s7 + $0x10] sm:$0xff]  }
  0xa3   : > { %1147 = vmatprep.subr.bf16.mxu1 %v620_v43  ;;  %4068 = vmatprep.subr.bf16.mxu0 %v4649_v15  ;;  %v4657_v43 = vld [vmem:[%s7066_s7 + $0x68] sm:$0xff]  }
  0xa5   : > { %3969 = vmatmul.mubr.msk.bf16.vlgmr.msra.gmra.mxu1 %vm789_vm0, %v5243_v49  ;;  %3947 = vmatmul.mubr.msk.bf16.vlgmr.msra.gmra.mxu0 %vm789_vm0, %v4630_v13 }
  0xa6   : > { %1148 = vmatpush1.bf16.msra.mxu1 %v619_v36  ;;  %1124 = vmatprep.mubr.bf16.mxu1 %v7069_v2 }
  0xa7   : > { %1149 = vmatprep.subr.bf16.mxu1 %v616_v42  ;;  %904 = vmatprep.mubr.bf16.mxu0 %v7069_v2 }
  0xa8   : > { %4069 = vmatpush3.bf16.msra.mxu0 %v4650_v17  ;;  %v4661_v17 = vld [vmem:[%s7066_s7 + $0x60] sm:$0xff]  }
  0xa9   : > { %4070 = vmatprep.subr.bf16.mxu0 %v4653_v19 }
  0xaa   : > { %1150 = vmatpush1.bf16.msra.mxu1 %v615_v56 }
  0xab   : > { %4132 = vmatprep.subr.bf16.mxu1 %v4647_v5 }
  0xac   : > { %4071 = vmatpush3.bf16.msra.mxu0 %v4654_v21 }
  0xad   : > { %3970 = vmatmul.mubr.msk.bf16.gmra.mxu1 %vm789_vm0, %v5269_v50  ;;  %3948 = vmatmul.mubr.msk.bf16.gmra.mxu0 %vm789_vm0, %v4632_v59 }
  0xae   : > { %1167 = vmatprep.mubr.bf16.mxu1 %v7069_v2  ;;  %914 = vmatprep.mubr.bf16.mxu0 %v7069_v2 }
  0xaf   : > { %4072 = vmatprep.subr.bf16.mxu0 %v4657_v43 }
  0xb5   : > { %3971 = vmatmul.mubr.msk.bf16.vlgmr.msra.gmra.mxu1 %vm789_vm0, %v4630_v13  ;;  %3949 = vmatmul.mubr.msk.bf16.gmra.mxu0 %vm789_vm0, %v4633_v60  ;;  %v4658_v13 = vld [vmem:[%s7066_s7 + $0x28] sm:$0xff]  }
  0xb6   : > { %1177 = vmatprep.mubr.bf16.mxu1 %v7069_v2  ;;  %924 = vmatprep.mubr.bf16.mxu0 %v7069_v2 }
  0xb7   : > { %4133 = vmatpush3.bf16.msra.mxu1 %v4648_v14  ;;  %4073 = vmatpush3.bf16.msra.mxu0 %v4658_v13 }
  0xb8   : > { %4134 = vmatprep.subr.bf16.mxu1 %v4651_v22  ;;  %v4662_v22 = vld [vmem:[%s7066_s7 + $0x20] sm:$0xff]   ;;  %4074 = vmatprep.subr.bf16.mxu0 %v4661_v17  ;;  %v4664_v17 = vld [vmem:[%s7066_s7 + $0x98] sm:$0xff]  }
  0xbb   : > { %4135 = vmatpush3.bf16.msra.mxu1 %v4652_v18  ;;  %4075 = vmatpush3.bf16.msra.mxu0 %v4662_v22  ;;  %v4665_v22 = vld [vmem:[%s7062_s3 + $0x80] sm:$0xff]  }
  0xbc   : > { %4136 = vmatprep.subr.bf16.mxu1 %v4655_v27 }
  0xbd   : > { %3972 = vmatmul.mubr.msk.bf16.gmra.mxu1 %vm789_vm0, %v4632_v59  ;;  %3950 = vmatmul.mubr.msk.bf16.gmra.mxu0 %vm789_vm0, %v4634_v10 }
  0xbe   : > { %1187 = vmatprep.mubr.bf16.mxu1 %v7069_v2  ;;  %934 = vmatprep.mubr.bf16.mxu0 %v7069_v2 }
  0xbf   : > { %4137 = vmatpush3.bf16.msra.mxu1 %v4656_v7 }
  0xc5   : > { %3973 = vmatmul.mubr.msk.bf16.gmra.mxu1 %vm789_vm0, %v4633_v60  ;;  %3951 = vmatmul.mubr.msk.bf16.gmra.mxu0 %vm789_vm0, %v4635_v61 }
  0xc6   : > { %1197 = vmatprep.mubr.bf16.mxu1 %v7069_v2  ;;  %944 = vmatprep.mubr.bf16.mxu0 %v7069_v2 }
  0xcd   : > { %3974 = vmatmul.mubr.msk.bf16.gmra.mxu1 %vm789_vm0, %v4634_v10  ;;  %3952 = vmatmul.mubr.msk.bf16.gmra.mxu0 %vm789_vm0, %v4636_v12  ;;  %v4659_v10 = vld [vmem:[%s7066_s7 + $0xe0] sm:$0xff]  }
  0xce   : > { %1207 = vmatprep.mubr.bf16.mxu1 %v7069_v2  ;;  %954 = vmatprep.mubr.bf16.mxu0 %v7069_v2 }
  0xcf   : > { %4138 = vmatprep.subr.bf16.mxu1 %v4659_v10 }
  0xd5   : > { %3975 = vmatmul.mubr.msk.bf16.gmra.mxu1 %vm789_vm0, %v4635_v61  ;;  %3953 = vmatmul.mubr.msk.bf16.gmra.mxu0 %vm789_vm0, %v4637_v62  ;;  %v4660_v61 = vld [vmem:[%s7066_s7 + $0xa0] sm:$0xff]  }
  0xd6   : > { %1217 = vmatprep.mubr.bf16.mxu1 %v7069_v2  ;;  %964 = vmatprep.mubr.bf16.mxu0 %v7069_v2 }
  0xd7   : > { %4139 = vmatpush3.bf16.msra.mxu1 %v4660_v61  ;;  %v4663_v61 = vld [vmem:[%s7066_s7 + $0xd8] sm:$0xff]  }
  0xd8   : > { %4140 = vmatprep.subr.bf16.mxu1 %v4663_v61  ;;  %v4673_v61 = vld [vmem:[%s7066_s7 + $0x50] sm:$0xff]  }
  0xdb   : > { %4141 = vmatpush3.bf16.msra.mxu1 %v4664_v17  ;;  %v4677_v17 = vld [vmem:[%s7066_s7 + $0xc8] sm:$0xff]  }
  0xdc   : > { %4142 = vmatprep.subr.bf16.mxu1 %v4670_v48 }
  0xdd   : > { %3976 = vmatmul.mubr.msk.bf16.gmra.mxu1 %vm789_vm0, %v4636_v12  ;;  %3954 = vmatmul.mubr.msk.bf16.gmra.mxu0 %vm789_vm0, %v4638_v63 }
  0xde   : > { %1227 = vmatprep.mubr.bf16.mxu1 %v7069_v2  ;;  %974 = vmatprep.mubr.bf16.mxu0 %v7069_v2 }
  0xdf   : > { %4143 = vmatpush3.bf16.msra.mxu1 %v4671_v20  ;;  %v4669_v20 = vld [vmem:[%s7062_s3 + $0x90] sm:$0xff]  }
  0xe0   : > { %4144 = vmatprep.subr.bf16.mxu1 %v4677_v17 }
  0xe5   : > { %3977 = vmatmul.mubr.msk.bf16.gmra.mxu1 %vm789_vm0, %v4637_v62  ;;  %3955 = vmatmul.mubr.msk.bf16.gmra.mxu0 %vm789_vm0, %v4639_v0 }
  0xe6   : > { %1237 = vmatprep.mubr.bf16.mxu1 %v7069_v2  ;;  %984 = vmatprep.mubr.bf16.mxu0 %v7069_v2 }
  0xed   : > { %3978 = vmatmul.mubr.msk.bf16.gmra.mxu1 %vm789_vm0, %v4638_v63  ;;  %3956 = vmatmul.mubr.msk.bf16.gmra.mxu0 %vm789_vm0, %v4640_v9 }
  0xee   : > { %1247 = vmatprep.mubr.bf16.mxu1 %v7069_v2  ;;  %994 = vmatprep.mubr.bf16.mxu0 %v7069_v2 }
  0xf5   : > { %3979 = vmatmul.mubr.msk.bf16.gmra.mxu1 %vm789_vm0, %v4639_v0  ;;  %3957 = vmatmul.mubr.msk.bf16.gmra.mxu0 %vm789_vm0, %v4641_v11 }
  0xf6   : > { %1257 = vmatprep.mubr.bf16.mxu1 %v7069_v2  ;;  %1004 = vmatprep.mubr.bf16.mxu0 %v7069_v2 }
  0xfd   : > { %3980 = vmatmul.mubr.msk.bf16.gmra.mxu1 %vm789_vm0, %v4640_v9  ;;  %3958 = vmatmul.mubr.msk.bf16.gmra.mxu0 %vm789_vm0, %v4642_v55 }
  0xfe   : > { %1267 = vmatprep.mubr.bf16.mxu1 %v7069_v2  ;;  %1014 = vmatprep.mubr.bf16.mxu0 %v7069_v2 }
 0x105   : > { %3981 = vmatmul.mubr.msk.bf16.gmra.mxu1 %vm789_vm0, %v4641_v11  ;;  %3959 = vmatmul.mubr.msk.bf16.gmra.mxu0 %vm789_vm0, %v4643_v58 }
 0x106   : > { %1277 = vmatprep.mubr.bf16.mxu1 %v7069_v2  ;;  %1024 = vmatprep.mubr.bf16.mxu0 %v7069_v2 }
 0x10d   : > { %3982 = vmatmul.mubr.msk.bf16.gmra.mxu1 %vm789_vm0, %v4642_v55  ;;  %3960 = vmatmul.mubr.msk.bf16.gmra.mxu0 %vm789_vm0, %v4644_v3 }
 0x10e   : > { %1287 = vmatprep.mubr.bf16.mxu1 %v7069_v2  ;;  %1034 = vmatprep.mubr.bf16.mxu0 %v7069_v2 }
 0x115   : > { %3983 = vmatmul.mubr.msk.bf16.gmra.mxu1 %vm789_vm0, %v4643_v58  ;;  %3961 = vmatmul.mubr.msk.bf16.gmra.mxu0 %vm789_vm0, %v4645_v4 }
 0x116   : > { %1297 = vmatprep.mubr.bf16.mxu1 %v7069_v2  ;;  %1044 = vmatprep.mubr.bf16.mxu0 %v7069_v2 }
 0x11d   : > { %3984 = vmatmul.mubr.msk.bf16.gmra.mxu1 %vm789_vm0, %v4644_v3  ;;  %3962 = vmatmul.mubr.msk.bf16.gmra.mxu0 %vm789_vm0, %v4646_v45 }
 0x11e   : > { %1307 = vmatprep.mubr.bf16.mxu1 %v7069_v2  ;;  %1054 = vmatprep.mubr.bf16.mxu0 %v7069_v2 }
 0x125   : > { %3985 = vmatmul.mubr.msk.bf16.gmra.mxu1 %vm789_vm0, %v4645_v4  ;;  %3963 = vmatmul.mubr.msk.bf16.gmra.mxu0 %vm789_vm0, %v4665_v22 }
 0x126   : > { %1317 = vmatprep.mubr.bf16.mxu1 %v7069_v2  ;;  %1064 = vmatprep.mubr.bf16.mxu0 %v7234_v53 }
 0x12d   : > { %3986 = vmatmul.mubr.msk.bf16.gmra.mxu1 %vm789_vm0, %v4646_v45 }
 0x12e   : > { %1327 = vmatprep.mubr.bf16.mxu1 %v7069_v2  ;;  %v4666_v2 = vld [vmem:[%s7066_s7 + $0x58] sm:$0xff]  }
 0x12f   : > { %4076 = vmatprep.subr.bf16.mxu0 %v4666_v2 }
 0x130   : > { %4077 = vmatpush3.bf16.msra.mxu0 %v4667_v34  ;;  %v4668_v34 = vld [vmem:[%s7062_s3 + $0x88] sm:$0xff]  }
 0x131   : > { %4078 = vmatprep.subr.bf16.mxu0 %v4673_v61  ;;  %3964 = vmatmul.mubr.msk.bf16.gmra.mxu0 %vm789_vm0, %v4668_v34 }
 0x132   : > { %1074 = vmatprep.mubr.bf16.mxu0 %v7234_v53 }
 0x134   : > { %4079 = vmatpush3.bf16.msra.mxu0 %v4674_v35 }
 0x135   : > { %3987 = vmatmul.mubr.msk.bf16.gmra.mxu1 %vm789_vm0, %v4665_v22 }
 0x136   : > { %1337 = vmatprep.mubr.bf16.mxu1 %v7234_v53 }
 0x139   : > { %3965 = vmatmul.mubr.msk.bf16.gmra.mxu0 %vm789_vm0, %v4669_v20 }
 0x13a   : > { %1084 = vmatprep.mubr.bf16.mxu0 %v7234_v53 }
 0x13d   : > { %3988 = vmatmul.mubr.msk.bf16.gmra.mxu1 %vm789_vm0, %v4668_v34 }
 0x13e   : > { %1347 = vmatprep.mubr.bf16.mxu1 %v7234_v53 }
 0x145   : > { %3989 = vmatmul.mubr.msk.bf16.gmra.mxu1 %vm789_vm0, %v4669_v20 }
 0x146   : > { %1357 = vmatprep.mubr.bf16.mxu1 %v7234_v53 }
 0x165   : > { %v5411_v23 = vpop.f32.mrf.mxu1  ;;  %v5413_v24 = vpop.f32.mrf.mxu0 }
 0x166   : > { %7190 = vst [vmem:[#allocation23_spill] sm:$0xff] %v5411_v23  ;;  %7191 = vst [vmem:[#allocation24_spill] sm:$0xff] %v5413_v24 }
 0x167   : > { %v5415_v25 = vpop.f32.mrf.mxu1  ;;  %v5417_v29 = vpop.f32.mrf.mxu0 }
 0x168   : > { %7192 = vst [vmem:[#allocation25_spill] sm:$0xff] %v5415_v25  ;;  %7193 = vst [vmem:[#allocation26_spill] sm:$0xff] %v5417_v29 }
 0x169   : > { %v5419_v30 = vpop.f32.mrf.mxu1  ;;  %v5421_v31 = vpop.f32.mrf.mxu0 }
 0x16a   : > { %7194 = vst [vmem:[#allocation27_spill] sm:$0xff] %v5419_v30  ;;  %7195 = vst [vmem:[#allocation28_spill] sm:$0xff] %v5421_v31 }
 0x16b   : > { %v5425_v38 = vpop.f32.mrf.mxu1  ;;  %v5427_v39 = vpop.f32.mrf.mxu0 }
 0x16c   : > { %7196 = vst [vmem:[#allocation29_spill] sm:$0xff] %v5425_v38  ;;  %7197 = vst [vmem:[#allocation30_spill] sm:$0xff] %v5427_v39 }
 0x16d   : > { %v5429_v41 = vpop.f32.mrf.mxu1  ;;  %v5431_v44 = vpop.f32.mrf.mxu0 }
 0x16e   : > { %7198 = vst [vmem:[#allocation31_spill] sm:$0xff] %v5429_v41  ;;  %7199 = vst [vmem:[#allocation32_spill] sm:$0xff] %v5431_v44 }
 0x16f   : > { %v5433_v46 = vpop.f32.mrf.mxu1  ;;  %v5435_v47 = vpop.f32.mrf.mxu0 }
 0x170   : > { %7200 = vst [vmem:[#allocation33_spill] sm:$0xff] %v5433_v46  ;;  %7201 = vst [vmem:[#allocation34_spill] sm:$0xff] %v5435_v47  ;;  %v4680_v47 = vld [vmem:[%s7066_s7 + $0x8] sm:$0xff]  }
 0x171   : > { %v5443_v51 = vpop.f32.mrf.mxu1  ;;  %v5445_v52 = vpop.f32.mrf.mxu0 }
 0x172   : > { %7202 = vst [vmem:[#allocation35_spill] sm:$0xff] %v5443_v51  ;;  %7203 = vst [vmem:[#allocation36_spill] sm:$0xff] %v5445_v52 }
 0x173   : > { %v5449_v42 = vpop.f32.mrf.mxu1  ;;  %v5451_v56 = vpop.f32.mrf.mxu0 }
 0x174   : > { %7204 = vst [vmem:[#allocation37_spill] sm:$0xff] %v5449_v42  ;;  %7205 = vst [vmem:[#allocation38_spill] sm:$0xff] %v5451_v56 }
 0x175   : > { %v5453_v59 = vpop.f32.mrf.mxu1  ;;  %v5455_v60 = vpop.f32.mrf.mxu0 }
 0x176   : > { %7206 = vst [vmem:[#allocation39_spill] sm:$0xff] %v5453_v59  ;;  %7207 = vst [vmem:[#allocation40_spill] sm:$0xff] %v5455_v60  ;;  %v4684_v59 = vld [vmem:[%s7066_s7 + $0x80] sm:$0xff]  }
 0x177   : > { %v5463_v12 = vpop.f32.mrf.mxu1  ;;  %v5465_v62 = vpop.f32.mrf.mxu0 }
 0x178   : > { %7208 = vst [vmem:[#allocation41_spill] sm:$0xff] %v5463_v12  ;;  %7209 = vst [vmem:[#allocation42_spill] sm:$0xff] %v5465_v62 }
 0x179   : > { %v5467_v63 = vpop.f32.mrf.mxu1  ;;  %v5469_v0 = vpop.f32.mrf.mxu0 }
 0x17a   : > { %7210 = vst [vmem:[#allocation43_spill] sm:$0xff] %v5467_v63  ;;  %7211 = vst [vmem:[#allocation44_spill] sm:$0xff] %v5469_v0 }
 0x17b   : > { %v5471_v9 = vpop.f32.mrf.mxu1  ;;  %v5473_v11 = vpop.f32.mrf.mxu0 }
 0x17c   : > { %7212 = vst [vmem:[#allocation45_spill] sm:$0xff] %v5471_v9  ;;  %7213 = vst [vmem:[#allocation46_spill] sm:$0xff] %v5473_v11 }
 0x17d   : > { %v5475_v55 = vpop.f32.mrf.mxu1  ;;  %v5477_v58 = vpop.f32.mrf.mxu0 }
 0x17e   : > { %7214 = vst [vmem:[#allocation47_spill] sm:$0xff] %v5475_v55  ;;  %7215 = vst [vmem:[#allocation48_spill] sm:$0xff] %v5477_v58 }
 0x17f   : > { %v5479_v3 = vpop.f32.mrf.mxu1  ;;  %v5481_v4 = vpop.f32.mrf.mxu0 }
 0x180   : > { %7216 = vst [vmem:[#allocation49_spill] sm:$0xff] %v5479_v3  ;;  %7217 = vst [vmem:[#allocation50_spill] sm:$0xff] %v5481_v4 }
 0x181   : > { %v5483_v45 = vpop.f32.mrf.mxu1  ;;  %v5485_v5 = vpop.f32.mrf.mxu0 }
 0x182   : > { %7218 = vst [vmem:[#allocation51_spill] sm:$0xff] %v5483_v45  ;;  %7219 = vst [vmem:[#allocation52_spill] sm:$0xff] %v5485_v5 }
 0x183   : > { %v5487_v14 = vpop.f32.mrf.mxu1  ;;  %v5489_v15 = vpop.f32.mrf.mxu0 }
 0x184   : > { %7220 = vst [vmem:[#allocation53_spill] sm:$0xff] %v5487_v14  ;;  %7221 = vst [vmem:[#allocation54_spill] sm:$0xff] %v5489_v15 }
 0x185   : > { %v5497_v18 = vpop.f32.mrf.mxu1  ;;  %v5499_v19 = vpop.f32.mrf.mxu0 }
 0x186   : > { %7222 = vst [vmem:[#allocation55_spill] sm:$0xff] %v5497_v18  ;;  %7223 = vst [vmem:[#allocation56_spill] sm:$0xff] %v5499_v19 }
 0x187   : > { %v5501_v21 = vpop.f32.mrf.mxu1  ;;  %v5503_v27 = vpop.f32.mrf.mxu0 }
 0x188   : > { %7224 = vst [vmem:[#allocation57_spill] sm:$0xff] %v5501_v21  ;;  %7225 = vst [vmem:[#allocation58_spill] sm:$0xff] %v5503_v27  ;;  %v4679_v21 = vld [vmem:[%s7066_s7 + $0x48] sm:$0xff]  }
 0x189   : > { %v5505_v7 = vpop.f32.mrf.mxu1  ;;  %v5507_v43 = vpop.f32.mrf.mxu0  ;;  %4080 = vmatprep.subr.bf16.mxu0 %v4679_v21 }
 0x18a   : > { %7226 = vst [vmem:[#allocation59_spill] sm:$0xff] %v5505_v7  ;;  %7227 = vst [vmem:[#allocation60_spill] sm:$0xff] %v5507_v43  ;;  %4081 = vmatpush3.bf16.msra.mxu0 %v4680_v47 }
 0x18b   : > { %v5509_v13 = vpop.f32.mrf.mxu1  ;;  %v5511_v10 = vpop.f32.mrf.mxu0 }
 0x18c   : > { %7228 = vst [vmem:[#allocation61_spill] sm:$0xff] %v5509_v13  ;;  %7229 = vst [vmem:[#allocation62_spill] sm:$0xff] %v5511_v10 }
 0x18d   : > { %v5522_v36 = vpop.f32.mrf.mxu1  ;;  %v5524_v37 = vpop.f32.mrf.mxu0 }
 0x18e   : > { %7230 = vst [vmem:[#allocation63_spill] sm:$0xff] %v5522_v36  ;;  %7231 = vst [vmem:[#allocation64_spill] sm:$0xff] %v5524_v37 }
 0x18f   : > { %v5536_v40 = vpop.f32.mrf.mxu1  ;;  %v5538_v28 = vpop.f32.mrf.mxu0 }
 0x190   : > { %7232 = vst [vmem:[#allocation65_spill] sm:$0xff] %v5536_v40  ;;  %7233 = vst [vmem:[#allocation66_spill] sm:$0xff] %v5538_v28 }
 0x191   : > { %v5553_v2 = vpop.f32.mrf.mxu1  ;;  %v5555_v54 = vpop.f32.mrf.mxu0 }
 0x192   : > { %7235 = vst [vmem:[#allocation67_spill] sm:$0xff] %v5553_v2  ;;  %7236 = vst [vmem:[#allocation68_spill] sm:$0xff] %v5555_v54 }
 0x193   : > { %v5562_v1 = vpop.f32.mrf.mxu1  ;;  %v5564_v57 = vpop.f32.mrf.mxu0 }
 0x194   : > { %7237 = vst [vmem:[#allocation69_spill] sm:$0xff] %v5562_v1  ;;  %7238 = vst [vmem:[#allocation70_spill] sm:$0xff] %v5564_v57 }
 0x195   : > { %v5566_v6 = vpop.f32.mrf.mxu1  ;;  %v5568_v8 = vpop.f32.mrf.mxu0 }
 0x196   : > { %7239 = vst [vmem:[#allocation71_spill] sm:$0xff] %v5566_v6  ;;  %7240 = vst [vmem:[#allocation72_spill] sm:$0xff] %v5568_v8 }
 0x197   : > { %v5571_v48 = vpop.f32.mrf.mxu1  ;;  %v5573_v22 = vpop.f32.mrf.mxu0 }
 0x198   : > { %7241 = vst [vmem:[#allocation73_spill] sm:$0xff] %v5571_v48  ;;  %7242 = vst [vmem:[#allocation74_spill] sm:$0xff] %v5573_v22  ;;  %v4672_v22 = vld [vmem:[%s7062_s3 + $0x98] sm:$0xff]  }
 0x199   : > { %v5576_v61 = vpop.f32.mrf.mxu1  ;;  %v5578_v26 = vpop.f32.mrf.mxu0  ;;  %3990 = vmatmul.mubr.msk.bf16.gmra.mxu1 %vm789_vm0, %v4672_v22  ;;  %3966 = vmatmul.mubr.msk.bf16.gmra.mxu0 %vm789_vm0, %v4672_v22 }
 0x19a   : > { %7243 = vst [vmem:[#allocation75_spill] sm:$0xff] %v5576_v61  ;;  %7244 = vst [vmem:[#allocation76_spill] sm:$0xff] %v5578_v26  ;;  %1367 = vmatprep.mubr.bf16.mxu1 %v7234_v53  ;;  %1094 = vmatprep.mubr.bf16.mxu0 %v7234_v53 }
 0x19b   : > { %v5585_v35 = vpop.f32.mrf.mxu1  ;;  %v5587_v17 = vpop.f32.mrf.mxu0 }
 0x19c   : > { %7245 = vst [vmem:[#allocation77_spill] sm:$0xff] %v5585_v35  ;;  %7246 = vst [vmem:[#allocation78_spill] sm:$0xff] %v5587_v17 }
 0x19d   : > { %v5589_v32 = vpop.f32.mrf.mxu1  ;;  %v5591_v33 = vpop.f32.mrf.mxu0 }
 0x19e   : > { %7247 = vst [vmem:[#allocation79_spill] sm:$0xff] %v5589_v32  ;;  %7248 = vst [vmem:[#allocation80_spill] sm:$0xff] %v5591_v33  ;;  %v4676_v32 = vld [vmem:[%s7062_s3 + $0xa8] sm:$0xff]  }
 0x19f   : > { %v5594_v16 = vpop.f32.mrf.mxu1  ;;  %v5596_v28 = vpop.f32.mrf.mxu0 }
 0x1a0   : > { %7249 = vst [vmem:[#allocation81_spill] sm:$0xff] %v5594_v16  ;;  %7250 = vst [vmem:[#allocation82_spill] sm:$0xff] %v5596_v28 }
 0x1a1   : > { %v5599_v34 = vpop.f32.mrf.mxu1  ;;  %v5601_v57 = vpop.f32.mrf.mxu0 }
 0x1a2   : > { %7251 = vst [vmem:[#allocation83_spill] sm:$0xff] %v5599_v34  ;;  %7252 = vst [vmem:[#allocation84_spill] sm:$0xff] %v5601_v57 }
 0x1a3   : > { %v5608_v17 = vpop.f32.mrf.mxu1  ;;  %v5610_v18 = vpop.f32.mrf.mxu0 }
 0x1a4   : > { %7253 = vst [vmem:[#allocation85_spill] sm:$0xff] %v5608_v17  ;;  %7254 = vst [vmem:[#allocation86_spill] sm:$0xff] %v5610_v18  ;;  %v4675_v18 = vld [vmem:[%s7062_s3 + $0xa0] sm:$0xff]  }
 0x1a5   : > { %v5612_v60 = vpop.f32.mrf.mxu1  ;;  %v5614_v28 = vpop.f32.mrf.mxu0  ;;  %3991 = vmatmul.mubr.msk.bf16.gmra.mxu1 %vm789_vm0, %v4675_v18  ;;  %3967 = vmatmul.mubr.msk.bf16.gmra.mxu0 %vm789_vm0, %v4675_v18 }
 0x1a6   : > { %7255 = vst [vmem:[#allocation87_spill] sm:$0xff] %v5612_v60  ;;  %1377 = vmatprep.mubr.bf16.mxu1 %v7234_v53  ;;  %1104 = vmatprep.mubr.bf16.mxu0 %v7234_v53 }
 0x1a7   : > { %v5617_v7 = vpop.f32.mrf.mxu1  ;;  %v5619_v0 = vpop.f32.mrf.mxu0 }
 0x1a8   : > { %7256 = vst [vmem:[#allocation88_spill] sm:$0xff] %v5617_v7 }
 0x1a9   : > { %v5622_v20 = vpop.f32.mrf.mxu1  ;;  %v5624_v36 = vpop.f32.mrf.mxu0 }
 0x1aa   : > { %7257 = vst [vmem:[#allocation89_spill] sm:$0xff] %v5622_v20 }
 0x1ab   : > { %v5631_v58 = vpop.f32.mrf.mxu1  ;;  %v5633_v2 = vpop.f32.mrf.mxu0 }
 0x1ac   : > { %7258 = vst [vmem:[#allocation90_spill] sm:$0xff] %v5631_v58 }
 0x1ad   : > { %v5635_v5 = vpop.f32.mrf.mxu1  ;;  %v5637_v6 = vpop.f32.mrf.mxu0  ;;  %3992 = vmatmul.mubr.msk.bf16.gmra.mxu1 %vm789_vm0, %v4676_v32  ;;  %3968 = vmatmul.mubr.msk.bf16.gmra.mxu0 %vm789_vm0, %v4676_v32 }
 0x1ae   : > { %7259 = vst [vmem:[#allocation91_spill] sm:$0xff] %v5635_v5  ;;  %1387 = vmatprep.mubr.bf16.mxu1 %v7234_v53 }
 0x1af   : > { %v5640_v19 = vpop.f32.mrf.mxu1  ;;  %v5642_v61 = vpop.f32.mrf.mxu0 }
 0x1b0   : > { %7260 = vst [vmem:[#allocation92_spill] sm:$0xff] %v5640_v19  ;;  %v1408_v19 = vmax.f32 %v5614_v28, %v5619_v0  ;;  %v1418_v58 = vmax.f32 %v5637_v6, %v5642_v61 }
 0x1b1   : > { %v5645_v22 = vpop.f32.mrf.mxu1  ;;  %v5647_v43 = vpop.f32.mrf.mxu0 }
 0x1b2   : > { %7261 = vst [vmem:[#allocation93_spill] sm:$0xff] %v5645_v22 }
 0x1b3   : > { %v5654_v37 = vpop.f32.mrf.mxu1  ;;  %v5656_v34 = vpop.f32.mrf.mxu0 }
 0x1b4   : > { %7262 = vst [vmem:[#allocation94_spill] sm:$0xff] %v5654_v37  ;;  %v1413_v37 = vmax.f32 %v5624_v36, %v5633_v2 }
 0x1b5   : > { %v5660_v54 = vpop.f32.mrf.mxu1  ;;  %v5662_v60 = vpop.f32.mrf.mxu0  ;;  %3993 = vmatmul.mubr.msk.bf16.gmra.mxu1 %vm789_vm0, %v5243_v49 }
 0x1b6   : > { %v1409_v8 = vmax.f32 %v1408_v19, %v5660_v54  ;;  %1397 = vmatprep.mubr.bf16.mxu1 %v7234_v53 }
 0x1b7   : > { %v5666_v18 = vpop.f32.mrf.mxu1  ;;  %v5668_v22 = vpop.f32.mrf.mxu0 }
 0x1b8   : > { %v1410_v57 = vmax.f32 %v1409_v8, %v5666_v18  ;;  %v1428_v48 = vmax.f32 %v5662_v60, %v5668_v22 }
 0x1b9   : > { %v5674_v5 = vpop.f32.mrf.mxu1  ;;  %v5676_v33 = vpop.f32.mrf.mxu0 }
 0x1ba   : > { %v1414_v19 = vmax.f32 %v1413_v37, %v5674_v5  ;;  %1411 = vmax.xlane.f32.xlu0 %v1410_v57  ;;  %v1423_v37 = vmax.f32 %v5647_v43, %v5656_v34 }
 0x1bb   : > { %v5680_v20 = vpop.f32.mrf.mxu1  ;;  %v5682_v26 = vpop.f32.mrf.mxu0 }
 0x1bc   : > { %v1415_v7 = vmax.f32 %v1414_v19, %v5680_v20  ;;  %v1433_v40 = vmax.f32 %v5676_v33, %v5682_v26 }
 0x1bd   : > { %v5687_v17 = vpop.f32.mrf.mxu1  ;;  %v5689_v8 = vpop.f32.mrf.mxu0  ;;  %3994 = vmatmul.mubr.msk.bf16.gmra.mxu1 %vm789_vm0, %v5269_v50  ;;  %v4678_v50 = vld [vmem:[%s7066_s7 + $0x88] sm:$0xff]  }
 0x1be   : > { %v1419_v16 = vmax.f32 %v1418_v58, %v5687_v17  ;;  %1416 = vmax.xlane.f32.xlu1 %v1415_v7  ;;  %4145 = vmatpush3.bf16.msra.mxu1 %v4678_v50 }
 0x1bf   : > { %v5694_v57 = vpop.f32.mrf.mxu1  ;;  %v5696_v32 = vpop.f32.mrf.mxu0 }
 0x1c0   : > { %v1420_v19 = vmax.f32 %v1419_v16, %v5694_v57 }
 0x1c1   : > { %v5702_v35 = vpop.f32.mrf.mxu1  ;;  %v5704_v10 = vpop.f32.mrf.mxu0 }
 0x1c2   : > { %v1424_v58 = vmax.f32 %v1423_v37, %v5702_v35  ;;  %1421 = vmax.xlane.f32.xlu0 %v1420_v19 }
 0x1c3   : > { %v5707_v7 = vpop.f32.mrf.mxu1  ;;  %v5709_v49 = vpop.f32.mrf.mxu0 }
 0x1c4   : > { %v1425_v27 = vmax.f32 %v1424_v58, %v5707_v7 }
 0x1c5   : > { %v5714_v1 = vpop.f32.mrf.mxu1  ;;  %v5716_v15 = vpop.f32.mrf.mxu0 }
 0x1c6   : > { %v1429_v16 = vmax.f32 %v1428_v48, %v5714_v1  ;;  %1426 = vmax.xlane.f32.xlu0 %v1425_v27 }
 0x1c7   : > { %v5721_v37 = vpop.f32.mrf.mxu1  ;;  %v5723_v19 = vpop.f32.mrf.mxu0 }
 0x1c8   : > { %v1430_v4 = vmax.f32 %v1429_v16, %v5721_v37  ;;  %v1438_v16 = vmax.f32 %v5689_v8, %v5696_v32  ;;  %v1448_v55 = vmax.f32 %v5716_v15, %v5723_v19 }
 0x1c9   : > { %v5728_v58 = vpop.f32.mrf.mxu1  ;;  %v5730_v13 = vpop.f32.mrf.mxu0 }
 0x1ca   : > { %v1434_v11 = vmax.f32 %v1433_v40, %v5728_v58  ;;  %1431 = vmax.xlane.f32.xlu1 %v1430_v4 }
 0x1cb   : > { %v5733_v27 = vpop.f32.mrf.mxu1  ;;  %v5735_v48 = vpop.f32.mrf.mxu0 }
 0x1cc   : > { %v1435_v62 = vmax.f32 %v1434_v11, %v5733_v27  ;;  %v1443_v11 = vmax.f32 %v5704_v10, %v5709_v49 }
 0x1cd   : > { %v5746_v14 = vpop.f32.mrf.mxu1  ;;  %v5748_v40 = vpop.f32.mrf.mxu0 }
 0x1ce   : > { %v1439_v4 = vmax.f32 %v1438_v16, %v5746_v14  ;;  %1436 = vmax.xlane.f32.xlu0 %v1435_v62 }
 0x1cf   : > { %v5751_v56 = vpop.f32.mrf.mxu1  ;;  %v5753_v3 = vpop.f32.mrf.mxu0 }
 0x1d0   : > { %v1440_v45 = vmax.f32 %v1439_v4, %v5751_v56 }
 0x1d1   : > { %v5761_v52 = vpop.f32.mrf.mxu1  ;;  %v5763_v50 = vpop.f32.mrf.mxu0 }
 0x1d2   : > { %v1444_v62 = vmax.f32 %v1443_v11, %v5761_v52  ;;  %1441 = vmax.xlane.f32.xlu1 %v1440_v45  ;;  %v1453_v45 = vmax.f32 %v5730_v13, %v5735_v48 }
 0x1d3   : > { %v5766_v21 = vpop.f32.mrf.mxu1  ;;  %v5768_v16 = vpop.f32.mrf.mxu0 }
 0x1d4   : > { %v1445_v44 = vmax.f32 %v1444_v62, %v5766_v21  ;;  %v1463_v25 = vmax.f32 %v5763_v50, %v5768_v16 }
 0x1d5   : > { %v5773_v9 = vpop.f32.mrf.mxu1  ;;  %v5775_v4 = vpop.f32.mrf.mxu0 }
 0x1d6   : > { %7263 = vst [vmem:[#allocation95_spill] sm:$0xff] %v5775_v4  ;;  %v1449_v39 = vmax.f32 %v1448_v55, %v5773_v9  ;;  %1446 = vmax.xlane.f32.xlu0 %v1445_v44  ;;  %v4681_v44 = vld [vmem:[%s7066_s7 + $0x40] sm:$0xff]  }
 0x1d7   : > { %v5778_v47 = vpop.f32.mrf.mxu1  ;;  %v5780_v11 = vpop.f32.mrf.mxu0  ;;  %v4682_v55 = vld [vmem:[%s7066_s7 + $0xc0] sm:$0xff]   ;;  %4082 = vmatprep.subr.bf16.mxu0 %v4681_v44 }
 0x1d8   : > { %7264 = vst [vmem:[#allocation96_spill] sm:$0xff] %v5780_v11  ;;  %v1450_v12 = vmax.f32 %v1449_v39, %v5778_v47  ;;  %v4683_v39 = vld [vmem:[%s7066_s7] sm:$0xff]   ;;  %4146 = vmatprep.subr.bf16.mxu1 %v4682_v55 }
 0x1d9   : > { %v5785_v29 = vpop.f32.mrf.mxu1  ;;  %v5787_v63 = vpop.f32.mrf.mxu0  ;;  %4083 = vmatpush3.bf16.msra.mxu0 %v4683_v39  ;;  %4147 = vmatpush3.bf16.msra.mxu1 %v4684_v59  ;;  %v1468_v59 = vmax.f32 %v5775_v4, %v5780_v11 }
 0x1da   : > { %7265 = vst [vmem:[#allocation97_spill] sm:$0xff] %v5787_v63  ;;  %v1454_v62 = vmax.f32 %v1453_v45, %v5785_v29  ;;  %1451 = vmax.xlane.f32.xlu1 %v1450_v12  ;;  %v1458_v12 = vmax.f32 %v5748_v40, %v5753_v3 }
 0x1db   : > { %v5796_v31 = vpop.f32.mrf.mxu1  ;;  %v5809_v42 = vpop.f32.mrf.mxu0 }
 0x1dc   : > { %v1455_v45 = vmax.f32 %v1454_v62, %v5796_v31  ;;  %7266 = vst [vmem:[#allocation98_spill] sm:$0xff] %v5809_v42 }
 0x1dd   : > { %v5807_v24 = vpop.f32.mrf.mxu1  ;;  %v5819_v62 = vpop.f32.mrf.mxu0 }
 0x1de   : > { %v1459_v46 = vmax.f32 %v1458_v12, %v5807_v24  ;;  %1456 = vmax.xlane.f32.xlu0 %v1455_v45  ;;  %7267 = vst [vmem:[#allocation99_spill] sm:$0xff] %v5819_v62 }
 0x1df   : > { %v5812_v38 = vpop.f32.mrf.mxu1  ;;  %v5827_v12 = vpop.f32.mrf.mxu0 }
 0x1e0   : > { %v1460_v41 = vmax.f32 %v1459_v46, %v5812_v38  ;;  %7268 = vst [vmem:[#allocation100_spill] sm:$0xff] %v5827_v12 }
 0x1e1   : > { %v5817_v51 = vpop.f32.mrf.mxu1  ;;  %v5837_v30 = vpop.f32.mrf.mxu0 }
 0x1e2   : > { %v1464_v44 = vmax.f32 %v1463_v25, %v5817_v51  ;;  %1461 = vmax.xlane.f32.xlu1 %v1460_v41  ;;  %v1473_v25 = vmax.f32 %v5787_v63, %v5809_v42  ;;  %7270 = vst [vmem:[#allocation102_spill] sm:$0xff] %v5837_v30 }
 0x1e3   : > { %v5822_v55 = vpop.f32.mrf.mxu1 }
 0x1e4   : > { %v1465_v39 = vmax.f32 %v1464_v44, %v5822_v55 }
 0x1e5   : > { %v5829_v45 = vpop.f32.mrf.mxu1 }
 0x1e6   : > { %7269 = vst [vmem:[#allocation101_spill] sm:$0xff] %v5829_v45  ;;  %v1469_v46 = vmax.f32 %v1468_v59, %v5829_v45  ;;  %1466 = vmax.xlane.f32.xlu0 %v1465_v39  ;;  %v1478_v59 = vmax.f32 %v5819_v62, %v5827_v12  ;;  %v5847_v45 = vpop.f32.mrf.mxu0 }
 0x1e7   : > { %v5832_v23 = vpop.f32.mrf.mxu1  ;;  %7273 = vst [vmem:[#allocation105_spill] sm:$0xff] %v5847_v45 }
 0x1e8   : > { %v1470_v41 = vmax.f32 %v1469_v46, %v5832_v23 }
 0x1e9   : > { %v5839_v53 = vpop.f32.mrf.mxu1 }
 0x1ea   : > { %7271 = vst [vmem:[#allocation103_spill] sm:$0xff] %v5839_v53  ;;  %v1474_v44 = vmax.f32 %v1473_v25, %v5839_v53  ;;  %1471 = vmax.xlane.f32.xlu1 %v1470_v41  ;;  %v1483_v25 = vmax.f32 %v5837_v30, %v5847_v45 }
 0x1eb   : > { %v5842_v11 = vpop.f32.mrf.mxu1 }
 0x1ec   : > { %7272 = vst [vmem:[#allocation104_spill] sm:$0xff] %v5842_v11  ;;  %v1475_v39 = vmax.f32 %v1474_v44, %v5842_v11 }
 0x1ed   : > { %v5849_v4 = vpop.f32.mrf.mxu1 }
 0x1ee   : > { %7274 = vst [vmem:[#allocation106_spill] sm:$0xff] %v5849_v4  ;;  %v1479_v46 = vmax.f32 %v1478_v59, %v5849_v4  ;;  %1476 = vmax.xlane.f32.xlu0 %v1475_v39  ;;  %v3649_v59 = vld [vmem:[%s7064_s5] sm:$0xff]  ;;  %v3651_v39 = vld [vmem:[%s7064_s5 + $0x10] sm:$0xff] }
 0x1ef   : > { %v5852_v42 = vpop.f32.mrf.mxu1 }
 0x1f0   : > { %7275 = vst [vmem:[#allocation107_spill] sm:$0xff] %v5852_v42  ;;  %v1480_v41 = vmax.f32 %v1479_v46, %v5852_v42  ;;  %v3652_v46 = vld [vmem:[%s7064_s5 + $0x18] sm:$0xff] }
 0x1f1   : > { %v5857_v53 = vpop.f32.mrf.mxu1 }
 0x1f2   : > { %7276 = vst [vmem:[#allocation108_spill] sm:$0xff] %v5857_v53  ;;  %v1484_v12 = vmax.f32 %v1483_v25, %v5857_v53  ;;  %1481 = vmax.xlane.f32.xlu1 %v1480_v41  ;;  %v3650_v25 = vld [vmem:[%s7064_s5 + $0x8] sm:$0xff]  ;;  %v2224_v41 = vlaneseq }
 0x1f3   : > { %v5860_v44 = vpop.f32.mrf.mxu1 }
 0x1f4   : > { %7277 = vst [vmem:[#allocation109_spill] sm:$0xff] %v5860_v44  ;;  %v1485_v62 = vmax.f32 %v1484_v12, %v5860_v44 }
 0x1f6   : > { %1486 = vmax.xlane.f32.xlu0 %v1485_v62  ;;  %v4919_v62 = vmov 1983009808  }
 0x1f7   : > { %v2222_v12 = vunpack.c.l.s4 %v4919_v62 }
 0x1f9   : > { %v2223_v44 = vunpack.c.0.s8 %v2222_v12 }
 0x203   : > { %3655 = vperm.xlu1 %4628, %v3649_v59   ;;  %v2225_v59 = vshrl.u32 %v2224_v41, 7 }
 0x205   : > { %v5875_v53 = vsub.s32 %v2223_v44, %v2225_v59 }
 0x207   : > { %3665 = vperm.xlu1 %4628, %v3651_v39   ;;  %7278 = vst [vmem:[#allocation110_spill] sm:$0xff] %v5875_v53  ;;  %v5880_v39 = vld [vmem:[%s7067_s8] sm:$0xff] }
 0x208   : > { %7279 = vst [vmem:[#allocation111_spill] sm:$0xff] %v5880_v39  ;;  %v5884_v45 = vrot.slane %v5880_v39, %v5875_v53 }
 0x20b   : > { %3670 = vperm.xlu1 %4628, %v3652_v46   ;;  %v2235_v46 = vcombine.high %v5884_v45, %v5884_v45 }
 0x20c   : > { %3660 = vperm.xlu0 %4627, %v3650_v25  }
 0x20d   : > { %4027 = vmatprep.subr.msk.bf16.mxu0 %vm2262_vm1, %v2235_v46 }
 0x243   : > { %v1412_v25 = vpop.xlane.xlu0 %1411 }
 0x244   : > { %v1488_v62 = vsub.f32 %v5614_v28, %v1412_v25  ;;  %v1489_v44 = vsub.f32 %v5619_v0, %v1412_v25  ;;  %v1490_v12 = vsub.f32 %v5660_v54, %v1412_v25  ;;  %v1491_v41 = vsub.f32 %v5666_v18, %v1412_v25 }
 0x246   : > { %v1552_v59 = vmul.f32 1.442695, %v1488_v62  ;;  %v1554_v30 = vmul.f32 1.442695, %v1489_v44  ;;  %v1556_v42 = vmul.f32 1.442695, %v1490_v12 }
 0x247   : > { %v1558_v53 = vmul.f32 1.442695, %v1491_v41  ;;  %v1417_v39 = vpop.xlane.xlu1 %1416 }
 0x248   : > { %4696 = vpow2.f32 %v1552_v59  ;;  %v1492_v4 = vsub.f32 %v5624_v36, %v1417_v39  ;;  %v1493_v11 = vsub.f32 %v5633_v2, %v1417_v39  ;;  %v1494_v46 = vsub.f32 %v5674_v5, %v1417_v39 }
 0x249   : > { %4698 = vpow2.f32 %v1554_v30  ;;  %v1495_v28 = vsub.f32 %v5680_v20, %v1417_v39  ;;  %v5901_v20 = vpop.f32.mrf.mxu1 }
 0x24a   : > { %4700 = vpow2.f32 %v1556_v42  ;;  %v1560_v0 = vmul.f32 1.442695, %v1492_v4  ;;  %v1562_v54 = vmul.f32 1.442695, %v1493_v11  ;;  %v1564_v63 = vmul.f32 1.442695, %v1494_v46 }
 0x24b   : > { %4702 = vpow2.f32 %v1558_v53  ;;  %v1566_v18 = vmul.f32 1.442695, %v1495_v28  ;;  %v1422_v25 = vpop.xlane.xlu0 %1421  ;;  %7280 = vst [vmem:[#allocation112_spill] sm:$0xff] %v5901_v20 }
 0x24c   : > { %4704 = vpow2.f32 %v1560_v0  ;;  %v1496_v62 = vsub.f32 %v5637_v6, %v1422_v25  ;;  %v1497_v44 = vsub.f32 %v5642_v61, %v1422_v25  ;;  %v1498_v36 = vsub.f32 %v5687_v17, %v1422_v25  ;;  %v5906_v17 = vpop.f32.mrf.mxu1 }
 0x24d   : > { %4706 = vpow2.f32 %v1562_v54  ;;  %v1499_v5 = vsub.f32 %v5694_v57, %v1422_v25  ;;  %7281 = vst [vmem:[#allocation113_spill] sm:$0xff] %v5906_v17  ;;  %v5909_v57 = vpop.f32.mrf.mxu0 }
 0x24e   : > { %4708 = vpow2.f32 %v1564_v63  ;;  %v1568_v30 = vmul.f32 1.442695, %v1496_v62  ;;  %v1570_v2 = vmul.f32 1.442695, %v1497_v44  ;;  %v1572_v42 = vmul.f32 1.442695, %v1498_v36  ;;  %v5911_v59 = vpop.f32.mrf.mxu1 }
 0x24f   : > { %4710 = vpow2.f32 %v1566_v18  ;;  %v1574_v53 = vmul.f32 1.442695, %v1499_v5  ;;  %v1427_v4 = vpop.xlane.xlu0 %1426  ;;  %7282 = vst [vmem:[#allocation114_spill] sm:$0xff] %v5911_v59 }
 0x250   : > { %4712 = vpow2.f32 %v1568_v30  ;;  %v1500_v11 = vsub.f32 %v5647_v43, %v1427_v4  ;;  %v1501_v6 = vsub.f32 %v5656_v34, %v1427_v4  ;;  %v1502_v61 = vsub.f32 %v5702_v35, %v1427_v4  ;;  %v5915_v35 = vpop.f32.mrf.mxu0  ;;  %v5920_v54 = vpop.f32.mrf.mxu1 }
 0x251   : > { %4714 = vpow2.f32 %v1570_v2  ;;  %v1503_v63 = vsub.f32 %v5707_v7, %v1427_v4  ;;  %7283 = vst [vmem:[#allocation115_spill] sm:$0xff] %v5920_v54 }
 0x252   : > { %4716 = vpow2.f32 %v1572_v42  ;;  %v1576_v39 = vmul.f32 1.442695, %v1500_v11  ;;  %v1578_v12 = vmul.f32 1.442695, %v1501_v6  ;;  %v1580_v41 = vmul.f32 1.442695, %v1502_v61  ;;  %v5923_v62 = vpop.f32.mrf.mxu0  ;;  %v5925_v2 = vpop.f32.mrf.mxu1 }
 0x253   : > { %4718 = vpow2.f32 %v1574_v53  ;;  %v1582_v46 = vmul.f32 1.442695, %v1503_v63  ;;  %v1432_v43 = vpop.xlane.xlu1 %1431  ;;  %7284 = vst [vmem:[#allocation116_spill] sm:$0xff] %v5925_v2 }
 0x254   : > { %4720 = vpow2.f32 %v1576_v39  ;;  %v1504_v28 = vsub.f32 %v5662_v60, %v1432_v43  ;;  %v1505_v7 = vsub.f32 %v5668_v22, %v1432_v43  ;;  %v1506_v0 = vsub.f32 %v5714_v1, %v1432_v43  ;;  %v5929_v53 = vpop.f32.mrf.mxu0  ;;  %v5934_v61 = vpop.f32.mrf.mxu1 }
 0x255   : > { %v4697_v18 = vpop.eup %4696  ;;  %4722 = vpow2.f32 %v1578_v12  ;;  %v1507_v25 = vsub.f32 %v5721_v37, %v1432_v43  ;;  %7285 = vst [vmem:[#allocation117_spill] sm:$0xff] %v5934_v61  ;;  %v2264_v12 = vsel %vm2262_vm1, %v5884_v45, 0 }
 0x256   : > { %v4699_v44 = vpop.eup %4698  ;;  %4724 = vpow2.f32 %v1580_v41  ;;  %v1584_v36 = vmul.f32 1.442695, %v1504_v28  ;;  %v1586_v5 = vmul.f32 1.442695, %v1505_v7  ;;  %v1588_v30 = vmul.f32 1.442695, %v1506_v0  ;;  %v5939_v41 = vpop.f32.mrf.mxu0 }
 0x257   : > { %v4701_v60 = vpop.eup %4700  ;;  %4726 = vpow2.f32 %v1582_v46  ;;  %v1590_v22 = vmul.f32 1.442695, %v1507_v25  ;;  %v1437_v42 = vpop.xlane.xlu0 %1436 }
 0x258   : > { %v4703_v4 = vpop.eup %4702  ;;  %4728 = vpow2.f32 %v1584_v36  ;;  %v1508_v37 = vsub.f32 %v5676_v33, %v1437_v42  ;;  %v1509_v11 = vsub.f32 %v5682_v26, %v1437_v42  ;;  %v1510_v6 = vsub.f32 %v5728_v58, %v1437_v42  ;;  %v5941_v7 = vpop.f32.mrf.mxu1 }
 0x259   : > { %v4705_v63 = vpop.eup %4704  ;;  %4730 = vpow2.f32 %v1586_v5  ;;  %v1511_v39 = vsub.f32 %v5733_v27, %v1437_v42  ;;  %7286 = vst [vmem:[#allocation118_spill] sm:$0xff] %v5941_v7  ;;  %v5947_v27 = vpop.f32.mrf.mxu0 }
 0x25a   : > { %v4707_v46 = vpop.eup %4706  ;;  %4732 = vpow2.f32 %v1588_v30  ;;  %v1592_v43 = vmul.f32 1.442695, %v1508_v37  ;;  %v1594_v28 = vmul.f32 1.442695, %v1509_v11  ;;  %v1596_v33 = vmul.f32 1.442695, %v1510_v6  ;;  %v5952_v37 = vpop.f32.mrf.mxu1 }
 0x25b   : > { %v4709_v26 = vpop.eup %4708  ;;  %4734 = vpow2.f32 %v1590_v22  ;;  %v1598_v58 = vmul.f32 1.442695, %v1511_v39  ;;  %v1442_v0 = vpop.xlane.xlu1 %1441  ;;  %v5943_v25 = vpack.c.bf16 %v4707_v46, %v4699_v44  ;;  %v5945_v36 = vpack.c.bf16 %v4705_v63, %v4697_v18  ;;  %7287 = vst [vmem:[#allocation119_spill] sm:$0xff] %v5952_v37 }
 0x25c   : > { %v4711_v45 = vpop.eup %4710  ;;  %4736 = vpow2.f32 %v1592_v43  ;;  %v1512_v5 = vsub.f32 %v5689_v8, %v1442_v0  ;;  %v1513_v30 = vsub.f32 %v5696_v32, %v1442_v0  ;;  %v1514_v42 = vsub.f32 %v5746_v14, %v1442_v0  ;;  %v5960_v6 = vpop.f32.mrf.mxu0 }
 0x25d   : > { %v4713_v11 = vpop.eup %4712  ;;  %4738 = vpow2.f32 %v1594_v28  ;;  %v1515_v22 = vsub.f32 %v5751_v56, %v1442_v0  ;;  %2032 = vmatprep.mubr.bf16.mxu0 %v5943_v25  ;;  %v5956_v18 = vpack.c.bf16 %v4711_v45, %v4703_v4  ;;  %v5958_v44 = vpack.c.bf16 %v4709_v26, %v4701_v60  ;;  %v5963_v14 = vpop.f32.mrf.mxu1 }
 0x25e   : > { %v4715_v63 = vpop.eup %4714  ;;  %4740 = vpow2.f32 %v1596_v33  ;;  %v1600_v8 = vmul.f32 1.442695, %v1512_v5  ;;  %v1602_v32 = vmul.f32 1.442695, %v1513_v30  ;;  %v1604_v39 = vmul.f32 1.442695, %v1514_v42  ;;  %2033 = vmatmul.mubr.bf16.vlgmr.msra.gmra.mxu0 %v5945_v36  ;;  %v5968_v43 = vpop.f32.mrf.mxu0 }
 0x25f   : > { %7288 = vst [vmem:[#allocation120_spill] sm:$0xff] %v5956_v18  ;;  %7289 = vst [vmem:[#allocation121_spill] sm:$0xff] %v5958_v44  ;;  %v4717_v46 = vpop.eup %4716  ;;  %4742 = vpow2.f32 %v1598_v58  ;;  %v1606_v56 = vmul.f32 1.442695, %v1515_v22  ;;  %2129 = vmatprep.mubr.bf16.mxu1 %v5956_v18  ;;  %v1447_v4 = vpop.xlane.xlu0 %1446  ;;  %2290 = vmatpush1.bf16.msra.mxu0 %v2264_v12 }
 0x260   : > { %7290 = vst [vmem:[#allocation122_spill] sm:$0xff] %v5963_v14  ;;  %v4719_v28 = vpop.eup %4718  ;;  %4744 = vpow2.f32 %v1600_v8  ;;  %2130 = vmatmul.mubr.bf16.vlgmr.msra.gmra.mxu1 %v5958_v44  ;;  %v1516_v33 = vsub.f32 %v5704_v10, %v1447_v4  ;;  %v1517_v26 = vsub.f32 %v5709_v49, %v1447_v4  ;;  %v1518_v58 = vsub.f32 %v5761_v52, %v1447_v4  ;;  %v5974_v0 = vpop.f32.mrf.mxu1  ;;  %v7319_v14 = vld [vmem:[#allocation100_spill] sm:$0xff] }
 0x261   : > { %7291 = vst [vmem:[#allocation123_spill] sm:$0xff] %v5974_v0  ;;  %v4721_v45 = vpop.eup %4720  ;;  %4746 = vpow2.f32 %v1602_v32  ;;  %v1519_v12 = vsub.f32 %v5766_v21, %v1447_v4  ;;  %v5979_v30 = vpop.f32.mrf.mxu0 }
 0x262   : > { %v4723_v42 = vpop.eup %4722  ;;  %4748 = vpow2.f32 %v1604_v39  ;;  %v1608_v22 = vmul.f32 1.442695, %v1516_v33  ;;  %v1610_v8 = vmul.f32 1.442695, %v1517_v26  ;;  %v1612_v10 = vmul.f32 1.442695, %v1518_v58  ;;  %v5981_v60 = vpop.f32.mrf.mxu1 }
 0x263   : > { %7292 = vst [vmem:[#allocation124_spill] sm:$0xff] %v5981_v60  ;;  %v4725_v49 = vpop.eup %4724  ;;  %4750 = vpow2.f32 %v1606_v56  ;;  %v1614_v52 = vmul.f32 1.442695, %v1519_v12  ;;  %v1452_v34 = vpop.xlane.xlu1 %1451  ;;  %v5983_v1 = vpack.c.bf16 %v4723_v42, %v4715_v63  ;;  %v5985_v32 = vpack.c.bf16 %v4721_v45, %v4713_v11 }
 0x264   : > { %v5987_v21 = vpop.f32.mrf.mxu0  ;;  %v4727_v4 = vpop.eup %4726  ;;  %4752 = vpow2.f32 %v1608_v22  ;;  %v1520_v5 = vsub.f32 %v5716_v15, %v1452_v34  ;;  %v1521_v39 = vsub.f32 %v5723_v19, %v1452_v34  ;;  %v1522_v33 = vsub.f32 %v5773_v9, %v1452_v34 }
 0x265   : > { %v5992_v26 = vpop.f32.mrf.mxu1  ;;  %v4729_v58 = vpop.eup %4728  ;;  %4754 = vpow2.f32 %v1610_v8  ;;  %v1523_v56 = vsub.f32 %v5778_v47, %v1452_v34  ;;  %2040 = vmatprep.mubr.bf16.mxu0 %v5983_v1  ;;  %v5996_v11 = vpack.c.bf16 %v4727_v4, %v4719_v28  ;;  %v5998_v63 = vpack.c.bf16 %v4725_v49, %v4717_v46 }
 0x266   : > { %7293 = vst [vmem:[#allocation125_spill] sm:$0xff] %v5992_v26  ;;  %v6000_v45 = vpop.f32.mrf.mxu0  ;;  %v4731_v12 = vpop.eup %4730  ;;  %4756 = vpow2.f32 %v1612_v10  ;;  %v1616_v15 = vmul.f32 1.442695, %v1520_v5  ;;  %v1618_v19 = vmul.f32 1.442695, %v1521_v39  ;;  %2041 = vmatmul.mubr.bf16.gmra.mxu0 %v5985_v32 }
 0x267   : > { %7294 = vst [vmem:[#allocation126_spill] sm:$0xff] %v5996_v11  ;;  %7295 = vst [vmem:[#allocation127_spill] sm:$0xff] %v5998_v63  ;;  %v1620_v42 = vmul.f32 1.442695, %v1522_v33  ;;  %v6003_v9 = vpop.f32.mrf.mxu1  ;;  %v4733_v22 = vpop.eup %4732  ;;  %4758 = vpow2.f32 %v1614_v52  ;;  %v1622_v47 = vmul.f32 1.442695, %v1523_v56  ;;  %2137 = vmatprep.mubr.bf16.mxu1 %v5996_v11 }
 0x268   : > { %7296 = vst [vmem:[#allocation128_spill] sm:$0xff] %v6003_v9  ;;  %v1457_v34 = vpop.xlane.xlu0 %1456  ;;  %v6008_v28 = vpop.f32.mrf.mxu0  ;;  %4760 = vpow2.f32 %v1616_v15  ;;  %2138 = vmatmul.mubr.bf16.gmra.mxu1 %v5998_v63 }
 0x269   : > { %v4735_v8 = vpop.eup %4734  ;;  %v1524_v5 = vsub.f32 %v5730_v13, %v1457_v34  ;;  %v1525_v10 = vsub.f32 %v5735_v48, %v1457_v34  ;;  %v1526_v49 = vsub.f32 %v5785_v29, %v1457_v34  ;;  %v6014_v52 = vpop.f32.mrf.mxu1  ;;  %4762 = vpow2.f32 %v1618_v19 }
 0x26a   : > { %7297 = vst [vmem:[#allocation129_spill] sm:$0xff] %v6014_v52  ;;  %v4737_v4 = vpop.eup %4736  ;;  %v1527_v39 = vsub.f32 %v5796_v31, %v1457_v34  ;;  %v6019_v56 = vpop.f32.mrf.mxu0  ;;  %4764 = vpow2.f32 %v1620_v42 }
 0x26b   : > { %v4739_v15 = vpop.eup %4738  ;;  %v1624_v46 = vmul.f32 1.442695, %v1524_v5  ;;  %v1626_v26 = vmul.f32 1.442695, %v1525_v10  ;;  %v1628_v13 = vmul.f32 1.442695, %v1526_v49  ;;  %v6021_v0 = vpop.f32.mrf.mxu1  ;;  %4766 = vpow2.f32 %v1622_v47 }
 0x26c   : > { %7298 = vst [vmem:[#allocation130_spill] sm:$0xff] %v6021_v0  ;;  %v4741_v48 = vpop.eup %4740  ;;  %v1630_v29 = vmul.f32 1.442695, %v1527_v39  ;;  %v1462_v52 = vpop.xlane.xlu1 %1461  ;;  %v6023_v37 = vpack.c.bf16 %v4739_v15, %v4731_v12  ;;  %v6025_v19 = vpack.c.bf16 %v4737_v4, %v4729_v58 }
 0x26d   : > { %v6027_v31 = vpop.f32.mrf.mxu0  ;;  %v4743_v34 = vpop.eup %4742  ;;  %4768 = vpow2.f32 %v1624_v46  ;;  %v1528_v33 = vsub.f32 %v5748_v40, %v1462_v52  ;;  %v1529_v42 = vsub.f32 %v5753_v3, %v1462_v52  ;;  %v1530_v5 = vsub.f32 %v5807_v24, %v1462_v52 }
 0x26e   : > { %v6032_v10 = vpop.f32.mrf.mxu1  ;;  %v4745_v49 = vpop.eup %4744  ;;  %4770 = vpow2.f32 %v1626_v26  ;;  %v1531_v47 = vsub.f32 %v5812_v38, %v1462_v52  ;;  %2048 = vmatprep.mubr.bf16.mxu0 %v6023_v37  ;;  %v6036_v58 = vpack.c.bf16 %v4743_v34, %v4735_v8  ;;  %v6038_v12 = vpack.c.bf16 %v4741_v48, %v4733_v22 }
 0x26f   : > { %7299 = vst [vmem:[#allocation131_spill] sm:$0xff] %v6032_v10  ;;  %v6040_v4 = vpop.f32.mrf.mxu0  ;;  %v4747_v46 = vpop.eup %4746  ;;  %4772 = vpow2.f32 %v1628_v13  ;;  %v1632_v40 = vmul.f32 1.442695, %v1528_v33  ;;  %v1634_v3 = vmul.f32 1.442695, %v1529_v42  ;;  %2049 = vmatmul.mubr.bf16.gmra.mxu0 %v6025_v19 }
 0x270   : > { %7300 = vst [vmem:[#allocation132_spill] sm:$0xff] %v6036_v58  ;;  %7301 = vst [vmem:[#allocation133_spill] sm:$0xff] %v6038_v12  ;;  %v1636_v39 = vmul.f32 1.442695, %v1530_v5  ;;  %v6043_v24 = vpop.f32.mrf.mxu1  ;;  %v4749_v26 = vpop.eup %4748  ;;  %4774 = vpow2.f32 %v1630_v29  ;;  %v1638_v38 = vmul.f32 1.442695, %v1531_v47  ;;  %2145 = vmatprep.mubr.bf16.mxu1 %v6036_v58 }
 0x271   : > { %7302 = vst [vmem:[#allocation134_spill] sm:$0xff] %v6043_v24  ;;  %v1467_v8 = vpop.xlane.xlu0 %1466  ;;  %v6048_v52 = vpop.f32.mrf.mxu0  ;;  %4776 = vpow2.f32 %v1632_v40  ;;  %2146 = vmatmul.mubr.bf16.gmra.mxu1 %v6038_v12  ;;  %v7305_v5 = vld [vmem:[#allocation95_spill] sm:$0xff] }
 0x272   : > { %v4751_v15 = vpop.eup %4750  ;;  %v1532_v33 = vsub.f32 %v5763_v50, %v1467_v8  ;;  %v1533_v13 = vsub.f32 %v5768_v16, %v1467_v8  ;;  %v1534_v48 = vsub.f32 %v5817_v51, %v1467_v8  ;;  %v6054_v29 = vpop.f32.mrf.mxu1  ;;  %4778 = vpow2.f32 %v1634_v3 }
 0x273   : > { %7303 = vst [vmem:[#allocation135_spill] sm:$0xff] %v6054_v29  ;;  %v4753_v34 = vpop.eup %4752  ;;  %v1535_v42 = vsub.f32 %v5822_v55, %v1467_v8  ;;  %v6059_v47 = vpop.f32.mrf.mxu0  ;;  %4780 = vpow2.f32 %v1636_v39  ;;  %v7306_v39 = vld [vmem:[#allocation96_spill] sm:$0xff] }
 0x274   : > { %v4755_v40 = vpop.eup %4754  ;;  %v1640_v22 = vmul.f32 1.442695, %v1532_v33  ;;  %v1642_v10 = vmul.f32 1.442695, %v1533_v13  ;;  %v1644_v50 = vmul.f32 1.442695, %v1534_v48  ;;  %v6061_v61 = vpop.f32.mrf.mxu1  ;;  %4782 = vpow2.f32 %v1638_v38 }
 0x275   : > { %7304 = vst [vmem:[#allocation136_spill] sm:$0xff] %v6061_v61  ;;  %v4757_v16 = vpop.eup %4756  ;;  %v1646_v51 = vmul.f32 1.442695, %v1535_v42  ;;  %v1472_v29 = vpop.xlane.xlu1 %1471  ;;  %v6063_v18 = vpack.c.bf16 %v4755_v40, %v4747_v46  ;;  %v6065_v3 = vpack.c.bf16 %v4753_v34, %v4745_v49  ;;  %v7307_v13 = vld [vmem:[#allocation101_spill] sm:$0xff] }
 0x276   : > { %v6067_v55 = vpop.f32.mrf.mxu0  ;;  %v4759_v8 = vpop.eup %4758  ;;  %4784 = vpow2.f32 %v1640_v22  ;;  %v1536_v11 = vsub.f32 %v7305_v5, %v1472_v29  ;;  %v1537_v33 = vsub.f32 %v7306_v39, %v1472_v29  ;;  %v1538_v48 = vsub.f32 %v7307_v13, %v1472_v29  ;;  %v7314_v13 = vld [vmem:[#allocation103_spill] sm:$0xff] }
 0x277   : > { %v6072_v58 = vpop.f32.mrf.mxu1  ;;  %v4761_v54 = vpop.eup %4760  ;;  %4786 = vpow2.f32 %v1642_v10  ;;  %v1539_v38 = vsub.f32 %v5832_v23, %v1472_v29  ;;  %2056 = vmatprep.mubr.bf16.mxu0 %v6063_v18  ;;  %v6076_v49 = vpack.c.bf16 %v4759_v8, %v4751_v15  ;;  %v6078_v46 = vpack.c.bf16 %v4757_v16, %v4749_v26  ;;  %v7313_v8 = vld [vmem:[#allocation98_spill] sm:$0xff] }
 0x278   : > { %7308 = vst [vmem:[#allocation95_spill] sm:$0xff] %v6072_v58  ;;  %v6080_v34 = vpop.f32.mrf.mxu0  ;;  %v4763_v22 = vpop.eup %4762  ;;  %4788 = vpow2.f32 %v1644_v50  ;;  %v1648_v42 = vmul.f32 1.442695, %v1536_v11  ;;  %v1650_v5 = vmul.f32 1.442695, %v1537_v33  ;;  %2057 = vmatmul.mubr.bf16.gmra.mxu0 %v6065_v3  ;;  %v7312_v11 = vld [vmem:[#allocation97_spill] sm:$0xff] }
 0x279   : > { %7309 = vst [vmem:[#allocation96_spill] sm:$0xff] %v6076_v49  ;;  %7310 = vst [vmem:[#allocation101_spill] sm:$0xff] %v6078_v46  ;;  %v1652_v40 = vmul.f32 1.442695, %v1538_v48  ;;  %v6083_v39 = vpop.f32.mrf.mxu1  ;;  %v4765_v10 = vpop.eup %4764  ;;  %4790 = vpow2.f32 %v1646_v51  ;;  %v1654_v23 = vmul.f32 1.442695, %v1539_v38  ;;  %2153 = vmatprep.mubr.bf16.mxu1 %v6076_v49 }
 0x27a   : > { %7311 = vst [vmem:[#allocation137_spill] sm:$0xff] %v6083_v39  ;;  %v1477_v15 = vpop.xlane.xlu0 %1476  ;;  %v6088_v29 = vpop.f32.mrf.mxu0  ;;  %4792 = vpow2.f32 %v1648_v42  ;;  %2154 = vmatmul.mubr.bf16.gmra.mxu1 %v6078_v46  ;;  %v7316_v58 = vld [vmem:[#allocation104_spill] sm:$0xff] }
 0x27b   : > { %v4767_v16 = vpop.eup %4766  ;;  %v1540_v50 = vsub.f32 %v7312_v11, %v1477_v15  ;;  %v1541_v33 = vsub.f32 %v7313_v8, %v1477_v15  ;;  %v1542_v48 = vsub.f32 %v7314_v13, %v1477_v15  ;;  %v6094_v51 = vpop.f32.mrf.mxu1  ;;  %4794 = vpow2.f32 %v1650_v5 }
 0x27c   : > { %7315 = vst [vmem:[#allocation97_spill] sm:$0xff] %v6094_v51  ;;  %v4769_v38 = vpop.eup %4768  ;;  %v1543_v49 = vsub.f32 %v7316_v58, %v1477_v15  ;;  %v6099_v17 = vpop.f32.mrf.mxu0  ;;  %4796 = vpow2.f32 %v1652_v40  ;;  %v7318_v15 = vld [vmem:[#allocation99_spill] sm:$0xff]  ;;  %v7320_v40 = vld [vmem:[#allocation106_spill] sm:$0xff] }
 0x27d   : > { %v4771_v42 = vpop.eup %4770  ;;  %v1656_v24 = vmul.f32 1.442695, %v1540_v50  ;;  %v1658_v61 = vmul.f32 1.442695, %v1541_v33  ;;  %v1660_v11 = vmul.f32 1.442695, %v1542_v48  ;;  %v6101_v9 = vpop.f32.mrf.mxu1  ;;  %4798 = vpow2.f32 %v1654_v23 }
 0x27e   : > { %7317 = vst [vmem:[#allocation98_spill] sm:$0xff] %v6101_v9  ;;  %v4773_v8 = vpop.eup %4772  ;;  %v1662_v13 = vmul.f32 1.442695, %v1543_v49  ;;  %v1482_v51 = vpop.xlane.xlu1 %1481  ;;  %v6103_v0 = vpack.c.bf16 %v4771_v42, %v4763_v22  ;;  %v6105_v5 = vpack.c.bf16 %v4769_v38, %v4761_v54  ;;  %v7322_v49 = vld [vmem:[#allocation107_spill] sm:$0xff] }
 0x27f   : > { %v4775_v58 = vpop.eup %4774  ;;  %4800 = vpow2.f32 %v1656_v24  ;;  %v1544_v26 = vsub.f32 %v7318_v15, %v1482_v51  ;;  %v1545_v60 = vsub.f32 %v7319_v14, %v1482_v51  ;;  %v1546_v50 = vsub.f32 %v7320_v40, %v1482_v51  ;;  %v6110_v33 = vpop.f32.mrf.mxu1 }
 0x280   : > { %7321 = vst [vmem:[#allocation103_spill] sm:$0xff] %v6110_v33  ;;  %v6112_v48 = vpop.f32.mrf.mxu0  ;;  %v4777_v2 = vpop.eup %4776  ;;  %4802 = vpow2.f32 %v1658_v61  ;;  %v1547_v23 = vsub.f32 %v7322_v49, %v1482_v51  ;;  %2064 = vmatprep.mubr.bf16.mxu0 %v6103_v0  ;;  %v6116_v54 = vpack.c.bf16 %v4775_v58, %v4767_v16  ;;  %v6118_v22 = vpack.c.bf16 %v4773_v8, %v4765_v10  ;;  %v7328_v58 = vld [vmem:[#allocation108_spill] sm:$0xff]  ;;  %v7330_v33 = vld [vmem:[#allocation109_spill] sm:$0xff] }
 0x281   : > { %v4779_v24 = vpop.eup %4778  ;;  %4804 = vpow2.f32 %v1660_v11  ;;  %v1664_v38 = vmul.f32 1.442695, %v1544_v26  ;;  %v1666_v14 = vmul.f32 1.442695, %v1545_v60  ;;  %v1668_v42 = vmul.f32 1.442695, %v1546_v50  ;;  %2065 = vmatmul.mubr.bf16.gmra.mxu0 %v6105_v5  ;;  %v6121_v15 = vpop.f32.mrf.mxu1 }
 0x282   : > { %7323 = vst [vmem:[#allocation104_spill] sm:$0xff] %v6116_v54  ;;  %7324 = vst [vmem:[#allocation99_spill] sm:$0xff] %v6118_v22  ;;  %v4781_v40 = vpop.eup %4780  ;;  %4806 = vpow2.f32 %v1662_v13  ;;  %v1670_v61 = vmul.f32 1.442695, %v1547_v23  ;;  %2161 = vmatprep.mubr.bf16.mxu1 %v6116_v54  ;;  %v1487_v51 = vpop.xlane.xlu0 %1486  ;;  %v7326_v26 = vld [vmem:[#allocation102_spill] sm:$0xff]  ;;  %v7327_v11 = vld [vmem:[#allocation105_spill] sm:$0xff] }
 0x283   : > { %7325 = vst [vmem:[#allocation100_spill] sm:$0xff] %v6121_v15  ;;  %v4783_v10 = vpop.eup %4782  ;;  %4808 = vpow2.f32 %v1664_v38  ;;  %2162 = vmatmul.mubr.bf16.gmra.mxu1 %v6118_v22  ;;  %v1548_v60 = vsub.f32 %v7326_v26, %v1487_v51  ;;  %v1549_v8 = vsub.f32 %v7327_v11, %v1487_v51  ;;  %v1550_v50 = vsub.f32 %v7328_v58, %v1487_v51  ;;  %v6130_v49 = vpop.f32.mrf.mxu1 }
 0x284   : > { %7329 = vst [vmem:[#allocation106_spill] sm:$0xff] %v6130_v49  ;;  %v6132_v13 = vpop.f32.mrf.mxu0  ;;  %v4785_v23 = vpop.eup %4784  ;;  %4810 = vpow2.f32 %v1666_v14  ;;  %v1551_v54 = vsub.f32 %v7330_v33, %v1487_v51 }
 0x285   : > { %v4787_v38 = vpop.eup %4786  ;;  %4812 = vpow2.f32 %v1668_v42  ;;  %v1672_v39 = vmul.f32 1.442695, %v1548_v60  ;;  %v1674_v9 = vmul.f32 1.442695, %v1549_v8  ;;  %v1676_v26 = vmul.f32 1.442695, %v1550_v50  ;;  %v6137_v7 = vpop.f32.mrf.mxu1 }
 0x286   : > { %7331 = vst [vmem:[#allocation107_spill] sm:$0xff] %v6137_v7  ;;  %v4789_v11 = vpop.eup %4788  ;;  %4814 = vpow2.f32 %v1670_v61  ;;  %v1678_v58 = vmul.f32 1.442695, %v1551_v54  ;;  %v6139_v49 = vpack.c.bf16 %v4787_v38, %v4779_v24  ;;  %v6141_v44 = vpack.c.bf16 %v4785_v23, %v4777_v2 }
 0x287   : > { %v4791_v14 = vpop.eup %4790  ;;  %4816 = vpow2.f32 %v1672_v39  ;;  %v6143_v33 = vpack.c.bf16 %v4789_v11, %v4781_v40  ;;  %v6147_v42 = vpop.f32.mrf.mxu1 }
 0x288   : > { %7333 = vst [vmem:[#allocation105_spill] sm:$0xff] %v6147_v42  ;;  %v4793_v60 = vpop.eup %4792  ;;  %4818 = vpow2.f32 %v1674_v9  ;;  %2072 = vmatprep.mubr.bf16.mxu0 %v6139_v49  ;;  %v6150_v8 = vpack.c.bf16 %v4791_v14, %v4783_v10  ;;  %v7342_v42 = vmov 0  }
 0x289   : > { %7332 = vst [vmem:[#allocation102_spill] sm:$0xff] %v6143_v33  ;;  %v4795_v54 = vpop.eup %4794  ;;  %4820 = vpow2.f32 %v1676_v26  ;;  %2073 = vmatmul.mubr.bf16.gmra.mxu0 %v6141_v44  ;;  %v6153_v2 = vpop.f32.mrf.mxu1 }
 0x28a   : > { %7334 = vst [vmem:[#allocation108_spill] sm:$0xff] %v6150_v8  ;;  %7335 = vst [vmem:[#allocation109_spill] sm:$0xff] %v6153_v2  ;;  %v4797_v39 = vpop.eup %4796  ;;  %4822 = vpow2.f32 %v1678_v58  ;;  %2169 = vmatprep.mubr.bf16.mxu1 %v6150_v8 }
 0x28b   : > { %v4799_v24 = vpop.eup %4798  ;;  %2170 = vmatmul.mubr.bf16.gmra.mxu1 %v6143_v33  ;;  %v6157_v40 = vpop.f32.mrf.mxu1 }
 0x28c   : > { %7336 = vst [vmem:[#allocation138_spill] sm:$0xff] %v6157_v40  ;;  %v4801_v9 = vpop.eup %4800 }
 0x28d   : > { %v4803_v61 = vpop.eup %4802  ;;  %v6159_v50 = vpack.c.bf16 %v4801_v9, %v4793_v60  ;;  %v6161_v10 = vpop.f32.mrf.mxu1 }
 0x28e   : > { %7337 = vst [vmem:[#allocation139_spill] sm:$0xff] %v6161_v10  ;;  %v4805_v23 = vpop.eup %4804  ;;  %v6163_v38 = vpack.c.bf16 %v4803_v61, %v4795_v54 }
 0x28f   : > { %v4807_v11 = vpop.eup %4806  ;;  %v6167_v58 = vpack.c.bf16 %v4805_v23, %v4797_v39 }
 0x290   : > { %v4809_v14 = vpop.eup %4808  ;;  %2080 = vmatprep.mubr.bf16.mxu0 %v6163_v38  ;;  %v6170_v51 = vpack.c.bf16 %v4807_v11, %v4799_v24 }
 0x291   : > { %7338 = vst [vmem:[#allocation140_spill] sm:$0xff] %v6167_v58  ;;  %v4811_v16 = vpop.eup %4810  ;;  %2081 = vmatmul.mubr.bf16.gmra.mxu0 %v6159_v50 }
 0x292   : > { %7339 = vst [vmem:[#allocation141_spill] sm:$0xff] %v6170_v51  ;;  %v4813_v60 = vpop.eup %4812  ;;  %2177 = vmatprep.mubr.bf16.mxu1 %v6170_v51 }
 0x293   : > { %v4815_v9 = vpop.eup %4814  ;;  %2178 = vmatmul.mubr.bf16.gmra.mxu1 %v6167_v58 }
 0x294   : > { %v4817_v54 = vpop.eup %4816 }
 0x295   : > { %v4819_v61 = vpop.eup %4818  ;;  %v6175_v26 = vpack.c.bf16 %v4817_v54, %v4809_v14  ;;  %v7344_v54 = vld [vmem:[#allocation110_spill] sm:$0xff] }
 0x296   : > { %v4821_v39 = vpop.eup %4820  ;;  %v6177_v23 = vpack.c.bf16 %v4819_v61, %v4811_v16  ;;  %v7343_v16 = vld [vmem:[#allocation111_spill] sm:$0xff] }
 0x297   : > { %v4823_v40 = vpop.eup %4822  ;;  %4324 = vmatprep.subr.bf16.mxu0 %v6175_v26  ;;  %v6180_v24 = vpack.c.bf16 %v4821_v39, %v4813_v60  ;;  %v2220_v14 = vcombine.high %v7343_v16, %v7343_v16  ;;  %v6197_v39 = vpop.f32.mrf.mxu1 }
 0x298   : > { %2088 = vmatprep.mubr.bf16.mxu0 %v6177_v23  ;;  %v6183_v11 = vpack.c.bf16 %v4823_v40, %v4815_v9  ;;  %v6195_v9 = vpop.f32.mrf.mxu0  ;;  %7345 = vst [vmem:[#allocation111_spill] sm:$0xff] %v6197_v39 }
 0x299   : > { %7340 = vst [vmem:[#allocation142_spill] sm:$0xff] %v6180_v24  ;;  %2089 = vmatmul.mubr.bf16.gmra.mxu0 %v6175_v26  ;;  %v2234_v60 = vrot.slane %v2220_v14, %v7344_v54 }
 0x29a   : > { %7341 = vst [vmem:[#allocation143_spill] sm:$0xff] %v6183_v11  ;;  %2185 = vmatprep.mubr.bf16.mxu1 %v6183_v11  ;;  %2307 = vmatprep.mubr.bf16.mxu0 %v7342_v42 }
 0x29b   : > { %2186 = vmatmul.mubr.bf16.gmra.mxu1 %v6180_v24  ;;  %v2236_v61 = vcombine.high %v2234_v60, %v2234_v60  ;;  %v2270_v40 = vsel %vm2262_vm1, %v2234_v60, 0 }
 0x29c   : > { %2420 = vmatprep.mubr.bf16.mxu1 %v7342_v42 }
 0x29d   : > { %4036 = vmatprep.subr.msk.bf16.mxu1 %vm2262_vm1, %v2236_v61 }
 0x29e   : > { %2403 = vmatpush1.bf16.msra.mxu1 %v2270_v40 }
 0x31e   : > { %v4084_v8 = vpop.f32.mrf.mxu0 }
 0x320   : > { %v4148_v51 = vpop.f32.mrf.mxu1  ;;  %v4085_v2 = vpop.f32.mrf.mxu0 }
 0x321   : > { %v4086_v10 = vadd.f32 %v4085_v2, %v4084_v8 }
 0x322   : > { %v4149_v15 = vpop.f32.mrf.mxu1  ;;  %v4087_v7 = vpop.f32.mrf.mxu0 }
 0x323   : > { %v4150_v63 = vadd.f32 %v4149_v15, %v4148_v51 }
 0x324   : > { %v4151_v16 = vpop.f32.mrf.mxu1  ;;  %v4088_v12 = vpop.f32.mrf.mxu0 }
 0x325   : > { %v4089_v14 = vadd.f32 %v4088_v12, %v4087_v7  ;;  %v2132_v54 = vadd.f32 %v4150_v63, %v4086_v10 }
 0x326   : > { %v4152_v46 = vpop.f32.mrf.mxu1  ;;  %v4090_v61 = vpop.f32.mrf.mxu0 }
 0x327   : > { %v4153_v20 = vadd.f32 %v4152_v46, %v4151_v16  ;;  %4824 = vrcp.f32 %v2132_v54 }
 0x328   : > { %v4154_v60 = vpop.f32.mrf.mxu1  ;;  %v4091_v40 = vpop.f32.mrf.mxu0 }
 0x329   : > { %v2135_v59 = vadd.f32 %v4153_v20, %v4089_v14  ;;  %v4092_v22 = vadd.f32 %v4091_v40, %v4090_v61 }
 0x32a   : > { %v4155_v39 = vpop.f32.mrf.mxu1  ;;  %v4093_v33 = vpop.f32.mrf.mxu0 }
 0x32b   : > { %4826 = vrcp.f32 %v2135_v59  ;;  %v4156_v58 = vadd.f32 %v4155_v39, %v4154_v60 }
 0x32c   : > { %v4157_v8 = vpop.f32.mrf.mxu1  ;;  %v4094_v2 = vpop.f32.mrf.mxu0 }
 0x32d   : > { %v4095_v24 = vadd.f32 %v4094_v2, %v4093_v33  ;;  %v2140_v15 = vadd.f32 %v4156_v58, %v4092_v22 }
 0x32e   : > { %v4158_v51 = vpop.f32.mrf.mxu1 }
 0x32f   : > { %v4096_v11 = vpop.f32.mrf.mxu0  ;;  %v4159_v7 = vadd.f32 %v4158_v51, %v4157_v8  ;;  %4828 = vrcp.f32 %v2140_v15 }
 0x331   : > { %v4160_v63 = vpop.f32.mrf.mxu1  ;;  %v4097_v12 = vpop.f32.mrf.mxu0  ;;  %v2143_v10 = vadd.f32 %v4159_v7, %v4095_v24 }
 0x332   : > { %v4098_v46 = vadd.f32 %v4097_v12, %v4096_v11 }
 0x333   : > { %v4161_v16 = vpop.f32.mrf.mxu1  ;;  %v4099_v20 = vpop.f32.mrf.mxu0  ;;  %4830 = vrcp.f32 %v2143_v10 }
 0x334   : > { %v4162_v14 = vadd.f32 %v4161_v16, %v4160_v63  ;;  %v4825_v33 = vpop.eup %4824 }
 0x335   : > { %v4163_v54 = vpop.f32.mrf.mxu1  ;;  %v4100_v61 = vpop.f32.mrf.mxu0 }
 0x336   : > { %v4101_v59 = vadd.f32 %v4100_v61, %v4099_v20  ;;  %v2148_v39 = vadd.f32 %v4162_v14, %v4098_v46 }
 0x337   : > { %v4164_v60 = vpop.f32.mrf.mxu1 }
 0x338   : > { %v4102_v40 = vpop.f32.mrf.mxu0  ;;  %v4165_v22 = vadd.f32 %v4164_v60, %v4163_v54  ;;  %v4827_v58 = vpop.eup %4826  ;;  %4832 = vrcp.f32 %v2148_v39 }
 0x339   : > { %v2210_v51 = vpack.c.bf16 %v4827_v58, %v4825_v33 }
 0x33a   : > { %v4166_v2 = vpop.f32.mrf.mxu1  ;;  %v4103_v8 = vpop.f32.mrf.mxu0  ;;  %v2151_v24 = vadd.f32 %v4165_v22, %v4101_v59 }
 0x33b   : > { %v4104_v11 = vadd.f32 %v4103_v8, %v4102_v40  ;;  %4028 = vmatmul.mubr.msk.bf16.vlgmr.msra.gmra.mxu0 %vm2237_vm2, %v2210_v51  ;;  %4037 = vmatmul.mubr.msk.bf16.vlgmr.msra.gmra.mxu1 %vm2237_vm2, %v2210_v51 }
 0x33c   : > { %v4167_v15 = vpop.f32.mrf.mxu1  ;;  %v4105_v7 = vpop.f32.mrf.mxu0  ;;  %4834 = vrcp.f32 %v2151_v24  ;;  %4325 = vmatpush3.bf16.xpose.msra.mxu0 %v6175_v26  ;;  %2317 = vmatprep.mubr.bf16.mxu0 %v7342_v42 }
 0x33d   : > { %v4168_v63 = vadd.f32 %v4167_v15, %v4166_v2  ;;  %4326 = vmatprep.subr.bf16.mxu0 %v6159_v50  ;;  %2430 = vmatprep.mubr.bf16.mxu1 %v7342_v42  ;;  %v4829_v54 = vpop.eup %4828 }
 0x33e   : > { %v4169_v12 = vpop.f32.mrf.mxu1  ;;  %v4106_v10 = vpop.f32.mrf.mxu0 }
 0x33f   : > { %v4107_v46 = vadd.f32 %v4106_v10, %v4105_v7  ;;  %v2156_v16 = vadd.f32 %v4168_v63, %v4104_v11 }
 0x340   : > { %v4170_v20 = vpop.f32.mrf.mxu1  ;;  %v4831_v59 = vpop.eup %4830 }
 0x341   : > { %v4108_v14 = vpop.f32.mrf.mxu0  ;;  %v4171_v61 = vadd.f32 %v4170_v20, %v4169_v12  ;;  %v2211_v33 = vpack.c.bf16 %v4831_v59, %v4829_v54  ;;  %4836 = vrcp.f32 %v2156_v16 }
 0x343   : > { %v4172_v39 = vpop.f32.mrf.mxu1  ;;  %v4109_v60 = vpop.f32.mrf.mxu0  ;;  %v2159_v40 = vadd.f32 %v4171_v61, %v4107_v46  ;;  %4029 = vmatmul.mubr.msk.bf16.gmra.mxu0 %vm2237_vm2, %v2211_v33  ;;  %4038 = vmatmul.mubr.msk.bf16.gmra.mxu1 %vm2237_vm2, %v2211_v33 }
 0x344   : > { %v4110_v26 = vadd.f32 %v4109_v60, %v4108_v14  ;;  %4327 = vmatpush3.bf16.xpose.msra.mxu0 %v6159_v50  ;;  %2327 = vmatprep.mubr.bf16.mxu0 %v7342_v42 }
 0x345   : > { %v4173_v22 = vpop.f32.mrf.mxu1  ;;  %v4111_v58 = vpop.f32.mrf.mxu0  ;;  %4838 = vrcp.f32 %v2159_v40  ;;  %4328 = vmatprep.subr.bf16.mxu0 %v6141_v44  ;;  %2440 = vmatprep.mubr.bf16.mxu1 %v7342_v42 }
 0x346   : > { %v4174_v2 = vadd.f32 %v4173_v22, %v4172_v39  ;;  %v4833_v63 = vpop.eup %4832 }
 0x347   : > { %v4175_v8 = vpop.f32.mrf.mxu1  ;;  %v4112_v51 = vpop.f32.mrf.mxu0 }
 0x348   : > { %v4113_v24 = vadd.f32 %v4112_v51, %v4111_v58  ;;  %v2164_v11 = vadd.f32 %v4174_v2, %v4110_v26 }
 0x349   : > { %v4176_v15 = vpop.f32.mrf.mxu1  ;;  %v4114_v7 = vpop.f32.mrf.mxu0 }
 0x34a   : > { %v4177_v12 = vadd.f32 %v4176_v15, %v4175_v8  ;;  %v4835_v10 = vpop.eup %4834  ;;  %4840 = vrcp.f32 %v2164_v11 }
 0x34b   : > { %v4178_v46 = vpop.f32.mrf.mxu1  ;;  %v4115_v16 = vpop.f32.mrf.mxu0  ;;  %v2212_v14 = vpack.c.bf16 %v4835_v10, %v4833_v63 }
 0x34c   : > { %v2167_v20 = vadd.f32 %v4177_v12, %v4113_v24  ;;  %v4116_v50 = vadd.f32 %v4115_v16, %v4114_v7  ;;  %4329 = vmatpush3.bf16.xpose.msra.mxu0 %v6141_v44 }
 0x34d   : > { %v4179_v54 = vpop.f32.mrf.mxu1  ;;  %v4117_v61 = vpop.f32.mrf.mxu0  ;;  %4030 = vmatmul.mubr.msk.bf16.gmra.mxu0 %vm2237_vm2, %v2212_v14  ;;  %4039 = vmatmul.mubr.msk.bf16.gmra.mxu1 %vm2237_vm2, %v2212_v14 }
 0x34e   : > { %4842 = vrcp.f32 %v2167_v20  ;;  %v4180_v59 = vadd.f32 %v4179_v54, %v4178_v46  ;;  %2337 = vmatprep.mubr.bf16.mxu0 %v7342_v42  ;;  %4330 = vmatprep.subr.bf16.mxu0 %v6105_v5  ;;  %v4837_v58 = vpop.eup %4836 }
 0x34f   : > { %v4181_v39 = vpop.f32.mrf.mxu1  ;;  %v4118_v60 = vpop.f32.mrf.mxu0  ;;  %2450 = vmatprep.mubr.bf16.mxu1 %v7342_v42 }
 0x350   : > { %v4119_v40 = vadd.f32 %v4118_v60, %v4117_v61  ;;  %v2172_v33 = vadd.f32 %v4180_v59, %v4116_v50 }
 0x351   : > { %v4182_v26 = vpop.f32.mrf.mxu1  ;;  %v4120_v22 = vpop.f32.mrf.mxu0 }
 0x352   : > { %v4183_v2 = vadd.f32 %v4182_v26, %v4181_v39  ;;  %v4839_v8 = vpop.eup %4838  ;;  %4844 = vrcp.f32 %v2172_v33 }
 0x353   : > { %v4184_v51 = vpop.f32.mrf.mxu1  ;;  %v4121_v24 = vpop.f32.mrf.mxu0  ;;  %v2213_v15 = vpack.c.bf16 %v4839_v8, %v4837_v58 }
 0x354   : > { %v2175_v11 = vadd.f32 %v4183_v2, %v4119_v40  ;;  %v4122_v44 = vadd.f32 %v4121_v24, %v4120_v22  ;;  %4331 = vmatpush3.bf16.xpose.msra.mxu0 %v6105_v5 }
 0x355   : > { %v4185_v7 = vpop.f32.mrf.mxu1  ;;  %v4123_v63 = vpop.f32.mrf.mxu0  ;;  %4031 = vmatmul.mubr.msk.bf16.gmra.mxu0 %vm2237_vm2, %v2213_v15  ;;  %4040 = vmatmul.mubr.msk.bf16.gmra.mxu1 %vm2237_vm2, %v2213_v15 }
 0x356   : > { %4846 = vrcp.f32 %v2175_v11  ;;  %v4186_v12 = vadd.f32 %v4185_v7, %v4184_v51  ;;  %2347 = vmatprep.mubr.bf16.mxu0 %v7342_v42  ;;  %4332 = vmatprep.subr.bf16.mxu0 %v6065_v3 }
 0x357   : > { %v4187_v10 = vpop.f32.mrf.mxu1  ;;  %v4124_v46 = vpop.f32.mrf.mxu0  ;;  %2460 = vmatprep.mubr.bf16.mxu1 %v7342_v42 }
 0x358   : > { %v4125_v16 = vadd.f32 %v4124_v46, %v4123_v63  ;;  %v2180_v20 = vadd.f32 %v4186_v12, %v4122_v44  ;;  %v4841_v54 = vpop.eup %4840 }
 0x359   : > { %v4188_v14 = vpop.f32.mrf.mxu1  ;;  %v4126_v50 = vpop.f32.mrf.mxu0 }
 0x35a   : > { %v4189_v61 = vadd.f32 %v4188_v14, %v4187_v10  ;;  %4848 = vrcp.f32 %v2180_v20  ;;  %v7346_v14 = vpack.c.bf16 %v5923_v62, %v5909_v57  ;;  %v7350_v57 = vpack.c.bf16 %v6080_v34, %v6059_v47 }
 0x35b   : > { %v4843_v59 = vpop.eup %4842  ;;  %v4190_v39 = vpop.f32.mrf.mxu1  ;;  %v7351_v62 = vpack.c.bf16 %v6132_v13, %v6099_v17  ;;  %v1717_v17 = vpack.c.bf16 %v5968_v43, %v5947_v27  ;;  %v7360_v27 = vld [vmem:[#allocation33_spill] sm:$0xff] }
 0x35c   : > { %v4127_v60 = vpop.f32.mrf.mxu0  ;;  %v2183_v40 = vadd.f32 %v4189_v61, %v4125_v16  ;;  %v2214_v33 = vpack.c.bf16 %v4843_v59, %v4841_v54  ;;  %4333 = vmatpush3.bf16.xpose.msra.mxu0 %v6065_v3  ;;  %v7361_v43 = vld [vmem:[#allocation37_spill] sm:$0xff]  ;;  %v7365_v54 = vld [vmem:[#allocation43_spill] sm:$0xff]  ;;  %v7366_v59 = vld [vmem:[#allocation26_spill] sm:$0xff] }
 0x35d   : > { %v4128_v5 = vadd.f32 %v4127_v60, %v4126_v50  ;;  %v4191_v26 = vpop.f32.mrf.mxu1  ;;  %4334 = vmatprep.subr.bf16.mxu0 %v6025_v19  ;;  %v7348_v50 = vpack.c.bf16 %v6000_v45, %v5979_v30  ;;  %v1713_v45 = vpack.c.bf16 %v5929_v53, %v5915_v35  ;;  %v1721_v35 = vpack.c.bf16 %v6008_v28, %v5987_v21  ;;  %v7367_v60 = vld [vmem:[#allocation41_spill] sm:$0xff] }
 0x35e   : > { %v4129_v22 = vpop.f32.mrf.mxu0  ;;  %4850 = vrcp.f32 %v2183_v40  ;;  %v4192_v58 = vadd.f32 %v4191_v26, %v4190_v39  ;;  %4032 = vmatmul.mubr.msk.bf16.gmra.mxu0 %vm2237_vm2, %v2214_v33  ;;  %4041 = vmatmul.mubr.msk.bf16.gmra.mxu1 %vm2237_vm2, %v2214_v33  ;;  %v1725_v53 = vpack.c.bf16 %v6048_v52, %v6027_v31  ;;  %v1741_v21 = vpack.c.bf16 %v7361_v43, %v7360_v27 }
 0x35f   : > { %v4193_v2 = vpop.f32.mrf.mxu1  ;;  %2357 = vmatprep.mubr.bf16.mxu0 %v7342_v42  ;;  %2470 = vmatprep.mubr.bf16.mxu1 %v7342_v42  ;;  %v4845_v15 = vpop.eup %4844 }
 0x360   : > { %v4130_v8 = vpop.f32.mrf.mxu0  ;;  %v2188_v24 = vadd.f32 %v4192_v58, %v4128_v5  ;;  %v7368_v58 = vld [vmem:[#allocation30_spill] sm:$0xff] }
 0x361   : > { %v4131_v51 = vadd.f32 %v4130_v8, %v4129_v22  ;;  %v4194_v11 = vpop.f32.mrf.mxu1  ;;  %v7369_v8 = vld [vmem:[#allocation45_spill] sm:$0xff] }
 0x362   : > { %v4195_v44 = vadd.f32 %v4194_v11, %v4193_v2  ;;  %4852 = vrcp.f32 %v2188_v24 }
 0x363   : > { %v4847_v7 = vpop.eup %4846 }
 0x364   : > { %v2191_v63 = vadd.f32 %v4195_v44, %v4131_v51  ;;  %v2215_v12 = vpack.c.bf16 %v4847_v7, %v4845_v15  ;;  %4335 = vmatpush3.bf16.xpose.msra.mxu0 %v6025_v19 }
 0x365   : > { %4336 = vmatprep.subr.bf16.mxu0 %v5985_v32 }
 0x366   : > { %4854 = vrcp.f32 %v2191_v63  ;;  %4033 = vmatmul.mubr.msk.bf16.gmra.mxu0 %vm2237_vm2, %v2215_v12  ;;  %4042 = vmatmul.mubr.msk.bf16.gmra.mxu1 %vm2237_vm2, %v2215_v12 }
 0x367   : > { %2367 = vmatprep.mubr.bf16.mxu0 %v7342_v42  ;;  %2480 = vmatprep.mubr.bf16.mxu1 %v7342_v42  ;;  %v4849_v3 = vpop.eup %4848 }
 0x36b   : > { %v4851_v10 = vpop.eup %4850 }
 0x36c   : > { %v2216_v46 = vpack.c.bf16 %v4851_v10, %v4849_v3  ;;  %4337 = vmatpush3.bf16.xpose.msra.mxu0 %v5985_v32  ;;  %v7347_v32 = vpack.c.bf16 %v5960_v6, %v5939_v41  ;;  %v7352_v41 = vld [vmem:[#allocation27_spill] sm:$0xff]  ;;  %v7371_v10 = vld [vmem:[#allocation32_spill] sm:$0xff] }
 0x36d   : > { %4338 = vmatprep.subr.bf16.mxu0 %v5945_v36  ;;  %v7353_v6 = vld [vmem:[#allocation23_spill] sm:$0xff] }
 0x36e   : > { %4034 = vmatmul.mubr.msk.bf16.gmra.mxu0 %vm2237_vm2, %v2216_v46  ;;  %4043 = vmatmul.mubr.msk.bf16.gmra.mxu1 %vm2237_vm2, %v2216_v46  ;;  %v7354_v30 = vpack.c.bf16 %v7352_v41, %v7353_v6 }
 0x36f   : > { %2377 = vmatprep.mubr.bf16.mxu0 %v7342_v42  ;;  %2490 = vmatprep.mubr.bf16.mxu1 %v7342_v42  ;;  %v4853_v19 = vpop.eup %4852 }
 0x373   : > { %v4855_v16 = vpop.eup %4854 }
 0x374   : > { %v2217_v20 = vpack.c.bf16 %v4855_v16, %v4853_v19  ;;  %4339 = vmatpush3.bf16.xpose.msra.mxu0 %v5945_v36  ;;  %v7349_v36 = vpack.c.bf16 %v6040_v4, %v6019_v56  ;;  %v7355_v56 = vld [vmem:[#allocation35_spill] sm:$0xff] }
 0x375   : > { %4388 = vmatprep.subr.bf16.mxu0 %v6177_v23  ;;  %v7356_v4 = vld [vmem:[#allocation31_spill] sm:$0xff] }
 0x376   : > { %4035 = vmatmul.mubr.msk.bf16.gmra.mxu0 %vm2237_vm2, %v2217_v20  ;;  %4044 = vmatmul.mubr.msk.bf16.gmra.mxu1 %vm2237_vm2, %v2217_v20  ;;  %v7357_v47 = vpack.c.bf16 %v7355_v56, %v7356_v4  ;;  %v7372_v19 = vld [vmem:[#allocation47_spill] sm:$0xff]  ;;  %v7373_v20 = vld [vmem:[#allocation36_spill] sm:$0xff]  ;;  %v7377_v4 = vld [vmem:[#allocation38_spill] sm:$0xff] }
 0x377   : > { %4340 = vmatprep.mubr.bf16.mxu0 %v7346_v14 }
 0x37e   : > { %4341 = vmatmul.mubr.bf16.vlgmr.msra.gmra.mxu0 %v7347_v32  ;;  %v7374_v32 = vld [vmem:[#allocation51_spill] sm:$0xff] }
 0x37f   : > { %4389 = vmatpush3.bf16.xpose.msra.mxu0 %v6177_v23  ;;  %4344 = vmatprep.mubr.bf16.mxu0 %v7348_v50 }
 0x380   : > { %4390 = vmatprep.subr.bf16.mxu0 %v6163_v38 }
 0x386   : > { %4345 = vmatmul.mubr.bf16.gmra.mxu0 %v7349_v36  ;;  %v7375_v36 = vld [vmem:[#allocation34_spill] sm:$0xff] }
 0x387   : > { %4391 = vmatpush3.bf16.xpose.msra.mxu0 %v6163_v38  ;;  %4348 = vmatprep.mubr.bf16.mxu0 %v7350_v57  ;;  %v7363_v38 = vld [vmem:[#allocation39_spill] sm:$0xff] }
 0x388   : > { %4392 = vmatprep.subr.bf16.mxu0 %v6139_v49 }
 0x38e   : > { %4349 = vmatmul.mubr.bf16.gmra.mxu0 %v7351_v62  ;;  %v7376_v62 = vld [vmem:[#allocation49_spill] sm:$0xff] }
 0x38f   : > { %4393 = vmatpush3.bf16.xpose.msra.mxu0 %v6139_v49  ;;  %4352 = vmatprep.mubr.bf16.mxu0 %v7354_v30 }
 0x390   : > { %4394 = vmatprep.subr.bf16.mxu0 %v6103_v0 }
 0x396   : > { %4353 = vmatmul.mubr.bf16.gmra.mxu0 %v7357_v47 }
 0x397   : > { %4395 = vmatpush3.bf16.xpose.msra.mxu0 %v6103_v0  ;;  %4404 = vmatprep.mubr.bf16.mxu0 %v1713_v45 }
 0x398   : > { %4396 = vmatprep.subr.bf16.mxu0 %v6063_v18 }
 0x39f   : > { %4397 = vmatpush3.bf16.xpose.msra.mxu0 %v6063_v18  ;;  %v7359_v18 = vld [vmem:[#allocation29_spill] sm:$0xff] }
 0x3a0   : > { %4398 = vmatprep.subr.bf16.mxu0 %v6023_v37 }
 0x3a7   : > { %4399 = vmatpush3.bf16.xpose.msra.mxu0 %v6023_v37  ;;  %v1729_v37 = vpack.c.bf16 %v6088_v29, %v6067_v55  ;;  %v7362_v29 = vld [vmem:[#allocation24_spill] sm:$0xff] }
 0x3a8   : > { %4400 = vmatprep.subr.bf16.mxu0 %v5983_v1 }
 0x3af   : > { %4401 = vmatpush3.bf16.xpose.msra.mxu0 %v5983_v1  ;;  %v1733_v1 = vpack.c.bf16 %v6195_v9, %v6112_v48  ;;  %v7364_v48 = vld [vmem:[#allocation28_spill] sm:$0xff] }
 0x3b0   : > { %4402 = vmatprep.subr.bf16.mxu0 %v5943_v25 }
 0x3b7   : > { %4403 = vmatpush3.bf16.xpose.msra.mxu0 %v5943_v25  ;;  %v7358_v25 = vld [vmem:[#allocation25_spill] sm:$0xff] }
 0x3b8   : > { %v1737_v0 = vpack.c.bf16 %v7359_v18, %v7358_v25 }
 0x3be   : > { %4405 = vmatmul.mubr.bf16.vlgmr.msra.gmra.mxu0 %v1717_v17  ;;  %v7378_v17 = vld [vmem:[#allocation53_spill] sm:$0xff] }
 0x3bf   : > { %4408 = vmatprep.mubr.bf16.mxu0 %v1721_v35 }
 0x3c6   : > { %4409 = vmatmul.mubr.bf16.gmra.mxu0 %v1725_v53 }
 0x3c7   : > { %4412 = vmatprep.mubr.bf16.mxu0 %v1729_v37 }
 0x3ce   : > { %4413 = vmatmul.mubr.bf16.gmra.mxu0 %v1733_v1 }
 0x3cf   : > { %4416 = vmatprep.mubr.bf16.mxu0 %v1737_v0 }
 0x3d6   : > { %4417 = vmatmul.mubr.bf16.gmra.mxu0 %v1741_v21 }
 0x3fb   : > { %v2309_v28 = vpop.f32.mrf.mxu0  ;;  %v2422_v34 = vpop.f32.mrf.mxu1 }
 0x3fc   : > { %v2501_v13 = vmul.f32 %v2309_v28, %v7362_v29  ;;  %v2503_v23 = vmul.f32 %v2422_v34, %v7363_v38  ;;  %v7379_v34 = vld [vmem:[#allocation42_spill] sm:$0xff] }
 0x3fd   : > { %v2311_v31 = vpop.f32.mrf.mxu0  ;;  %v2424_v52 = vpop.f32.mrf.mxu1 }
 0x3fe   : > { %v2502_v39 = vmul.f32 %v2311_v31, %v7366_v59  ;;  %v2504_v40 = vmul.f32 %v2424_v52, %v7367_v60  ;;  %v7380_v52 = vld [vmem:[#allocation57_spill] sm:$0xff] }
 0x3ff   : > { %v2313_v49 = vpop.f32.mrf.mxu0  ;;  %v2426_v55 = vpop.f32.mrf.mxu1 }
 0x400   : > { %v2505_v9 = vmul.f32 %v2313_v49, %v7364_v48  ;;  %v2507_v61 = vmul.f32 %v2426_v55, %v7365_v54  ;;  %v7381_v55 = vld [vmem:[#allocation46_spill] sm:$0xff] }
 0x401   : > { %v2315_v33 = vpop.f32.mrf.mxu0  ;;  %v2428_v5 = vpop.f32.mrf.mxu1 }
 0x402   : > { %v6306_v26 = vpack.c.bf16 %v2505_v9, %v2501_v13  ;;  %v6308_v22 = vpack.c.bf16 %v2507_v61, %v2503_v23  ;;  %v2506_v2 = vmul.f32 %v2315_v33, %v7368_v58  ;;  %v2508_v51 = vmul.f32 %v2428_v5, %v7369_v8  ;;  %v7382_v13 = vld [vmem:[#allocation61_spill] sm:$0xff]  ;;  %v7383_v5 = vld [vmem:[#allocation50_spill] sm:$0xff] }
 0x403   : > { %v2319_v24 = vpop.f32.mrf.mxu0  ;;  %v2432_v11 = vpop.f32.mrf.mxu1 }
 0x404   : > { %v6312_v15 = vpack.c.bf16 %v2506_v2, %v2502_v39  ;;  %v6314_v44 = vpack.c.bf16 %v2508_v51, %v2504_v40  ;;  %v2509_v46 = vmul.f32 %v2319_v24, %v7371_v10  ;;  %v2511_v16 = vmul.f32 %v2432_v11, %v7372_v19  ;;  %v7384_v2 = vld [vmem:[#allocation65_spill] sm:$0xff]  ;;  %v7385_v51 = vld [vmem:[#allocation54_spill] sm:$0xff] }
 0x405   : > { %v2321_v7 = vpop.f32.mrf.mxu0  ;;  %v2434_v63 = vpop.f32.mrf.mxu1  ;;  %v7386_v11 = vld [vmem:[#allocation69_spill] sm:$0xff] }
 0x406   : > { %7370 = vst [vmem:[#allocation110_spill] sm:$0xff] %v6314_v44  ;;  %v2510_v57 = vmul.f32 %v2321_v7, %v7375_v36  ;;  %v2512_v41 = vmul.f32 %v2434_v63, %v7376_v62  ;;  %v7404_v44 = vld [vmem:[#allocation83_spill] sm:$0xff] }
 0x407   : > { %v2323_v12 = vpop.f32.mrf.mxu0  ;;  %v2436_v3 = vpop.f32.mrf.mxu1 }
 0x408   : > { %v2513_v14 = vmul.f32 %v2323_v12, %v7373_v20  ;;  %v2515_v50 = vmul.f32 %v2436_v3, %v7374_v32 }
 0x409   : > { %v2325_v6 = vpop.f32.mrf.mxu0  ;;  %v2438_v30 = vpop.f32.mrf.mxu1 }
 0x40a   : > { %v6322_v45 = vpack.c.bf16 %v2513_v14, %v2509_v46  ;;  %v6324_v56 = vpack.c.bf16 %v2515_v50, %v2511_v16  ;;  %v2514_v47 = vmul.f32 %v2325_v6, %v7377_v4  ;;  %v2516_v35 = vmul.f32 %v2438_v30, %v7378_v17  ;;  %v7387_v50 = vld [vmem:[#allocation58_spill] sm:$0xff]  ;;  %v7390_v30 = vld [vmem:[#allocation77_spill] sm:$0xff] }
 0x40c   : > { %v6332_v1 = vpack.c.bf16 %v2514_v47, %v2510_v57  ;;  %v6334_v25 = vpack.c.bf16 %v2516_v35, %v2512_v41  ;;  %v7388_v57 = vld [vmem:[#allocation73_spill] sm:$0xff]  ;;  %v7389_v41 = vld [vmem:[#allocation62_spill] sm:$0xff] }
 0x40d   : > { %v6328_v53 = vpop.f32.mrf.mxu0  ;;  %v6330_v37 = vpop.f32.mrf.mxu1 }
 0x40f   : > { %v2331_v18 = vpop.f32.mrf.mxu0  ;;  %v2444_v0 = vpop.f32.mrf.mxu1 }
 0x410   : > { %v2518_v31 = vmul.f32 %v2331_v18, %v7379_v34  ;;  %v2520_v49 = vmul.f32 %v2444_v0, %v7380_v52 }
 0x411   : > { %v6336_v27 = vpop.f32.mrf.mxu0  ;;  %v6338_v43 = vpop.f32.mrf.mxu1 }
 0x413   : > { %v2335_v21 = vpop.f32.mrf.mxu0  ;;  %v2448_v28 = vpop.f32.mrf.mxu1 }
 0x414   : > { %v2522_v29 = vmul.f32 %v2335_v21, %v7381_v55  ;;  %v2524_v38 = vmul.f32 %v2448_v28, %v7382_v13 }
 0x415   : > { %v6344_v23 = vpop.f32.mrf.mxu0  ;;  %v6346_v48 = vpop.f32.mrf.mxu1 }
 0x416   : > { %v6348_v9 = vpack.c.bf16 %v2522_v29, %v2518_v31  ;;  %v6350_v54 = vpack.c.bf16 %v2524_v38, %v2520_v49  ;;  %v7391_v49 = vld [vmem:[#allocation81_spill] sm:$0xff] }
 0x417   : > { %v2341_v61 = vpop.f32.mrf.mxu0  ;;  %v2454_v59 = vpop.f32.mrf.mxu1  ;;  %v7392_v29 = vld [vmem:[#allocation85_spill] sm:$0xff] }
 0x418   : > { %v2526_v58 = vmul.f32 %v2341_v61, %v7383_v5  ;;  %v2528_v8 = vmul.f32 %v2454_v59, %v7384_v2 }
 0x419   : > { %v6352_v39 = vpop.f32.mrf.mxu0  ;;  %v6354_v60 = vpop.f32.mrf.mxu1 }
 0x41b   : > { %v2345_v40 = vpop.f32.mrf.mxu0  ;;  %v2458_v33 = vpop.f32.mrf.mxu1 }
 0x41c   : > { %v2530_v24 = vmul.f32 %v2345_v40, %v7385_v51  ;;  %v2532_v7 = vmul.f32 %v2458_v33, %v7386_v11  ;;  %v7393_v51 = vld [vmem:[#allocation88_spill] sm:$0xff]  ;;  %v7394_v11 = vld [vmem:[#allocation90_spill] sm:$0xff] }
 0x41e   : > { %v6360_v63 = vpop.f32.mrf.mxu0  ;;  %v6362_v12 = vpop.f32.mrf.mxu1  ;;  %v6364_v3 = vpack.c.bf16 %v2530_v24, %v2526_v58  ;;  %v6366_v10 = vpack.c.bf16 %v2532_v7, %v2528_v8 }
 0x420   : > { %v2351_v46 = vpop.f32.mrf.mxu0  ;;  %v2464_v19 = vpop.f32.mrf.mxu1 }
 0x421   : > { %v2534_v36 = vmul.f32 %v2351_v46, %v7387_v50  ;;  %v2536_v62 = vmul.f32 %v2464_v19, %v7388_v57 }
 0x422   : > { %v6368_v16 = vpop.f32.mrf.mxu0  ;;  %v6370_v20 = vpop.f32.mrf.mxu1 }
 0x424   : > { %v2355_v14 = vpop.f32.mrf.mxu0  ;;  %v2468_v32 = vpop.f32.mrf.mxu1 }
 0x425   : > { %v2538_v6 = vmul.f32 %v2355_v14, %v7389_v41  ;;  %v2540_v4 = vmul.f32 %v2468_v32, %v7390_v30 }
 0x426   : > { %v2359_v47 = vpop.f32.mrf.mxu0  ;;  %v2472_v17 = vpop.f32.mrf.mxu1 }
 0x427   : > { %v6376_v35 = vpack.c.bf16 %v2538_v6, %v2534_v36  ;;  %v6378_v18 = vpack.c.bf16 %v2540_v4, %v2536_v62  ;;  %v7395_v36 = vld [vmem:[#allocation76_spill] sm:$0xff]  ;;  %v7396_v62 = vld [vmem:[#allocation89_spill] sm:$0xff] }
 0x428   : > { %v6380_v0 = vpop.f32.mrf.mxu0  ;;  %v2474_v21 = vpop.f32.mrf.mxu1  ;;  %v7397_v4 = vld [vmem:[#allocation80_spill] sm:$0xff] }
 0x429   : > { %v2544_v55 = vmul.f32 %v2474_v21, %v7391_v49 }
 0x42a   : > { %v2363_v28 = vpop.f32.mrf.mxu0  ;;  %v2476_v34 = vpop.f32.mrf.mxu1 }
 0x42c   : > { %v6382_v31 = vpop.f32.mrf.mxu0  ;;  %v2478_v52 = vpop.f32.mrf.mxu1 }
 0x42d   : > { %v2548_v13 = vmul.f32 %v2478_v52, %v7392_v29  ;;  %v7398_v52 = vld [vmem:[#allocation91_spill] sm:$0xff] }
 0x42e   : > { %v2369_v38 = vpop.f32.mrf.mxu0  ;;  %v2482_v61 = vpop.f32.mrf.mxu1 }
 0x42f   : > { %v6386_v59 = vpack.c.bf16 %v2548_v13, %v2544_v55  ;;  %v7399_v55 = vld [vmem:[#allocation84_spill] sm:$0xff]  ;;  %v7400_v13 = vld [vmem:[#allocation93_spill] sm:$0xff] }
 0x430   : > { %v6388_v40 = vpop.f32.mrf.mxu0  ;;  %v2484_v33 = vpop.f32.mrf.mxu1 }
 0x431   : > { %v2552_v24 = vmul.f32 %v2484_v33, %v7393_v51  ;;  %v7401_v51 = vld [vmem:[#allocation72_spill] sm:$0xff] }
 0x432   : > { %v2373_v5 = vpop.f32.mrf.mxu0  ;;  %v2486_v58 = vpop.f32.mrf.mxu1 }
 0x433   : > { %v2553_v57 = vmul.f32 %v2373_v5, %v7395_v36  ;;  %v2555_v41 = vmul.f32 %v2486_v58, %v7396_v62  ;;  %v7403_v36 = vld [vmem:[#allocation68_spill] sm:$0xff] }
 0x434   : > { %v6390_v2 = vpop.f32.mrf.mxu0  ;;  %v2488_v8 = vpop.f32.mrf.mxu1  ;;  %v2545_v58 = vmul.f32 %v2363_v28, %v7403_v36  ;;  %v6419_v28 = vld [vmem:[%s7065_s6] sm:$0xff] }
 0x435   : > { %v2556_v7 = vmul.f32 %v2488_v8, %v7394_v11  ;;  %v7402_v11 = vld [vmem:[#allocation87_spill] sm:$0xff] }
 0x436   : > { %v2379_v46 = vpop.f32.mrf.mxu0  ;;  %v2492_v19 = vpop.f32.mrf.mxu1 }
 0x437   : > { %v6394_v14 = vpack.c.bf16 %v2556_v7, %v2552_v24  ;;  %v2557_v21 = vmul.f32 %v2379_v46, %v7397_v4  ;;  %v2559_v49 = vmul.f32 %v2492_v19, %v7398_v52  ;;  %v2549_v24 = vmul.f32 %v2369_v38, %v7401_v51  ;;  %v7406_v38 = vld [vmem:[#allocation79_spill] sm:$0xff] }
 0x438   : > { %v6396_v32 = vpop.f32.mrf.mxu0  ;;  %v6398_v50 = vpop.f32.mrf.mxu1  ;;  %v2551_v7 = vmul.f32 %v2482_v61, %v7402_v11  ;;  %v2547_v46 = vmul.f32 %v2476_v34, %v7404_v44  ;;  %v6424_v44 = vld [vmem:[%s7065_s6 + $0x8] sm:$0xff]  ;;  %v7410_v51 = vld [vmem:[#allocation71_spill] sm:$0xff] }
 0x439   : > { %v2589_v4 = vpack.c.bf16 %v2553_v57, %v2549_v24  ;;  %v7407_v34 = vld [vmem:[#allocation60_spill] sm:$0xff] }
 0x43a   : > { %v2383_v6 = vpop.f32.mrf.mxu0  ;;  %v2496_v30 = vpop.f32.mrf.mxu1  ;;  %v2591_v19 = vpack.c.bf16 %v2555_v41, %v2551_v7  ;;  %v7408_v41 = vld [vmem:[#allocation75_spill] sm:$0xff]  ;;  %v7411_v11 = vld [vmem:[#allocation52_spill] sm:$0xff] }
 0x43b   : > { %v2561_v29 = vmul.f32 %v2383_v6, %v7399_v55  ;;  %v2563_v33 = vmul.f32 %v2496_v30, %v7400_v13  ;;  %v7405_v30 = vld [vmem:[#allocation64_spill] sm:$0xff]  ;;  %v2543_v55 = vmul.f32 %v2472_v17, %v7406_v38  ;;  %v2539_v17 = vmul.f32 %v6370_v20, %v7408_v41  ;;  %v7412_v7 = vld [vmem:[#allocation67_spill] sm:$0xff] }
 0x43c   : > { %v6406_v8 = vpop.f32.mrf.mxu0  ;;  %v2541_v52 = vmul.f32 %v2359_v47, %v7405_v30  ;;  %v2529_v20 = vmul.f32 %v6352_v39, %v7411_v11  ;;  %v7415_v39 = vld [vmem:[#allocation44_spill] sm:$0xff]  ;;  %v6483_v11 = vld [vmem:[%s7065_s6 + $0x20] sm:$0xff] }
 0x43d   : > { %v2593_v42 = vpack.c.bf16 %v2561_v29, %v2557_v21  ;;  %v2595_v5 = vpack.c.bf16 %v2563_v33, %v2559_v49  ;;  %v2587_v47 = vpack.c.bf16 %v2547_v46, %v2543_v55  ;;  %v7409_v49 = vld [vmem:[#allocation56_spill] sm:$0xff] }
 0x43e   : > { %v6411_v62 = vpop.f32.mrf.mxu0  ;;  %v2585_v57 = vpack.c.bf16 %v2545_v58, %v2541_v52  ;;  %v2533_v29 = vmul.f32 %v6360_v63, %v7409_v49  ;;  %v2521_v52 = vmul.f32 %v6336_v27, %v7415_v39 }
 0x43f   : > { %4356 = vmatprep.subr.bf16.mxu1 %v2593_v42  ;;  %4484 = vmatprep.subr.bf16.mxu0 %v2595_v5 }
 0x440   : > { %v2647_v6 = vpop.f32.mrf.mxu0  ;;  %4357 = vmatpush3.bf16.msra.mxu1 %v2593_v42  ;;  %4485 = vmatpush3.bf16.msra.mxu0 %v2595_v5  ;;  %v2537_v42 = vmul.f32 %v6368_v16, %v7407_v34  ;;  %v2535_v16 = vmul.f32 %v6362_v12, %v7410_v51  ;;  %v2531_v5 = vmul.f32 %v6354_v60, %v7412_v7  ;;  %v7416_v60 = vld [vmem:[#allocation59_spill] sm:$0xff]  ;;  %v7420_v51 = vld [vmem:[#allocation82_spill] sm:$0xff] }
 0x441   : > { %4358 = vmatprep.subr.bf16.mxu1 %v2589_v4  ;;  %4486 = vmatprep.subr.bf16.mxu0 %v2591_v19  ;;  %v2710_v13 = vmul.f32 %v2647_v6, %v6419_v28  ;;  %v7414_v6 = vld [vmem:[#allocation63_spill] sm:$0xff]  ;;  %v2523_v38 = vmul.f32 %v6338_v43, %v7416_v60  ;;  %v7421_v7 = vld [vmem:[#allocation78_spill] sm:$0xff] }
 0x442   : > { %v4343_v61 = vpop.f32.mrf.mxu0  ;;  %v2581_v36 = vpack.c.bf16 %v2537_v42, %v2533_v29  ;;  %v2583_v63 = vpack.c.bf16 %v2539_v17, %v2535_v16  ;;  %v2527_v12 = vmul.f32 %v6346_v48, %v7414_v6  ;;  %v6468_v29 = vld [vmem:[%s7065_s6 + $0x28] sm:$0xff]  ;;  %v2558_v16 = vmul.f32 %v6396_v32, %v7420_v51  ;;  %v6563_v51 = vld [vmem:[%s7065_s6 + $0x70] sm:$0xff] }
 0x444   : > { %v2650_v21 = vpop.f32.mrf.mxu0  ;;  %4359 = vmatpush3.bf16.msra.mxu1 %v2589_v4  ;;  %4487 = vmatpush3.bf16.msra.mxu0 %v2591_v19  ;;  %v7413_v4 = vld [vmem:[#allocation48_spill] sm:$0xff]  ;;  %v2579_v34 = vpack.c.bf16 %v2531_v5, %v2527_v12  ;;  %v7425_v12 = vld [vmem:[#allocation66_spill] sm:$0xff] }
 0x445   : > { %v2711_v33 = vmul.f32 %v2650_v21, %v6424_v44  ;;  %4360 = vmatprep.subr.bf16.mxu1 %v2585_v57  ;;  %4488 = vmatprep.subr.bf16.mxu0 %v2587_v47  ;;  %v2525_v19 = vmul.f32 %v6344_v23, %v7413_v4  ;;  %v7423_v4 = vld [vmem:[#allocation143_spill] sm:$0xff]  ;;  %v2542_v39 = vmul.f32 %v6380_v0, %v7425_v12  ;;  %v6530_v0 = vld [vmem:[%s7065_s6 + $0x58] sm:$0xff] }
 0x446   : > { %v6436_v24 = vpop.f32.mrf.mxu0 }
 0x447   : > { %v2726_v58 = vpack.c.bf16 %v2711_v33, %v2710_v13  ;;  %v2577_v55 = vpack.c.bf16 %v2529_v20, %v2525_v19  ;;  %v6473_v33 = vld [vmem:[%s7065_s6 + $0x10] sm:$0xff]  ;;  %v7424_v19 = vld [vmem:[#allocation70_spill] sm:$0xff] }
 0x448   : > { %v2663_v46 = vpop.f32.mrf.mxu0  ;;  %4361 = vmatpush3.bf16.msra.mxu1 %v2585_v57  ;;  %4489 = vmatpush3.bf16.msra.mxu0 %v2587_v47  ;;  %v7417_v57 = vld [vmem:[#allocation40_spill] sm:$0xff]  ;;  %v7418_v47 = vld [vmem:[#allocation55_spill] sm:$0xff]  ;;  %v2712_v32 = vmul.f32 %v6411_v62, %v6473_v33 }
 0x449   : > { %4362 = vmatprep.subr.bf16.mxu1 %v2581_v36  ;;  %4372 = vmatprep.mubr.bf16.mxu1 %v2726_v58  ;;  %v2517_v23 = vmul.f32 %v6328_v53, %v7417_v57  ;;  %v2519_v48 = vmul.f32 %v6330_v37, %v7418_v47  ;;  %v6461_v53 = vld [vmem:[%s7065_s6 + $0x18] sm:$0xff] }
 0x44a   : > { %4490 = vmatprep.subr.bf16.mxu0 %v2583_v63  ;;  %v4347_v30 = vpop.f32.mrf.mxu0  ;;  %v7419_v37 = vld [vmem:[#allocation86_spill] sm:$0xff] }
 0x44b   : > { %v2573_v17 = vpack.c.bf16 %v2521_v52, %v2517_v23  ;;  %v2575_v27 = vpack.c.bf16 %v2523_v38, %v2519_v48  ;;  %v2562_v49 = vmul.f32 %v6406_v8, %v7419_v37  ;;  %v2713_v8 = vmul.f32 %v4343_v61, %v6461_v53  ;;  %v6521_v52 = vld [vmem:[%s7065_s6 + $0x40] sm:$0xff]  ;;  %v6535_v23 = vld [vmem:[%s7065_s6 + $0x68] sm:$0xff] }
 0x44c   : > { %v2666_v42 = vpop.f32.mrf.mxu0  ;;  %4363 = vmatpush3.bf16.msra.mxu1 %v2581_v36  ;;  %4491 = vmatpush3.bf16.msra.mxu0 %v2583_v63  ;;  %v2714_v61 = vmul.f32 %v2663_v46, %v6483_v11  ;;  %v7422_v36 = vld [vmem:[#allocation74_spill] sm:$0xff]  ;;  %v2546_v46 = vmul.f32 %v6382_v31, %v7424_v19 }
 0x44d   : > { %4364 = vmatprep.subr.bf16.mxu1 %v2577_v55  ;;  %4492 = vmatprep.subr.bf16.mxu0 %v2579_v34  ;;  %v2715_v20 = vmul.f32 %v2666_v42, %v6468_v29  ;;  %v2550_v58 = vmul.f32 %v6388_v40, %v7422_v36  ;;  %v2727_v63 = vpack.c.bf16 %v2713_v8, %v2712_v32  ;;  %v6513_v40 = vld [vmem:[%s7065_s6 + $0x30] sm:$0xff]  ;;  %v7426_v8 = vld [vmem:[#allocation142_spill] sm:$0xff] }
 0x44e   : > { %v6454_v41 = vpop.f32.mrf.mxu0  ;;  %v2586_v38 = vpack.c.bf16 %v2546_v46, %v2542_v39 }
 0x44f   : > { %v2728_v62 = vpack.c.bf16 %v2715_v20, %v2714_v61 }
 0x450   : > { %v2679_v21 = vpop.f32.mrf.mxu0  ;;  %4365 = vmatpush3.bf16.msra.mxu1 %v2577_v55  ;;  %4493 = vmatpush3.bf16.msra.mxu0 %v2579_v34  ;;  %v2716_v55 = vmul.f32 %v6436_v24, %v6513_v40  ;;  %v6540_v24 = vld [vmem:[%s7065_s6 + $0x50] sm:$0xff] }
 0x451   : > { %4366 = vmatprep.subr.bf16.mxu1 %v2573_v17  ;;  %4494 = vmatprep.subr.bf16.mxu0 %v2575_v27  ;;  %v2718_v42 = vmul.f32 %v2679_v21, %v6521_v52  ;;  %v2720_v21 = vmul.f32 %v6454_v41, %v6540_v24 }
 0x452   : > { %v4351_v43 = vpop.f32.mrf.mxu0 }
 0x453   : > { %v2721_v48 = vmul.f32 %v4351_v43, %v6530_v0  ;;  %v6558_v43 = vld [vmem:[%s7065_s6 + $0x78] sm:$0xff] }
 0x454   : > { %4367 = vmatpush3.bf16.msra.mxu1 %v2573_v17  ;;  %4495 = vmatpush3.bf16.msra.mxu0 %v2575_v27  ;;  %v2682_v13 = vpop.f32.mrf.mxu0  ;;  %v6546_v17 = vld [vmem:[%s7065_s6 + $0x60] sm:$0xff] }
 0x455   : > { %4368 = vmatprep.subr.bf16.mxu1 %v6322_v45  ;;  %4496 = vmatprep.subr.bf16.mxu0 %v6324_v56 }
 0x456   : > { %v4354_v5 = vpop.f32.mrf.mxu0 }
 0x457   : > { %v2724_v41 = vmul.f32 %v4354_v5, %v6563_v51 }
 0x458   : > { %4369 = vmatpush3.bf16.msra.mxu1 %v6322_v45  ;;  %4497 = vmatpush3.bf16.msra.mxu0 %v6324_v56  ;;  %v2554_v45 = vmul.f32 %v6390_v2, %v7421_v7  ;;  %v2594_v56 = vpack.c.bf16 %v2562_v49, %v2558_v16  ;;  %v6501_v2 = vld [vmem:[%s7065_s6 + $0x38] sm:$0xff]  ;;  %v2731_v49 = vpack.c.bf16 %v2721_v48, %v2720_v21 }
 0x459   : > { %4370 = vmatprep.subr.bf16.mxu1 %v6306_v26  ;;  %4498 = vmatprep.subr.bf16.mxu0 %v6308_v22  ;;  %v2717_v31 = vmul.f32 %v4347_v30, %v6501_v2 }
 0x45a   : > { %v2590_v6 = vpack.c.bf16 %v2554_v45, %v2550_v58 }
 0x45b   : > { %v2729_v57 = vpack.c.bf16 %v2717_v31, %v2716_v55 }
 0x45c   : > { %4371 = vmatpush3.bf16.msra.mxu1 %v6306_v26  ;;  %4499 = vmatpush3.bf16.msra.mxu0 %v6308_v22  ;;  %v6508_v26 = vld [vmem:[%s7065_s6 + $0x48] sm:$0xff]  ;;  %v2695_v22 = vpop.f32.mrf.mxu0 }
 0x45d   : > { %4420 = vmatprep.subr.bf16.mxu1 %v2594_v56  ;;  %4516 = vmatprep.subr.bf16.mxu0 %v7423_v4  ;;  %v2719_v60 = vmul.f32 %v2682_v13, %v6508_v26  ;;  %v2722_v37 = vmul.f32 %v2695_v22, %v6546_v17 }
 0x45e   : > { %v4355_v34 = vpop.f32.mrf.mxu0 }
 0x45f   : > { %4373 = vmatmul.mubr.bf16.vlgmr.msra.gmra.mxu1 %v2727_v63  ;;  %v2730_v30 = vpack.c.bf16 %v2719_v60, %v2718_v42 }
 0x460   : > { %4376 = vmatprep.mubr.bf16.mxu1 %v2728_v62  ;;  %4421 = vmatpush3.bf16.msra.mxu1 %v2594_v56  ;;  %v2698_v47 = vpop.f32.mrf.mxu0  ;;  %v7427_v62 = vld [vmem:[#allocation140_spill] sm:$0xff] }
 0x461   : > { %4422 = vmatprep.subr.bf16.mxu1 %v2590_v6  ;;  %v2723_v27 = vmul.f32 %v2698_v47, %v6535_v23 }
 0x463   : > { %v2732_v13 = vpack.c.bf16 %v2723_v27, %v2722_v37 }
 0x464   : > { %4423 = vmatpush3.bf16.msra.mxu1 %v2590_v6 }
 0x465   : > { %4424 = vmatprep.subr.bf16.mxu1 %v2586_v38 }
 0x467   : > { %4377 = vmatmul.mubr.bf16.gmra.mxu1 %v2729_v57 }
 0x468   : > { %4380 = vmatprep.mubr.bf16.mxu1 %v2730_v30  ;;  %4425 = vmatpush3.bf16.msra.mxu1 %v2586_v38 }
 0x469   : > { %4426 = vmatprep.subr.bf16.mxu1 %v6376_v35 }
 0x46c   : > { %4427 = vmatpush3.bf16.msra.mxu1 %v6376_v35  ;;  %v2725_v35 = vmul.f32 %v4355_v34, %v6558_v43  ;;  %v7428_v34 = vld [vmem:[#allocation102_spill] sm:$0xff] }
 0x46d   : > { %4428 = vmatprep.subr.bf16.mxu1 %v6364_v3 }
 0x46e   : > { %v2733_v16 = vpack.c.bf16 %v2725_v35, %v2724_v41  ;;  %v7429_v35 = vld [vmem:[#allocation99_spill] sm:$0xff] }
 0x46f   : > { %4381 = vmatmul.mubr.bf16.gmra.mxu1 %v2731_v49 }
 0x470   : > { %4384 = vmatprep.mubr.bf16.mxu1 %v2732_v13  ;;  %4429 = vmatpush3.bf16.msra.mxu1 %v6364_v3 }
 0x471   : > { %4430 = vmatprep.subr.bf16.mxu1 %v6348_v9 }
 0x474   : > { %4431 = vmatpush3.bf16.msra.mxu1 %v6348_v9 }
 0x475   : > { %4432 = vmatprep.subr.bf16.mxu1 %v6332_v1 }
 0x477   : > { %4385 = vmatmul.mubr.bf16.gmra.mxu1 %v2733_v16 }
 0x478   : > { %4433 = vmatpush3.bf16.msra.mxu1 %v6332_v1 }
 0x479   : > { %4434 = vmatprep.subr.bf16.mxu1 %v6312_v15 }
 0x47c   : > { %4435 = vmatpush3.bf16.msra.mxu1 %v6312_v15 }
 0x47d   : > { %4452 = vmatprep.subr.bf16.mxu1 %v7426_v8 }
 0x47e   : > { %v4406_v3 = vpop.f32.mrf.mxu0 }
 0x47f   : > { %v2946_v5 = vmul.f32 %v4406_v3, %v6473_v33 }
 0x480   : > { %v2881_v20 = vpop.f32.mrf.mxu0 }
 0x481   : > { %v2944_v9 = vmul.f32 %v2881_v20, %v6419_v28 }
 0x482   : > { %v4407_v7 = vpop.f32.mrf.mxu0 }
 0x483   : > { %v2947_v45 = vmul.f32 %v4407_v7, %v6461_v53 }
 0x484   : > { %v2884_v56 = vpop.f32.mrf.mxu0 }
 0x485   : > { %v2945_v32 = vmul.f32 %v2884_v56, %v6424_v44  ;;  %v2961_v36 = vpack.c.bf16 %v2947_v45, %v2946_v5  ;;  %v7430_v45 = vld [vmem:[#allocation114_spill] sm:$0xff]  ;;  %v7431_v56 = vld [vmem:[#allocation112_spill] sm:$0xff]  ;;  %v7434_v5 = vld [vmem:[#allocation133_spill] sm:$0xff] }
 0x486   : > { %v4410_v61 = vpop.f32.mrf.mxu0 }
 0x487   : > { %v2960_v1 = vpack.c.bf16 %v2945_v32, %v2944_v9  ;;  %v2950_v22 = vmul.f32 %v4410_v61, %v6513_v40  ;;  %v7432_v9 = vpack.c.bf16 %v7430_v45, %v7431_v56  ;;  %v7433_v32 = vld [vmem:[#allocation101_spill] sm:$0xff]  ;;  %v7435_v61 = vld [vmem:[#allocation127_spill] sm:$0xff] }
 0x488   : > { %v2897_v58 = vpop.f32.mrf.mxu0 }
 0x489   : > { %4436 = vmatprep.mubr.bf16.mxu1 %v2960_v1  ;;  %v2948_v46 = vmul.f32 %v2897_v58, %v6483_v11  ;;  %v2498_v1 = vpop.f32.mrf.mxu1  ;;  %v7437_v58 = vld [vmem:[#allocation94_spill] sm:$0xff] }
 0x48a   : > { %v4411_v15 = vpop.f32.mrf.mxu0  ;;  %4437 = vmatmul.mubr.bf16.vlgmr.msra.gmra.mxu1 %v2961_v36  ;;  %v7436_v36 = vld [vmem:[#allocation121_spill] sm:$0xff] }
 0x48b   : > { %4453 = vmatpush3.bf16.xpose.msra.mxu1 %v7426_v8  ;;  %v2951_v63 = vmul.f32 %v4411_v15, %v6501_v2  ;;  %v2564_v15 = vmul.f32 %v2498_v1, %v7437_v58 }
 0x48c   : > { %4454 = vmatprep.subr.bf16.mxu1 %v7427_v62  ;;  %v2900_v19 = vpop.f32.mrf.mxu0 }
 0x48d   : > { %v2949_v6 = vmul.f32 %v2900_v19, %v6468_v29  ;;  %v2963_v31 = vpack.c.bf16 %v2951_v63, %v2950_v22  ;;  %v7438_v63 = vld [vmem:[#allocation92_spill] sm:$0xff] }
 0x48e   : > { %v4414_v12 = vpop.f32.mrf.mxu0 }
 0x48f   : > { %v2962_v39 = vpack.c.bf16 %v2949_v6, %v2948_v46  ;;  %v2954_v47 = vmul.f32 %v4414_v12, %v6540_v24  ;;  %v7439_v46 = vld [vmem:[#allocation118_spill] sm:$0xff]  ;;  %v7440_v6 = vld [vmem:[#allocation116_spill] sm:$0xff] }
 0x490   : > { %v2913_v60 = vpop.f32.mrf.mxu0  ;;  %v7441_v22 = vpack.c.bf16 %v7439_v46, %v7440_v6  ;;  %v7442_v12 = vld [vmem:[#allocation124_spill] sm:$0xff] }
 0x491   : > { %4440 = vmatprep.mubr.bf16.mxu1 %v2962_v39  ;;  %v2952_v57 = vmul.f32 %v2913_v60, %v6521_v52  ;;  %v7443_v39 = vld [vmem:[#allocation122_spill] sm:$0xff]  ;;  %v7446_v60 = vld [vmem:[#allocation128_spill] sm:$0xff] }
 0x492   : > { %v4415_v38 = vpop.f32.mrf.mxu0  ;;  %4441 = vmatmul.mubr.bf16.gmra.mxu1 %v2963_v31  ;;  %v7444_v31 = vpack.c.bf16 %v7442_v12, %v7443_v39 }
 0x493   : > { %4455 = vmatpush3.bf16.xpose.msra.mxu1 %v7427_v62  ;;  %v2955_v55 = vmul.f32 %v4415_v38, %v6530_v0  ;;  %v2560_v62 = vmul.f32 %v6398_v50, %v7438_v63  ;;  %v7445_v50 = vld [vmem:[#allocation130_spill] sm:$0xff] }
 0x494   : > { %4456 = vmatprep.subr.bf16.mxu1 %v7428_v34  ;;  %v2916_v42 = vpop.f32.mrf.mxu0  ;;  %v7447_v38 = vpack.c.bf16 %v7445_v50, %v7446_v60 }
 0x495   : > { %v2953_v30 = vmul.f32 %v2916_v42, %v6508_v26  ;;  %v2965_v21 = vpack.c.bf16 %v2955_v55, %v2954_v47  ;;  %v2596_v19 = vpack.c.bf16 %v2564_v15, %v2560_v62  ;;  %v7448_v55 = vld [vmem:[#allocation136_spill] sm:$0xff]  ;;  %v7454_v47 = vld [vmem:[#allocation107_spill] sm:$0xff]  ;;  %v7461_v62 = vld [vmem:[#allocation141_spill] sm:$0xff] }
 0x496   : > { %v4418_v48 = vpop.f32.mrf.mxu0 }
 0x497   : > { %v2964_v27 = vpack.c.bf16 %v2953_v30, %v2952_v57  ;;  %v2958_v3 = vmul.f32 %v4418_v48, %v6563_v51  ;;  %v7451_v57 = vld [vmem:[#allocation98_spill] sm:$0xff]  ;;  %v7455_v48 = vld [vmem:[#allocation100_spill] sm:$0xff] }
 0x498   : > { %v2929_v37 = vpop.f32.mrf.mxu0 }
 0x499   : > { %4444 = vmatprep.mubr.bf16.mxu1 %v2964_v27  ;;  %v2956_v16 = vmul.f32 %v2929_v37, %v6546_v17  ;;  %v7456_v27 = vpack.c.bf16 %v7454_v47, %v7455_v48  ;;  %v7460_v37 = vld [vmem:[#allocation110_spill] sm:$0xff] }
 0x49a   : > { %v4419_v49 = vpop.f32.mrf.mxu0  ;;  %4445 = vmatmul.mubr.bf16.gmra.mxu1 %v2965_v21 }
 0x49b   : > { %4457 = vmatpush3.bf16.xpose.msra.mxu1 %v7428_v34  ;;  %v2959_v13 = vmul.f32 %v4419_v49, %v6558_v43  ;;  %v7449_v34 = vld [vmem:[#allocation134_spill] sm:$0xff] }
 0x49c   : > { %4458 = vmatprep.subr.bf16.mxu1 %v7429_v35  ;;  %v2932_v41 = vpop.f32.mrf.mxu0  ;;  %v7450_v42 = vpack.c.bf16 %v7448_v55, %v7449_v34 }
 0x49d   : > { %v2957_v8 = vmul.f32 %v2932_v41, %v6535_v23  ;;  %v2967_v7 = vpack.c.bf16 %v2959_v13, %v2958_v3 }
 0x49f   : > { %v2966_v20 = vpack.c.bf16 %v2957_v8, %v2956_v16 }
 0x4a1   : > { %4448 = vmatprep.mubr.bf16.mxu1 %v2966_v20 }
 0x4a2   : > { %4449 = vmatmul.mubr.bf16.gmra.mxu1 %v2967_v7 }
 0x4a3   : > { %4459 = vmatpush3.bf16.xpose.msra.mxu1 %v7429_v35  ;;  %4468 = vmatprep.mubr.bf16.mxu1 %v7432_v9 }
 0x4a4   : > { %4460 = vmatprep.subr.bf16.mxu1 %v7433_v32 }
 0x4ab   : > { %4461 = vmatpush3.bf16.xpose.msra.mxu1 %v7433_v32 }
 0x4ac   : > { %4462 = vmatprep.subr.bf16.mxu1 %v7434_v5 }
 0x4b3   : > { %4463 = vmatpush3.bf16.xpose.msra.mxu1 %v7434_v5 }
 0x4b4   : > { %4464 = vmatprep.subr.bf16.mxu1 %v7435_v61 }
 0x4bb   : > { %4465 = vmatpush3.bf16.xpose.msra.mxu1 %v7435_v61 }
 0x4bc   : > { %4466 = vmatprep.subr.bf16.mxu1 %v7436_v36 }
 0x4c3   : > { %4467 = vmatpush3.bf16.xpose.msra.mxu1 %v7436_v36 }
 0x4c4   : > { %4548 = vmatprep.subr.bf16.mxu1 %v2596_v19 }
 0x4ca   : > { %4469 = vmatmul.mubr.bf16.vlgmr.msra.gmra.mxu1 %v7441_v22 }
 0x4cb   : > { %4472 = vmatprep.mubr.bf16.mxu1 %v7444_v31  ;;  %4549 = vmatpush3.bf16.msra.mxu1 %v2596_v19 }
 0x4cc   : > { %4550 = vmatprep.subr.bf16.mxu1 %v6394_v14 }
 0x4cf   : > { %4551 = vmatpush3.bf16.msra.mxu1 %v6394_v14  ;;  %v7452_v14 = vld [vmem:[#allocation137_spill] sm:$0xff] }
 0x4d0   : > { %4552 = vmatprep.subr.bf16.mxu1 %v6386_v59  ;;  %v7453_v30 = vpack.c.bf16 %v7451_v57, %v7452_v14 }
 0x4d2   : > { %4473 = vmatmul.mubr.bf16.gmra.mxu1 %v7447_v38 }
 0x4d3   : > { %4476 = vmatprep.mubr.bf16.mxu1 %v7450_v42  ;;  %4553 = vmatpush3.bf16.msra.mxu1 %v6386_v59  ;;  %v7457_v59 = vld [vmem:[#allocation139_spill] sm:$0xff] }
 0x4d4   : > { %4554 = vmatprep.subr.bf16.mxu1 %v6378_v18 }
 0x4d7   : > { %4555 = vmatpush3.bf16.msra.mxu1 %v6378_v18  ;;  %v7458_v18 = vld [vmem:[#allocation109_spill] sm:$0xff] }
 0x4d8   : > { %4556 = vmatprep.subr.bf16.mxu1 %v6366_v10  ;;  %v7459_v21 = vpack.c.bf16 %v7457_v59, %v7458_v18 }
 0x4da   : > { %4477 = vmatmul.mubr.bf16.gmra.mxu1 %v7453_v30 }
 0x4db   : > { %4480 = vmatprep.mubr.bf16.mxu1 %v7456_v27  ;;  %4557 = vmatpush3.bf16.msra.mxu1 %v6366_v10 }
 0x4dc   : > { %4558 = vmatprep.subr.bf16.mxu1 %v6350_v54 }
 0x4df   : > { %4559 = vmatpush3.bf16.msra.mxu1 %v6350_v54 }
 0x4e0   : > { %4560 = vmatprep.subr.bf16.mxu1 %v6334_v25 }
 0x4e2   : > { %4481 = vmatmul.mubr.bf16.gmra.mxu1 %v7459_v21 }
 0x4e3   : > { %4561 = vmatpush3.bf16.msra.mxu1 %v6334_v25 }
 0x4e4   : > { %4562 = vmatprep.subr.bf16.mxu1 %v7460_v37 }
 0x4e7   : > { %4563 = vmatpush3.bf16.msra.mxu1 %v7460_v37 }
 0x51f   : > { %v6647_v49 = vpop.f32.mrf.mxu1 }
 0x521   : > { %v6649_v13 = vpop.f32.mrf.mxu1 }
 0x523   : > { %v6651_v10 = vpop.f32.mrf.mxu1 }
 0x525   : > { %v6655_v35 = vpop.f32.mrf.mxu1 }
 0x527   : > { %v6659_v16 = vpop.f32.mrf.mxu1 }
 0x529   : > { %v6661_v25 = vpop.f32.mrf.mxu1 }
 0x52b   : > { %v6663_v8 = vpop.f32.mrf.mxu1 }
 0x52d   : > { %v6667_v20 = vpop.f32.mrf.mxu1 }
 0x52f   : > { %v6671_v45 = vpop.f32.mrf.mxu1 }
 0x531   : > { %v6673_v56 = vpop.f32.mrf.mxu1 }
 0x533   : > { %v6675_v9 = vpop.f32.mrf.mxu1 }
 0x535   : > { %v6679_v5 = vpop.f32.mrf.mxu1 }
 0x537   : > { %v6683_v1 = vpop.f32.mrf.mxu1 }
 0x539   : > { %v6685_v36 = vpop.f32.mrf.mxu1 }
 0x53b   : > { %v6687_v58 = vpop.f32.mrf.mxu1 }
 0x53d   : > { %v6691_v63 = vpop.f32.mrf.mxu1 }
 0x54a   : > { %v6695_v19 = vpop.f32.mrf.mxu1 }
 0x54c   : > { %v6697_v46 = vpop.f32.mrf.mxu1 }
 0x54e   : > { %v6699_v6 = vpop.f32.mrf.mxu1 }
 0x550   : > { %v6703_v12 = vpop.f32.mrf.mxu1 }
 0x552   : > { %v6707_v31 = vpop.f32.mrf.mxu1 }
 0x554   : > { %v6709_v50 = vpop.f32.mrf.mxu1 }
 0x556   : > { %v6711_v60 = vpop.f32.mrf.mxu1 }
 0x558   : > { %v6715_v55 = vpop.f32.mrf.mxu1 }
 0x55a   : > { %v6719_v42 = vpop.f32.mrf.mxu1 }
 0x55c   : > { %v6721_v57 = vpop.f32.mrf.mxu1 }
 0x55e   : > { %v6723_v14 = vpop.f32.mrf.mxu1 }
 0x560   : > { %v6727_v47 = vpop.f32.mrf.mxu1 }
 0x562   : > { %v4450_v27 = vpop.f32.mrf.mxu1 }
 0x564   : > { %v6731_v59 = vpop.f32.mrf.mxu1 }
 0x566   : > { %v4451_v18 = vpop.f32.mrf.mxu1 }
 0x567   : > { %v3646_v21 = vpack.c.bf16 %v4451_v18, %v4450_v27 }
 0x568   : > { %v6733_v37 = vpop.f32.mrf.mxu1 }
 0x569   : > { %3685 = vmatprep.subr.bf16.mxu1 %v3646_v21 }
 0x58a   : > { %v4470_v39 = vpop.f32.mrf.mxu1 }
 0x58b   : > { %v3180_v61 = vmul.f32 %v4470_v39, %v6473_v33 }
 0x58c   : > { %v3115_v54 = vpop.f32.mrf.mxu1 }
 0x58d   : > { %v3178_v3 = vmul.f32 %v3115_v54, %v6419_v28 }
 0x58e   : > { %v4471_v22 = vpop.f32.mrf.mxu1 }
 0x58f   : > { %v3181_v7 = vmul.f32 %v4471_v22, %v6461_v53 }
 0x590   : > { %v3118_v34 = vpop.f32.mrf.mxu1 }
 0x591   : > { %v3179_v38 = vmul.f32 %v3118_v34, %v6424_v44  ;;  %v3195_v18 = vpack.c.bf16 %v3181_v7, %v3180_v61 }
 0x592   : > { %v4474_v48 = vpop.f32.mrf.mxu1 }
 0x593   : > { %v3194_v27 = vpack.c.bf16 %v3179_v38, %v3178_v3  ;;  %v3184_v39 = vmul.f32 %v4474_v48, %v6513_v40 }
 0x594   : > { %v3131_v32 = vpop.f32.mrf.mxu1 }
 0x595   : > { %4500 = vmatprep.mubr.bf16.mxu0 %v3194_v27  ;;  %v3182_v54 = vmul.f32 %v3131_v32, %v6483_v11 }
 0x596   : > { %v4475_v30 = vpop.f32.mrf.mxu1  ;;  %4501 = vmatmul.mubr.bf16.vlgmr.msra.gmra.mxu0 %v3195_v18 }
 0x597   : > { %4517 = vmatpush3.bf16.xpose.msra.mxu0 %v7423_v4  ;;  %v3185_v21 = vmul.f32 %v4475_v30, %v6501_v2  ;;  %v7462_v30 = vld [vmem:[#allocation108_spill] sm:$0xff] }
 0x598   : > { %4518 = vmatprep.subr.bf16.mxu0 %v7461_v62  ;;  %v3134_v22 = vpop.f32.mrf.mxu1 }
 0x599   : > { %v3183_v34 = vmul.f32 %v3134_v22, %v6468_v29  ;;  %v3197_v7 = vpack.c.bf16 %v3185_v21, %v3184_v39 }
 0x59a   : > { %v4478_v41 = vpop.f32.mrf.mxu1 }
 0x59b   : > { %v3196_v3 = vpack.c.bf16 %v3183_v34, %v3182_v54  ;;  %v3188_v48 = vmul.f32 %v4478_v41, %v6540_v24 }
 0x59c   : > { %v3147_v61 = vpop.f32.mrf.mxu1 }
 0x59d   : > { %4504 = vmatprep.mubr.bf16.mxu0 %v3196_v3  ;;  %v3186_v32 = vmul.f32 %v3147_v61, %v6521_v52  ;;  %v7463_v3 = vld [vmem:[#allocation104_spill] sm:$0xff] }
 0x59e   : > { %v4479_v38 = vpop.f32.mrf.mxu1  ;;  %4505 = vmatmul.mubr.bf16.gmra.mxu0 %v3197_v7 }
 0x59f   : > { %4519 = vmatpush3.bf16.xpose.msra.mxu0 %v7461_v62  ;;  %v3189_v4 = vmul.f32 %v4479_v38, %v6530_v0 }
 0x5a0   : > { %4520 = vmatprep.subr.bf16.mxu0 %v7462_v30  ;;  %v3150_v27 = vpop.f32.mrf.mxu1 }
 0x5a1   : > { %v3187_v18 = vmul.f32 %v3150_v27, %v6508_v26  ;;  %v3199_v21 = vpack.c.bf16 %v3189_v4, %v3188_v48  ;;  %v7464_v4 = vld [vmem:[#allocation113_spill] sm:$0xff] }
 0x5a2   : > { %v4482_v22 = vpop.f32.mrf.mxu1 }
 0x5a3   : > { %v3198_v54 = vpack.c.bf16 %v3187_v18, %v3186_v32  ;;  %v3192_v41 = vmul.f32 %v4482_v22, %v6563_v51  ;;  %v7465_v18 = vld [vmem:[#allocation115_spill] sm:$0xff]  ;;  %v7469_v22 = vld [vmem:[#allocation120_spill] sm:$0xff] }
 0x5a4   : > { %v3163_v34 = vpop.f32.mrf.mxu1  ;;  %v1715_v48 = vpack.c.bf16 %v7465_v18, %v7464_v4  ;;  %v7477_v4 = vld [vmem:[#allocation95_spill] sm:$0xff] }
 0x5a5   : > { %4508 = vmatprep.mubr.bf16.mxu0 %v3198_v54  ;;  %v3190_v61 = vmul.f32 %v3163_v34, %v6546_v17  ;;  %v7467_v54 = vld [vmem:[#allocation132_spill] sm:$0xff]  ;;  %v7470_v34 = vld [vmem:[#allocation117_spill] sm:$0xff] }
 0x5a6   : > { %v4483_v39 = vpop.f32.mrf.mxu1  ;;  %4509 = vmatmul.mubr.bf16.gmra.mxu0 %v3199_v21  ;;  %v7468_v21 = vld [vmem:[#allocation126_spill] sm:$0xff] }
 0x5a7   : > { %4521 = vmatpush3.bf16.xpose.msra.mxu0 %v7462_v30  ;;  %v3193_v62 = vmul.f32 %v4483_v39, %v6558_v43  ;;  %v7466_v30 = vld [vmem:[#allocation96_spill] sm:$0xff]  ;;  %v7471_v39 = vld [vmem:[#allocation119_spill] sm:$0xff] }
 0x5a8   : > { %4522 = vmatprep.subr.bf16.mxu0 %v7463_v3  ;;  %v3166_v7 = vpop.f32.mrf.mxu1 }
 0x5a9   : > { %v3191_v38 = vmul.f32 %v3166_v7, %v6535_v23  ;;  %v3201_v32 = vpack.c.bf16 %v3193_v62, %v3192_v41  ;;  %v1719_v62 = vpack.c.bf16 %v7471_v39, %v7470_v34  ;;  %v7473_v7 = vld [vmem:[#allocation125_spill] sm:$0xff]  ;;  %v7475_v41 = vld [vmem:[#allocation131_spill] sm:$0xff]  ;;  %v7482_v34 = vld [vmem:[#allocation138_spill] sm:$0xff] }
 0x5aa   : > { %v7483_v39 = vld [vmem:[#allocation111_spill] sm:$0xff] }
 0x5ab   : > { %v3200_v27 = vpack.c.bf16 %v3191_v38, %v3190_v61  ;;  %v7474_v38 = vld [vmem:[#allocation129_spill] sm:$0xff] }
 0x5ad   : > { %4512 = vmatprep.mubr.bf16.mxu0 %v3200_v27  ;;  %v1727_v27 = vpack.c.bf16 %v7475_v41, %v7474_v38 }
 0x5ae   : > { %4513 = vmatmul.mubr.bf16.gmra.mxu0 %v3201_v32  ;;  %v7476_v32 = vld [vmem:[#allocation135_spill] sm:$0xff] }
 0x5af   : > { %4523 = vmatpush3.bf16.xpose.msra.mxu0 %v7463_v3  ;;  %4532 = vmatprep.mubr.bf16.mxu0 %v1715_v48  ;;  %v7472_v3 = vld [vmem:[#allocation123_spill] sm:$0xff]  ;;  %v1731_v18 = vpack.c.bf16 %v7477_v4, %v7476_v32  ;;  %v7478_v48 = vld [vmem:[#allocation97_spill] sm:$0xff] }
 0x5b0   : > { %4524 = vmatprep.subr.bf16.mxu0 %v7466_v30  ;;  %v1723_v61 = vpack.c.bf16 %v7473_v7, %v7472_v3  ;;  %v7484_v3 = vmov 0  }
 0x5b7   : > { %4525 = vmatpush3.bf16.xpose.msra.mxu0 %v7466_v30  ;;  %v7479_v30 = vld [vmem:[#allocation103_spill] sm:$0xff] }
 0x5b8   : > { %4526 = vmatprep.subr.bf16.mxu0 %v7467_v54 }
 0x5bf   : > { %4527 = vmatpush3.bf16.xpose.msra.mxu0 %v7467_v54  ;;  %v1735_v54 = vpack.c.bf16 %v7479_v30, %v7478_v48 }
 0x5c0   : > { %4528 = vmatprep.subr.bf16.mxu0 %v7468_v21 }
 0x5c7   : > { %4529 = vmatpush3.bf16.xpose.msra.mxu0 %v7468_v21  ;;  %v7480_v21 = vld [vmem:[#allocation106_spill] sm:$0xff] }
 0x5c8   : > { %4530 = vmatprep.subr.bf16.mxu0 %v7469_v22 }
 0x5cf   : > { %4531 = vmatpush3.bf16.xpose.msra.mxu0 %v7469_v22  ;;  %v7481_v22 = vld [vmem:[#allocation105_spill] sm:$0xff] }
 0x5d0   : > { %v1739_v15 = vpack.c.bf16 %v7481_v22, %v7480_v21 }
 0x5d6   : > { %4533 = vmatmul.mubr.bf16.vlgmr.msra.gmra.mxu0 %v1719_v62  ;;  %v1743_v62 = vpack.c.bf16 %v7483_v39, %v7482_v34 }
 0x5d7   : > { %4536 = vmatprep.mubr.bf16.mxu0 %v1723_v61 }
 0x5de   : > { %4537 = vmatmul.mubr.bf16.gmra.mxu0 %v1727_v27 }
 0x5df   : > { %4540 = vmatprep.mubr.bf16.mxu0 %v1731_v18 }
 0x5e6   : > { %4541 = vmatmul.mubr.bf16.gmra.mxu0 %v1735_v54 }
 0x5e7   : > { %4544 = vmatprep.mubr.bf16.mxu0 %v1739_v15 }
 0x5ee   : > { %4545 = vmatmul.mubr.bf16.gmra.mxu0 %v1743_v62 }
 0x5ef   : > { %3770 = vmatprep.mubr.bf16.mxu0 %v7484_v3 }
 0x656   : > { %v6785_v7 = vpop.f32.mrf.mxu0 }
 0x657   : > { %7485 = vst [vmem:[#allocation27_spill] sm:$0xff] %v6785_v7  ;;  %v7498_v7 = vpack.c.bf16 %v6687_v58, %v6683_v1 }
 0x658   : > { %v6787_v61 = vpop.f32.mrf.mxu0 }
 0x659   : > { %7486 = vst [vmem:[#allocation23_spill] sm:$0xff] %v6787_v61 }
 0x65a   : > { %v6789_v38 = vpop.f32.mrf.mxu0 }
 0x65b   : > { %7487 = vst [vmem:[#allocation35_spill] sm:$0xff] %v6789_v38 }
 0x65c   : > { %v6793_v27 = vpop.f32.mrf.mxu0 }
 0x65d   : > { %7488 = vst [vmem:[#allocation31_spill] sm:$0xff] %v6793_v27 }
 0x65e   : > { %v6797_v32 = vpop.f32.mrf.mxu0 }
 0x65f   : > { %7489 = vst [vmem:[#allocation25_spill] sm:$0xff] %v6797_v32 }
 0x660   : > { %v6799_v4 = vpop.f32.mrf.mxu0 }
 0x661   : > { %7490 = vst [vmem:[#allocation29_spill] sm:$0xff] %v6799_v4 }
 0x662   : > { %v6801_v18 = vpop.f32.mrf.mxu0 }
 0x663   : > { %7491 = vst [vmem:[#allocation33_spill] sm:$0xff] %v6801_v18 }
 0x664   : > { %v6805_v30 = vpop.f32.mrf.mxu0 }
 0x665   : > { %7492 = vst [vmem:[#allocation37_spill] sm:$0xff] %v6805_v30 }
 0x666   : > { %v6809_v21 = vpop.f32.mrf.mxu0 }
 0x667   : > { %7493 = vst [vmem:[#allocation24_spill] sm:$0xff] %v6809_v21 }
 0x668   : > { %v6811_v22 = vpop.f32.mrf.mxu0 }
 0x669   : > { %7494 = vst [vmem:[#allocation39_spill] sm:$0xff] %v6811_v22 }
 0x66a   : > { %v6813_v34 = vpop.f32.mrf.mxu0 }
 0x66b   : > { %7495 = vst [vmem:[#allocation28_spill] sm:$0xff] %v6813_v34 }
 0x66c   : > { %v6817_v62 = vpop.f32.mrf.mxu0 }
 0x66d   : > { %7496 = vst [vmem:[#allocation43_spill] sm:$0xff] %v6817_v62 }
 0x66e   : > { %v6821_v41 = vpop.f32.mrf.mxu0 }
 0x66f   : > { %7497 = vst [vmem:[#allocation26_spill] sm:$0xff] %v6821_v41 }
 0x670   : > { %v6823_v48 = vpop.f32.mrf.mxu0 }
 0x672   : > { %v6825_v61 = vpop.f32.mrf.mxu0 }
 0x674   : > { %v6829_v27 = vpop.f32.mrf.mxu0 }
 0x696   : > { %v4534_v39 = vpop.f32.mrf.mxu0 }
 0x697   : > { %v3414_v22 = vmul.f32 %v4534_v39, %v6473_v33 }
 0x698   : > { %v3349_v38 = vpop.f32.mrf.mxu0 }
 0x699   : > { %v3412_v32 = vmul.f32 %v3349_v38, %v6419_v28  ;;  %v7499_v28 = vpack.c.bf16 %v6733_v37, %v6731_v59 }
 0x69a   : > { %v4535_v4 = vpop.f32.mrf.mxu0 }
 0x69b   : > { %v3415_v30 = vmul.f32 %v4535_v4, %v6461_v53 }
 0x69c   : > { %v3352_v15 = vpop.f32.mrf.mxu0 }
 0x69d   : > { %v3413_v18 = vmul.f32 %v3352_v15, %v6424_v44  ;;  %v3429_v54 = vpack.c.bf16 %v3415_v30, %v3414_v22  ;;  %v7508_v30 = vpack.c.bf16 %v6667_v20, %v6661_v25 }
 0x69e   : > { %v4538_v62 = vpop.f32.mrf.mxu0 }
 0x69f   : > { %v3428_v21 = vpack.c.bf16 %v3413_v18, %v3412_v32  ;;  %v3418_v15 = vmul.f32 %v4538_v62, %v6513_v40  ;;  %v7500_v18 = vpack.c.bf16 %v6691_v63, %v6685_v36  ;;  %v7503_v40 = vpack.c.bf16 %v6727_v47, %v6721_v57 }
 0x6a0   : > { %v3365_v34 = vpop.f32.mrf.mxu0 }
 0x6a1   : > { %4564 = vmatprep.mubr.bf16.mxu1 %v3428_v21  ;;  %v3416_v33 = vmul.f32 %v3365_v34, %v6483_v11 }
 0x6a2   : > { %v4539_v41 = vpop.f32.mrf.mxu0  ;;  %4565 = vmatmul.mubr.bf16.vlgmr.msra.gmra.mxu1 %v3429_v54 }
 0x6a3   : > { %3686 = vmatpush1.bf16.msra.mxu1 %v7498_v7  ;;  %v3419_v53 = vmul.f32 %v4539_v41, %v6501_v2  ;;  %v7501_v2 = vpack.c.bf16 %v6723_v14, %v6719_v42  ;;  %v7504_v41 = vpack.c.bf16 %v6679_v5, %v6673_v56 }
 0x6a4   : > { %3687 = vmatprep.subr.bf16.mxu1 %v7499_v28  ;;  %v3368_v44 = vpop.f32.mrf.mxu0  ;;  %v6923_v28 = vpop.permute.xlu1 %3655 }
 0x6a5   : > { %v3417_v38 = vmul.f32 %v3368_v44, %v6468_v29  ;;  %v3431_v1 = vpack.c.bf16 %v3419_v53, %v3418_v15  ;;  %v7502_v29 = vpack.c.bf16 %v6675_v9, %v6671_v45 }
 0x6a6   : > { %v4542_v32 = vpop.f32.mrf.mxu0 }
 0x6a7   : > { %v3430_v4 = vpack.c.bf16 %v3417_v38, %v3416_v33  ;;  %3688 = vmatpush1.bf16.msra.mxu1 %v7500_v18  ;;  %v3422_v14 = vmul.f32 %v4542_v32, %v6540_v24  ;;  %v7507_v24 = vpack.c.bf16 %v6715_v55, %v6709_v50  ;;  %v7513_v33 = vld [vmem:[#allocation26_spill] sm:$0xff]  ;;  %v7515_v18 = vld [vmem:[#allocation13_spill] sm:$0xff] }
 0x6a8   : > { %3689 = vmatprep.subr.bf16.mxu1 %v7501_v2  ;;  %v3381_v58 = vpop.f32.mrf.mxu0  ;;  %v7514_v38 = vpack.c.bf16 %v6825_v61, %v7513_v33  ;;  %v7517_v61 = vld [vmem:[#allocation14_spill] sm:$0xff]  ;;  %v7537_v33 = vld [vmem:[#allocation27_spill] sm:$0xff] }
 0x6a9   : > { %4568 = vmatprep.mubr.bf16.mxu1 %v3430_v4  ;;  %v3420_v63 = vmul.f32 %v3381_v58, %v6521_v52  ;;  %v6931_v58 = vpop.permute.xlu0 %3660 }
 0x6aa   : > { %v4543_v59 = vpop.f32.mrf.mxu0  ;;  %4569 = vmatmul.mubr.bf16.gmra.mxu1 %v3431_v1 }
 0x6ab   : > { %3690 = vmatpush1.bf16.msra.mxu1 %v7502_v29  ;;  %v3423_v11 = vmul.f32 %v4543_v59, %v6530_v0  ;;  %v7505_v0 = vpack.c.bf16 %v6711_v60, %v6707_v31  ;;  %v7516_v29 = vpack.c.bf16 %v6829_v27, %v6823_v48 }
 0x6ac   : > { %3691 = vmatprep.subr.bf16.mxu1 %v7503_v40  ;;  %v3384_v36 = vpop.f32.mrf.mxu0 }
 0x6ad   : > { %v3421_v42 = vmul.f32 %v3384_v36, %v6508_v26  ;;  %v3433_v45 = vpack.c.bf16 %v3423_v11, %v3422_v14  ;;  %v7506_v26 = vpack.c.bf16 %v6663_v8, %v6659_v16  ;;  %v7510_v8 = vpack.c.bf16 %v6651_v10, %v6647_v49  ;;  %v6905_v49 = vld [vmem:[%s7063_s4 + $0x8] sm:$0xff]   ;;  %v6941_v36 = vpop.permute.xlu1 %3665  ;;  %v7518_v14 = vld [vmem:[#allocation11_spill] sm:$0xff] }
 0x6ae   : > { %v4546_v37 = vpop.f32.mrf.mxu0 }
 0x6af   : > { %v3432_v7 = vpack.c.bf16 %v3421_v42, %v3420_v63  ;;  %3692 = vmatpush1.bf16.msra.mxu1 %v7504_v41  ;;  %v3426_v60 = vmul.f32 %v4546_v37, %v6563_v51  ;;  %v7512_v51 = vpack.c.bf16 %v6655_v35, %v6649_v13  ;;  %v7520_v41 = vld [vmem:[#allocation24_spill] sm:$0xff] }
 0x6b0   : > { %3693 = vmatprep.subr.bf16.mxu1 %v7505_v0  ;;  %v3397_v9 = vpop.f32.mrf.mxu0  ;;  %v7522_v0 = vld [vmem:[#allocation12_spill] sm:$0xff] }
 0x6b1   : > { %4572 = vmatprep.mubr.bf16.mxu1 %v3432_v7  ;;  %v3424_v5 = vmul.f32 %v3397_v9, %v6546_v17  ;;  %v6895_v17 = vld [vmem:[%s7063_s4] sm:$0xff]   ;;  %v7519_v7 = vld [vmem:[#allocation28_spill] sm:$0xff] }
 0x6b2   : > { %v4547_v57 = vpop.f32.mrf.mxu0  ;;  %4573 = vmatmul.mubr.bf16.gmra.mxu1 %v3433_v45  ;;  %v7521_v45 = vpack.c.bf16 %v7519_v7, %v7520_v41  ;;  %v7547_v41 = vld [vmem:[#allocation16_spill] sm:$0xff] }
 0x6b3   : > { %3694 = vmatpush1.bf16.msra.mxu1 %v7506_v26  ;;  %v3427_v52 = vmul.f32 %v4547_v57, %v6558_v43  ;;  %v7509_v43 = vpack.c.bf16 %v6699_v6, %v6695_v19 }
 0x6b4   : > { %3695 = vmatprep.subr.bf16.mxu1 %v7507_v24  ;;  %v3400_v56 = vpop.f32.mrf.mxu0  ;;  %v7523_v24 = vld [vmem:[#allocation10_spill] sm:$0xff] }
 0x6b5   : > { %v3425_v31 = vmul.f32 %v3400_v56, %v6535_v23  ;;  %v3435_v16 = vpack.c.bf16 %v3427_v52, %v3426_v60  ;;  %v7511_v23 = vpack.c.bf16 %v6703_v12, %v6697_v46 }
 0x6b7   : > { %v3434_v47 = vpack.c.bf16 %v3425_v31, %v3424_v5  ;;  %3696 = vmatpush1.bf16.msra.mxu1 %v7508_v30  ;;  %v3671_v31 = vpop.permute.xlu1 %3670  ;;  %v7525_v30 = vld [vmem:[#allocation39_spill] sm:$0xff] }
 0x6b8   : > { %3697 = vmatprep.subr.bf16.mxu1 %v7509_v43  ;;  %v7527_v43 = vld [vmem:[#allocation9_spill] sm:$0xff] }
 0x6b9   : > { %4576 = vmatprep.mubr.bf16.mxu1 %v3434_v47  ;;  %v7524_v47 = vld [vmem:[#allocation43_spill] sm:$0xff] }
 0x6ba   : > { %4577 = vmatmul.mubr.bf16.gmra.mxu1 %v3435_v16  ;;  %v7526_v16 = vpack.c.bf16 %v7524_v47, %v7525_v30 }
 0x6bb   : > { %3698 = vmatpush1.bf16.msra.mxu1 %v7510_v8  ;;  %3717 = vmatprep.mubr.bf16.mxu1 %v7484_v3 }
 0x6bc   : > { %3699 = vmatprep.subr.bf16.mxu1 %v7511_v23 }
 0x6bf   : > { %3700 = vmatpush1.bf16.msra.mxu1 %v7512_v51 }
 0x6c2   : > { %3718 = vmatmul.mubr.bf16.vlgmr.msra.gmra.mxu1 %v6895_v17 }
 0x6c3   : > { %3727 = vmatprep.mubr.bf16.mxu1 %v7484_v3 }
 0x6ca   : > { %3728 = vmatmul.mubr.bf16.gmra.mxu1 %v6905_v49 }
 0x762   : > { %v6908_v10 = vpop.f32.mrf.mxu1 }
 0x764   : > { %v6910_v25 = vpop.f32.mrf.mxu1 }
 0x766   : > { %v6912_v20 = vpop.f32.mrf.mxu1 }
 0x768   : > { %v6914_v13 = vpop.f32.mrf.mxu1 }
 0x76a   : > { %v4570_v35 = vpop.f32.mrf.mxu1 }
 0x76c   : > { %v6916_v19 = vpop.f32.mrf.mxu1 }
 0x76e   : > { %v4571_v46 = vpop.f32.mrf.mxu1 }
 0x76f   : > { %v3632_v52 = vpack.c.bf16 %v4571_v46, %v4570_v35  ;;  %v7528_v46 = vld [vmem:[#allocation8_spill] sm:$0xff] }
 0x770   : > { %v6918_v6 = vpop.f32.mrf.mxu1 }
 0x771   : > { %v3628_v35 = vpack.c.bf16 %v6918_v6, %v6916_v19  ;;  %v3620_v19 = vpack.c.bf16 %v6914_v13, %v6910_v25  ;;  %v7536_v6 = vld [vmem:[#allocation35_spill] sm:$0xff]  ;;  %v7542_v13 = vld [vmem:[#allocation22_spill] sm:$0xff] }
 0x772   : > { %v4574_v12 = vpop.f32.mrf.mxu1 }
 0x774   : > { %v3502_v50 = vpop.f32.mrf.mxu1 }
 0x776   : > { %v4575_v55 = vpop.f32.mrf.mxu1 }
 0x777   : > { %v3640_v4 = vpack.c.bf16 %v4575_v55, %v4574_v12  ;;  %v7529_v55 = vld [vmem:[#allocation33_spill] sm:$0xff] }
 0x778   : > { %v3505_v54 = vpop.f32.mrf.mxu1 }
 0x779   : > { %v3636_v42 = vpack.c.bf16 %v3505_v54, %v3502_v50  ;;  %v7530_v54 = vld [vmem:[#allocation25_spill] sm:$0xff] }
 0x77a   : > { %v4578_v21 = vpop.f32.mrf.mxu1 }
 0x77c   : > { %v3518_v22 = vpop.f32.mrf.mxu1 }
 0x77e   : > { %v4579_v34 = vpop.f32.mrf.mxu1 }
 0x77f   : > { %v3648_v39 = vpack.c.bf16 %v4579_v34, %v4578_v21  ;;  %v7531_v21 = vpack.c.bf16 %v7529_v55, %v7530_v54 }
 0x780   : > { %v3521_v62 = vpop.f32.mrf.mxu1 }
 0x781   : > { %v3644_v53 = vpack.c.bf16 %v3521_v62, %v3518_v22  ;;  %3738 = vmatprep.subr.bf16.mxu0 %v3648_v39  ;;  %v7532_v22 = vld [vmem:[#allocation7_spill] sm:$0xff]  ;;  %v3624_v39 = vpack.c.bf16 %v6912_v20, %v6908_v10  ;;  %v7533_v62 = vld [vmem:[#allocation37_spill] sm:$0xff] }
 0x782   : > { %v3719_v44 = vpop.f32.mrf.mxu1  ;;  %3739 = vmatpush1.bf16.msra.mxu0 %v7514_v38  ;;  %v7538_v38 = vpack.c.bf16 %v7536_v6, %v7537_v33 }
 0x783   : > { %v3720_v15 = vadd.f32 %v3719_v44, %v6923_v28  ;;  %3740 = vmatprep.subr.bf16.mxu0 %v3644_v53  ;;  %v7534_v53 = vld [vmem:[#allocation29_spill] sm:$0xff] }
 0x784   : > { %v3721_v32 = vpop.f32.mrf.mxu1  ;;  %v7535_v44 = vpack.c.bf16 %v7533_v62, %v7534_v53 }
 0x785   : > { %v3791_v1 = vadd.f32 %v3720_v15, %v7515_v18  ;;  %v3722_v2 = vadd.f32 %v3721_v32, %v6923_v28  ;;  %v7539_v15 = vld [vmem:[#allocation31_spill] sm:$0xff] }
 0x786   : > { %v3723_v59 = vpop.f32.mrf.mxu1  ;;  %3741 = vmatpush1.bf16.msra.mxu0 %v7516_v29  ;;  %v7540_v32 = vld [vmem:[#allocation23_spill] sm:$0xff] }
 0x787   : > { %3807 = vst [vmem:[%s6936_s22] sm:$0xff] %v3791_v1  ;;  %v3792_v11 = vadd.f32 %v3722_v2, %v7517_v61  ;;  %v3724_v40 = vadd.f32 %v3723_v59, %v6931_v58  ;;  %3742 = vmatprep.subr.bf16.mxu0 %v3640_v4  ;;  %v7541_v4 = vpack.c.bf16 %v7539_v15, %v7540_v32  ;;  %v7543_v59 = vld [vmem:[#allocation19_spill] sm:$0xff] }
 0x788   : > { %v3725_v63 = vpop.f32.mrf.mxu1 }
 0x789   : > { %4047 = vst [vmem:[%s6936_s22 + $0x20] sm:$0xff] %v3792_v11  ;;  %v3795_v27 = vadd.f32 %v3724_v40, %v7518_v14  ;;  %v3726_v48 = vadd.f32 %v3725_v63, %v6931_v58  ;;  %v7545_v63 = vld [vmem:[#allocation18_spill] sm:$0xff] }
 0x78a   : > { %v3729_v37 = vpop.f32.mrf.mxu1  ;;  %3743 = vmatpush1.bf16.msra.mxu0 %v7521_v45 }
 0x78b   : > { %3808 = vst [vmem:[%s6936_s22 + $0x8] sm:$0xff] %v3795_v27  ;;  %v3796_v9 = vadd.f32 %v3726_v48, %v7522_v0  ;;  %v3730_v57 = vadd.f32 %v3729_v37, %v6941_v36  ;;  %3744 = vmatprep.subr.bf16.mxu0 %v3636_v42  ;;  %v7546_v27 = vld [vmem:[#allocation20_spill] sm:$0xff] }
 0x78c   : > { %v3731_v26 = vpop.f32.mrf.mxu1 }
 0x78d   : > { %4048 = vst [vmem:[%s6936_s22 + $0x28] sm:$0xff] %v3796_v9  ;;  %v3799_v56 = vadd.f32 %v3730_v57, %v7523_v24  ;;  %v3732_v5 = vadd.f32 %v3731_v26, %v6941_v36  ;;  %v7548_v9 = vld [vmem:[#allocation17_spill] sm:$0xff] }
 0x78e   : > { %v3733_v60 = vpop.f32.mrf.mxu1  ;;  %3745 = vmatpush1.bf16.msra.mxu0 %v7526_v16 }
 0x78f   : > { %3809 = vst [vmem:[%s6936_s22 + $0x10] sm:$0xff] %v3799_v56  ;;  %v3800_v8 = vadd.f32 %v3732_v5, %v7527_v43  ;;  %v3734_v23 = vadd.f32 %v3733_v60, %v3671_v31  ;;  %3746 = vmatprep.subr.bf16.mxu0 %v3632_v52 }
 0x790   : > { %v3735_v51 = vpop.f32.mrf.mxu1 }
 0x791   : > { %4049 = vst [vmem:[%s6936_s22 + $0x30] sm:$0xff] %v3800_v8  ;;  %v3803_v12 = vadd.f32 %v3734_v23, %v7528_v46  ;;  %v3736_v50 = vadd.f32 %v3735_v51, %v3671_v31 }
 0x792   : > { %3747 = vmatpush1.bf16.msra.mxu0 %v7531_v21 }
 0x793   : > { %3810 = vst [vmem:[%s6936_s22 + $0x18] sm:$0xff] %v3803_v12  ;;  %v3804_v34 = vadd.f32 %v3736_v50, %v7532_v22  ;;  %3748 = vmatprep.subr.bf16.mxu0 %v3628_v35 }
 0x795   : > { %4050 = vst [vmem:[%s6936_s22 + $0x38] sm:$0xff] %v3804_v34 }
 0x796   : > { %3749 = vmatpush1.bf16.msra.mxu0 %v7535_v44 }
 0x797   : > { %3750 = vmatprep.subr.bf16.mxu0 %v3624_v39 }
 0x79a   : > { %3751 = vmatpush1.bf16.msra.mxu0 %v7538_v38 }
 0x79b   : > { %3752 = vmatprep.subr.bf16.mxu0 %v3620_v19 }
 0x79e   : > { %3753 = vmatpush1.bf16.msra.mxu0 %v7541_v4 }
 0x7a1   : > { %3771 = vmatmul.mubr.bf16.vlgmr.msra.gmra.mxu0 %v6895_v17 }
 0x7a2   : > { %3780 = vmatprep.mubr.bf16.mxu0 %v7484_v3 }
 0x7a9   : > { %3781 = vmatmul.mubr.bf16.gmra.mxu0 %v6905_v49  ;;  %v7544_v49 = vld [vmem:[#allocation21_spill] sm:$0xff] }
 0x861   : > { %v3772_v10 = vpop.f32.mrf.mxu0 }
 0x862   : > { %v3773_v25 = vadd.f32 %v3772_v10, %v6923_v28 }
 0x863   : > { %v3774_v20 = vpop.f32.mrf.mxu0 }
 0x864   : > { %v3793_v18 = vadd.f32 %v3773_v25, %v7542_v13  ;;  %v3775_v1 = vadd.f32 %v3774_v20, %v6923_v28 }
 0x865   : > { %v3776_v2 = vpop.f32.mrf.mxu0 }
 0x866   : > { %4051 = vst [vmem:[%s6936_s22 + $0x40] sm:$0xff] %v3793_v18  ;;  %v3794_v29 = vadd.f32 %v3775_v1, %v7543_v59  ;;  %v3777_v17 = vadd.f32 %v3776_v2, %v6931_v58 }
 0x867   : > { %v3778_v3 = vpop.f32.mrf.mxu0 }
 0x868   : > { %4055 = vst [vmem:[%s6936_s22 + $0x60] sm:$0xff] %v3794_v29  ;;  %v3797_v61 = vadd.f32 %v3777_v17, %v7544_v49  ;;  %v3779_v11 = vadd.f32 %v3778_v3, %v6931_v58 }
 0x869   : > { %v3782_v40 = vpop.f32.mrf.mxu0 }
 0x86a   : > { %4052 = vst [vmem:[%s6936_s22 + $0x48] sm:$0xff] %v3797_v61  ;;  %v3798_v28 = vadd.f32 %v3779_v11, %v7545_v63  ;;  %v3783_v42 = vadd.f32 %v3782_v40, %v6941_v36 }
 0x86b   : > { %v3784_v14 = vpop.f32.mrf.mxu0 }
 0x86c   : > { %4056 = vst [vmem:[%s6936_s22 + $0x68] sm:$0xff] %v3798_v28  ;;  %v3801_v48 = vadd.f32 %v3783_v42, %v7546_v27  ;;  %v3785_v37 = vadd.f32 %v3784_v14, %v6941_v36  ;;  %v7549_v36 = vld [vmem:[#allocation15_spill] sm:$0xff] }
 0x86d   : > { %v3786_v7 = vpop.f32.mrf.mxu0 }
 0x86e   : > { %4053 = vst [vmem:[%s6936_s22 + $0x50] sm:$0xff] %v3801_v48  ;;  %v3802_v58 = vadd.f32 %v3785_v37, %v7547_v41  ;;  %v3787_v45 = vadd.f32 %v3786_v7, %v3671_v31 }
 0x86f   : > { %v3788_v0 = vpop.f32.mrf.mxu0 }
 0x870   : > { %4057 = vst [vmem:[%s6936_s22 + $0x70] sm:$0xff] %v3802_v58  ;;  %v3805_v57 = vadd.f32 %v3787_v45, %v7548_v9  ;;  %v3789_v26 = vadd.f32 %v3788_v0, %v3671_v31 }
 0x872   : > { %4054 = vst [vmem:[%s6936_s22 + $0x58] sm:$0xff] %v3805_v57  ;;  %v3806_v52 = vadd.f32 %v3789_v26, %v7549_v36 }
 0x874   : > { %4058 = vst [vmem:[%s6936_s22 + $0x78] sm:$0xff] %v3806_v52 }
 0x875   : > { %4869 = shalt.err (!%p4866_p3)
}
 0x876   : > { %s4870_s17 = scalar_lea.hbm %s7010_s27, 2048  ;;  %s4874_s23 = scalar_lea.hbm %s7068_s9, 4096 }
 0x877   : > { %p4871_p4 = scmp.ne.s32.totalorder %s7010_s27, %s4870_s17  ;;  %p4875_p9 = scmp.lt.s32.totalorder %s7010_s27, %s7068_s9 }
 0x878   : > { %p4876_p10 = scmp.lt.s32.totalorder %s4874_s23, %s4870_s17 }
 0x879   : > { %p4872_p7 = pnand %p4871_p4, %p5011_p5 }
 0x87a   : > { %p4877_p11 = por %p4876_p10, %p4875_p9 }
 0x87b   : > { %p4873_p8 = pneg %p4872_p7 }
 0x87d   : > { %p4878_p12 = pnand %p4877_p11, %p4873_p8 }
 0x87f   : > { %4881 = shalt.err (!%p4878_p12)
}
 0x880   : > { %s4921_s28 = smov 128   ;;  %s4922_s29 = smov 8  }
 0x881   : > { %4584 = dma.vmem_to_hbm [thread:$0]  (%p5011_p5), %s7012_s24, 2048, %s7010_s27, %s7019_s13, %s4921_s28, %s4921_s28, %s4922_s29  }
 0x882 PF: > { %p4590_p13 = scmp.ge.s32.totalorder %s4916_s12, 2  ;;  %s3856_s14 = sand.u32 1, %s4904_s30  }
 0x883   : > { %s3857_s16 = scalar_lea.sflag [#allocation5], %s3856_s14 }
 0x884   : > { %p4587_p0 = pnand %p4590_p13, %p5015_p6 }
 0x886   : > { %p4588_p1 = pneg %p4587_p0 }
 0x888   : > { %4899 = dma.done.wait (%p4588_p1), %s3857_s16, 2048  }
 0x889   : > { %4901 = vsyncadd (%p4588_p1), %s3857_s16, 4294965248  ;;  %p19_p2 = scmp.ge.s32.totalorder %s4998_s15, 4   ;;  %s7550_s30 = smov %s4908_s10 }
 0x88a   : > { %s7551_s10 = smov %s4912_s11  ;;  %s7552_s11 = smov %s5009_s18 }
 0x88b   : > { %s7553_s12 = smov %s4998_s15  ;;  %21 = sbr.rel (!%p19_p2) target bundleno = 3 (0x3), region = 97 }
 0x890   :  { %3862 = vsyncpa [#allocation5], 1 }
 0x891   :  { %3864 = vsyncpa [#allocation5 + $0x1], 1 }

</bundles_post_ra>
